<compile_context>
chip_gen: v7x
topology: tpu7x:2x2x1
jax: 0.10.0
libtpu: 0.0.40
codegen_flags: <defaults>
</compile_context>

<pallas_src>
import functools
import math

import jax
import jax.numpy as jnp
from jax import lax
from jax.experimental import pallas as pl
from jax.experimental.pallas import tpu as pltpu


def _round_up(x, m):
    return (x + m - 1) // m * m


# ----------------------------- Pallas kernel ---------------------------------
def sentiment_lstm_kernel(
    x_ref,                            # (T*Bp, Ep)  bf16  time-major flattened embeddings
    w_ih0_ref, w_hh0_ref, b0_ref,     # (Ep,4Hp) bf16, (Hp,4Hp) bf16, (1,4Hp) f32   layer-0
    w_cat1_ref, b1_ref,               # (2Hp,4Hp) bf16, (1,4Hp) f32                 layer-1 (stacked)
    fc_w_ref, fc_b_ref,               # (Hp,Op) bf16, (1,Op) f32                    final Linear
    out_ref,                          # (Bp, Op) f32   log_softmax of last time step
    hn_ref, cn_ref,                   # (2, Bp, Hp) f32  final hidden / cell states
    xp0_ref,                          # scratch (T*Bp, 4Hp) bf16: hoisted layer-0 input projection
    x1cat_ref,                        # scratch (Bp, 2Hp)  bf16: persistent [h0 | h1]
    *, T, Bp, Hp, n_out,
):
    G = 4 * Hp
    f32 = jnp.float32

    # ---- hoisted layer-0 input projection: one big MXU matmul over all timesteps ----
    # bf16 operands, f32 accumulate, stored bf16 to keep the T-scaling scratch small.
    xp0_ref[...] = (
        jnp.dot(x_ref[...], w_ih0_ref[...], preferred_element_type=f32)
        + b0_ref[...]
    ).astype(jnp.bfloat16)

    # hoisted bias broadcast for layer 1 (JAX does not CSE broadcast_in_dim in loops)
    b1 = jnp.broadcast_to(b1_ref[...], (Bp, G))

    zeros = jnp.zeros((Bp, Hp), f32)
    h0, c0, h1, c1 = zeros, zeros, zeros, zeros
    x1cat_ref[...] = jnp.zeros((Bp, 2 * Hp), jnp.bfloat16)   # [h0_init | h1_init] = 0

    def cell(gates, c_prev):
        # PyTorch gate order i, f, g, o; each slice is a full 128-lane-aligned block.
        i = jax.nn.sigmoid(gates[:, 0 * Hp:1 * Hp])
        f = jax.nn.sigmoid(gates[:, 1 * Hp:2 * Hp])
        g = jnp.tanh(gates[:, 2 * Hp:3 * Hp])
        o = jax.nn.sigmoid(gates[:, 3 * Hp:4 * Hp])
        c_new = f * c_prev + i * g
        h_new = o * jnp.tanh(c_new)
        return h_new, c_new

    # ---- layer-pipelined time loop -------------------------------------------------
    # Iteration t runs layer-0 step t and layer-1 step t-1.  Both dots read only
    # x1_prev (state produced in iteration t-1), so they are independent within the
    # iteration and overlap on MXU / EUP instead of serializing.
    # Static unroll: T is small & static (== lax.fori_loop(..., unroll=True)).
    # TODO(synk): at production T, stream the time axis (fori_loop or a grid axis with
    # h/c carried in VMEM scratch) to bound vreg live ranges and pipeline the x DMA.
    for t in range(T + 1):
        x1_prev = x1cat_ref[...]                 # bf16 (Bp, 2Hp) = [h0_{t-1} | h1_{t-2}]

        if t < T:       # layer-0 step t: hoisted input projection + recurrent matmul
            g0 = xp0_ref[t * Bp:(t + 1) * Bp, :].astype(f32) + jnp.dot(
                x1_prev[:, :Hp], w_hh0_ref[...], preferred_element_type=f32)
        if t >= 1:      # layer-1 step t-1: single stacked dot  [h0,h1] @ [W_ih1; W_hh1]
            g1 = jnp.dot(x1_prev, w_cat1_ref[...], preferred_element_type=f32) + b1

        if t < T:
            h0, c0 = cell(g0, c0)
            x1cat_ref[:, :Hp] = h0.astype(jnp.bfloat16)      # lane-aligned half write
        if t >= 1:
            h1, c1 = cell(g1, c1)
            x1cat_ref[:, Hp:] = h1.astype(jnp.bfloat16)

    hn_ref[0] = h0
    hn_ref[1] = h1
    cn_ref[0] = c0
    cn_ref[1] = c1

    # ---- dropout (eval => identity) + FC + log_softmax on last step of top layer ----
    logits = (
        jnp.dot(x1cat_ref[:, Hp:], fc_w_ref[...], preferred_element_type=f32)
        + fc_b_ref[...]
    )                                                        # (Bp, Op)
    # explicit mask on padded output lanes (more robust than a huge negative bias)
    col = lax.broadcasted_iota(jnp.int32, logits.shape, 1)
    logits = jnp.where(col < n_out, logits, jnp.float32(-1e30))
    m = jnp.max(logits, axis=1, keepdims=True)
    shifted = logits - m
    lse = jnp.log(jnp.sum(jnp.exp(shifted), axis=1, keepdims=True))
    out_ref[...] = shifted - lse


# ----------------------------- wrapper ----------------------------------------
def sentiment_lstm_forward(x_tokens, params):
    """x_tokens: (B, T) int32.  Returns (log_softmax_last (B,O), (h_n, c_n))."""
    emb = params["embedding"]                   # (V, E)
    B, T = x_tokens.shape
    E = emb.shape[1]
    H = params["w_hh0"].shape[1]
    O = params["fc_w"].shape[0]
    L = 2

    # pad to full vregs: batch -> sublanes (8), feature dims -> lanes (128)
    Bp = _round_up(B, 8)
    Ep = _round_up(E, 128)
    Hp = _round_up(H, 128)
    Op = _round_up(O, 128)
    G = 4 * Hp

    # embedding gather + padding + time-major flatten (plain-JAX glue), streamed bf16.
    # NOTE: at production E one would avoid the E->Ep lane pad in HBM (fold the zero
    # rows into W_ih0; the K pad is free on the MXU) -- kept here for layout simplicity.
    embeds = jnp.take(emb, x_tokens, axis=0).astype(jnp.float32)        # (B, T, E)
    embeds = jnp.pad(embeds, ((0, Bp - B), (0, 0), (0, Ep - E)))        # (Bp, T, Ep)
    x_flat = jnp.transpose(embeds, (1, 0, 2)).reshape(T * Bp, Ep)
    x_flat = x_flat.astype(jnp.bfloat16)                                # (T*Bp, Ep) bf16

    def pad_gate_w(w, in_dim, in_pad):
        # w: (4H, in_dim) PyTorch layout -> (in_pad, 4*Hp) kernel layout (bf16),
        # padding each gate block to Hp so gate g owns columns [g*Hp, (g+1)*Hp).
        w4 = w.reshape(4, H, in_dim).astype(jnp.float32)
        w4 = jnp.pad(w4, ((0, 0), (0, Hp - H), (0, in_pad - in_dim)))
        return jnp.transpose(w4, (2, 0, 1)).reshape(in_pad, G).astype(jnp.bfloat16)

    def pad_gate_b(b):
        b4 = jnp.pad(b.reshape(4, H).astype(jnp.float32), ((0, 0), (0, Hp - H)))
        return b4.reshape(1, G)                                          # f32 (post-accum add)

    w_ih0_k = pad_gate_w(params["w_ih0"], E, Ep)                        # (Ep, 4Hp) bf16
    w_hh0_k = pad_gate_w(params["w_hh0"], H, Hp)                        # (Hp, 4Hp) bf16
    b0_k = pad_gate_b(params["b_ih0"] + params["b_hh0"])                # (1, 4Hp) f32

    w_ih1_k = pad_gate_w(params["w_ih1"], H, Hp)                        # (Hp, 4Hp) bf16
    w_hh1_k = pad_gate_w(params["w_hh1"], H, Hp)                        # (Hp, 4Hp) bf16
    w_cat1_k = jnp.concatenate([w_ih1_k, w_hh1_k], axis=0)              # (2Hp, 4Hp) bf16
    b1_k = pad_gate_b(params["b_ih1"] + params["b_hh1"])                # (1, 4Hp) f32

    fc_w_k = jnp.pad(params["fc_w"].T.astype(jnp.float32),
                     ((0, Hp - H), (0, Op - O))).astype(jnp.bfloat16)   # (Hp, Op) bf16
    fc_b_k = jnp.zeros((1, Op), jnp.float32).at[0, :O].set(
        params["fc_b"].astype(jnp.float32))                             # (1, Op) f32

    # ---- cost estimate + VMEM budget (cheap insurance at production shapes) ----
    bytes_in = (T * Bp * Ep * 2 + Ep * G * 2 + Hp * G * 2 + G * 4
                + 2 * Hp * G * 2 + G * 4 + Hp * Op * 2 + Op * 4)
    bytes_out = Bp * Op * 4 + 2 * (L * Bp * Hp * 4)
    scratch_bytes = T * Bp * G * 2 + Bp * 2 * Hp * 2
    flops = 2 * T * Bp * (Ep + Hp + 2 * Hp) * G + 2 * Bp * Hp * Op
    transcendentals = 10 * T * Bp * Hp + 2 * Bp * Op
    cost = pl.CostEstimate(flops=flops, transcendentals=transcendentals,
                           bytes_accessed=bytes_in + bytes_out)
    vmem_limit = int(max(2 * (bytes_in + bytes_out + scratch_bytes), 8 * 1024 * 1024))

    vmem = lambda: pl.BlockSpec(memory_space=pltpu.MemorySpace.VMEM)
    kern = functools.partial(sentiment_lstm_kernel, T=T, Bp=Bp, Hp=Hp, n_out=O)

    # NOTE(v7x): once batch is non-trivial, add a batch grid axis with
    # dimension_semantics=("parallel",) (or pl.core_map over the 2-TC mesh) to use both
    # TensorCores; at Bp=8 (one tile) a grid is pure overhead, so none is used here.
    out_p, hn_p, cn_p = pl.pallas_call(
        kern,
        out_shape=(
            jax.ShapeDtypeStruct((Bp, Op), jnp.float32),
            jax.ShapeDtypeStruct((L, Bp, Hp), jnp.float32),
            jax.ShapeDtypeStruct((L, Bp, Hp), jnp.float32),
        ),
        in_specs=[vmem() for _ in range(8)],
        out_specs=(vmem(), vmem(), vmem()),
        scratch_shapes=[
            pltpu.VMEM((T * Bp, G), jnp.bfloat16),   # hoisted layer-0 input projection
            pltpu.VMEM((Bp, 2 * Hp), jnp.bfloat16),  # persistent [h0 | h1] for stacked dot
        ],
        compiler_params=pltpu.CompilerParams(vmem_limit_bytes=vmem_limit),
        cost_estimate=cost,
    )(x_flat, w_ih0_k, w_hh0_k, b0_k, w_cat1_k, b1_k, fc_w_k, fc_b_k)

    out = out_p[:B, :O]
    h_n = hn_p[:, :B, :H]
    c_n = cn_p[:, :B, :H]
    return out, (h_n, c_n)


# ----------------------------- pure-JAX reference ------------------------------
def reference_forward(x_tokens, params):
    HIGH = lax.Precision.HIGHEST        # true-f32 reference; kernel uses bf16 MXU operands
    emb = params["embedding"]
    embeds = jnp.take(emb, x_tokens, axis=0)                            # (B, T, E)
    B, T, _ = embeds.shape
    H = params["w_hh0"].shape[1]

    def run_layer(seq, w_ih, w_hh, b_ih, b_hh):
        def step(carry, x_t):
            h, c = carry
            gates = (jnp.dot(x_t, w_ih.T, precision=HIGH) + b_ih
                     + jnp.dot(h, w_hh.T, precision=HIGH) + b_hh)
            i, f, g, o = jnp.split(gates, 4, axis=-1)
            i, f, o = jax.nn.sigmoid(i), jax.nn.sigmoid(f), jax.nn.sigmoid(o)
            g = jnp.tanh(g)
            c = f * c + i * g
            h = o * jnp.tanh(c)
            return (h, c), h

        init = (jnp.zeros((B, H)), jnp.zeros((B, H)))
        (h, c), outs = lax.scan(step, init, jnp.transpose(seq, (1, 0, 2)))
        return jnp.transpose(outs, (1, 0, 2)), h, c

    seq0, h0, c0 = run_layer(embeds, params["w_ih0"], params["w_hh0"],
                             params["b_ih0"], params["b_hh0"])
    seq1, h1, c1 = run_layer(seq0, params["w_ih1"], params["w_hh1"],
                             params["b_ih1"], params["b_hh1"])
    logits = jnp.dot(seq1[:, -1], params["fc_w"].T, precision=HIGH) + params["fc_b"]
    log_sm = jax.nn.log_softmax(logits, axis=1)
    return log_sm, (jnp.stack([h0, h1]), jnp.stack([c0, c1]))


# ----------------------------- main --------------------------------------------
if __name__ == "__main__":
    V, E, H, O, L = 50, 16, 32, 2, 2     # vocab, embed dim, hidden_dim, output_size, n_layers
    B, T = 2, 8                          # batch, seq len

    key = jax.random.PRNGKey(0)
    ks = jax.random.split(key, 13)
    stdv = 1.0 / math.sqrt(H)
    u = lambda k, shape: jax.random.uniform(k, shape, jnp.float32, -stdv, stdv)

    params = {
        "embedding": jax.random.normal(ks[0], (V, E), jnp.float32),
        "w_ih0": u(ks[1], (4 * H, E)),
        "w_hh0": u(ks[2], (4 * H, H)),
        "b_ih0": u(ks[3], (4 * H,)),
        "b_hh0": u(ks[4], (4 * H,)),
        "w_ih1": u(ks[5], (4 * H, H)),
        "w_hh1": u(ks[6], (4 * H, H)),
        "b_ih1": u(ks[7], (4 * H,)),
        "b_hh1": u(ks[8], (4 * H,)),
        "fc_w": u(ks[9], (O, H)),
        "fc_b": u(ks[10], (O,)),
    }

    x = jax.random.randint(ks[11], (B, T), 0, V, dtype=jnp.int32)

    out, (h_n, c_n) = sentiment_lstm_forward(x, params)
    jax.block_until_ready((out, h_n, c_n))

    ref_out, (ref_h, ref_c) = reference_forward(x, params)
    # bf16 MXU operands in the kernel vs. f32 HIGHEST reference -> bf16-level tolerance.
    assert jnp.allclose(out, ref_out, rtol=5e-2, atol=5e-2)
    assert jnp.allclose(h_n, ref_h, rtol=5e-2, atol=5e-2)
    assert jnp.allclose(c_n, ref_c, rtol=5e-2, atol=5e-2)

    print("KERNEL_OK")
</pallas_src>

<mosaic_0001>
module attributes {stable_mosaic.version = 11 : i64} {
  func.func @sentiment_lstm_kernel(%arg0: memref<64x128xbf16, #tpu.memory_space<vmem>>, %arg1: memref<128x512xbf16, #tpu.memory_space<vmem>>, %arg2: memref<128x512xbf16, #tpu.memory_space<vmem>>, %arg3: memref<1x512xf32, #tpu.memory_space<vmem>>, %arg4: memref<256x512xbf16, #tpu.memory_space<vmem>>, %arg5: memref<1x512xf32, #tpu.memory_space<vmem>>, %arg6: memref<128x128xbf16, #tpu.memory_space<vmem>>, %arg7: memref<1x128xf32, #tpu.memory_space<vmem>>, %arg8: memref<8x128xf32, #tpu.memory_space<vmem>>, %arg9: memref<2x8x128xf32, #tpu.memory_space<vmem>>, %arg10: memref<2x8x128xf32, #tpu.memory_space<vmem>>, %arg11: memref<64x512xbf16, #tpu.memory_space<vmem>>, %arg12: memref<8x256xbf16, #tpu.memory_space<vmem>>) attributes {dimension_semantics = [], scalar_prefetch = 0 : i64, scratch_operands = 2 : i64, tpu.core_type = #tpu.core_type<tc>} {
    %c0 = arith.constant 0 : index
    %c0_0 = arith.constant 0 : index
    %0 = vector.load %arg0[%c0, %c0_0] : memref<64x128xbf16, #tpu.memory_space<vmem>>, vector<64x128xbf16>
    %c0_1 = arith.constant 0 : index
    %c0_2 = arith.constant 0 : index
    %1 = vector.load %arg1[%c0_1, %c0_2] : memref<128x512xbf16, #tpu.memory_space<vmem>>, vector<128x512xbf16>
    %cst = arith.constant dense<0.000000e+00> : vector<64x512xf32>
    %2 = tpu.matmul %0, %1, %cst {dimension_numbers = #tpu.dot_dimension_numbers<[1], [0], [0], [1], [0, 0, 1, 1], [], []>} : vector<64x128xbf16>, vector<128x512xbf16>, vector<64x512xf32> -> vector<64x512xf32>
    %c0_3 = arith.constant 0 : index
    %c0_4 = arith.constant 0 : index
    %3 = vector.load %arg3[%c0_3, %c0_4] : memref<1x512xf32, #tpu.memory_space<vmem>>, vector<1x512xf32>
    %4 = vector.broadcast %3 : vector<1x512xf32> to vector<64x512xf32>
    %5 = arith.addf %2, %4 : vector<64x512xf32>
    %6 = arith.truncf %5 : vector<64x512xf32> to vector<64x512xbf16>
    %c0_5 = arith.constant 0 : index
    %c0_6 = arith.constant 0 : index
    %7 = vector.load %arg11[%c0_5, %c0_6] : memref<64x512xbf16, #tpu.memory_space<vmem>>, vector<64x512xbf16>
    tpu.vector_store %arg11[%c0_5, %c0_6], %6 {strides = array<i32>} : memref<64x512xbf16, #tpu.memory_space<vmem>>, vector<64x512xbf16>,
    %c0_7 = arith.constant 0 : index
    %c0_8 = arith.constant 0 : index
    %8 = vector.load %arg5[%c0_7, %c0_8] : memref<1x512xf32, #tpu.memory_space<vmem>>, vector<1x512xf32>
    %9 = vector.shape_cast %8 : vector<1x512xf32> to vector<1x512xf32>
    %10 = vector.broadcast %9 : vector<1x512xf32> to vector<8x512xf32>
    %cst_9 = arith.constant 0.000000e+00 : f32
    %11 = vector.broadcast %cst_9 : f32 to vector<8x128xf32>
    %cst_10 = arith.constant 0.000000e+00 : bf16
    %12 = vector.broadcast %cst_10 : bf16 to vector<8x256xbf16>
    %c0_11 = arith.constant 0 : index
    %c0_12 = arith.constant 0 : index
    %13 = vector.load %arg12[%c0_11, %c0_12] : memref<8x256xbf16, #tpu.memory_space<vmem>>, vector<8x256xbf16>
    tpu.vector_store %arg12[%c0_11, %c0_12], %12 {strides = array<i32>} : memref<8x256xbf16, #tpu.memory_space<vmem>>, vector<8x256xbf16>,
    %c0_13 = arith.constant 0 : index
    %c0_14 = arith.constant 0 : index
    %14 = vector.load %arg12[%c0_13, %c0_14] : memref<8x256xbf16, #tpu.memory_space<vmem>>, vector<8x256xbf16>
    %c0_15 = arith.constant 0 : index
    %c0_16 = arith.constant 0 : index
    %15 = vector.load %arg11[%c0_15, %c0_16] : memref<64x512xbf16, #tpu.memory_space<vmem>>, vector<8x512xbf16>
    %16 = arith.extf %15 : vector<8x512xbf16> to vector<8x512xf32>
    %17 = vector.extract_strided_slice %14 {offsets = [0, 0], sizes = [8, 128], strides = [1, 1]} : vector<8x256xbf16> to vector<8x128xbf16>
    %c0_17 = arith.constant 0 : index
    %c0_18 = arith.constant 0 : index
    %18 = vector.load %arg2[%c0_17, %c0_18] : memref<128x512xbf16, #tpu.memory_space<vmem>>, vector<128x512xbf16>
    %cst_19 = arith.constant dense<0.000000e+00> : vector<8x512xf32>
    %19 = tpu.matmul %17, %18, %cst_19 {dimension_numbers = #tpu.dot_dimension_numbers<[1], [0], [0], [1], [0, 0, 1, 1], [], []>} : vector<8x128xbf16>, vector<128x512xbf16>, vector<8x512xf32> -> vector<8x512xf32>
    %20 = arith.addf %16, %19 : vector<8x512xf32>
    %21 = vector.extract_strided_slice %20 {offsets = [0, 0], sizes = [8, 128], strides = [1, 1]} : vector<8x512xf32> to vector<8x128xf32>
    %22 = arith.negf %21 : vector<8x128xf32>
    %23 = math.exp %22 : vector<8x128xf32>
    %cst_20 = arith.constant 1.000000e+00 : f32
    %24 = vector.broadcast %cst_20 : f32 to vector<8x128xf32>
    %25 = arith.addf %24, %23 : vector<8x128xf32>
    %26 = arith.divf %24, %25 : vector<8x128xf32>
    %27 = vector.extract_strided_slice %20 {offsets = [0, 128], sizes = [8, 128], strides = [1, 1]} : vector<8x512xf32> to vector<8x128xf32>
    %28 = arith.negf %27 : vector<8x128xf32>
    %29 = math.exp %28 : vector<8x128xf32>
    %cst_21 = arith.constant 1.000000e+00 : f32
    %30 = vector.broadcast %cst_21 : f32 to vector<8x128xf32>
    %31 = arith.addf %30, %29 : vector<8x128xf32>
    %32 = arith.divf %30, %31 : vector<8x128xf32>
    %33 = vector.extract_strided_slice %20 {offsets = [0, 256], sizes = [8, 128], strides = [1, 1]} : vector<8x512xf32> to vector<8x128xf32>
    %34 = math.tanh %33 : vector<8x128xf32>
    %35 = vector.extract_strided_slice %20 {offsets = [0, 384], sizes = [8, 128], strides = [1, 1]} : vector<8x512xf32> to vector<8x128xf32>
    %36 = arith.negf %35 : vector<8x128xf32>
    %37 = math.exp %36 : vector<8x128xf32>
    %cst_22 = arith.constant 1.000000e+00 : f32
    %38 = vector.broadcast %cst_22 : f32 to vector<8x128xf32>
    %39 = arith.addf %38, %37 : vector<8x128xf32>
    %40 = arith.divf %38, %39 : vector<8x128xf32>
    %41 = arith.mulf %32, %11 : vector<8x128xf32>
    %42 = arith.mulf %26, %34 : vector<8x128xf32>
    %43 = arith.addf %41, %42 : vector<8x128xf32>
    %44 = math.tanh %43 : vector<8x128xf32>
    %45 = arith.mulf %40, %44 : vector<8x128xf32>
    %46 = arith.truncf %45 : vector<8x128xf32> to vector<8x128xbf16>
    %c0_23 = arith.constant 0 : index
    %c0_24 = arith.constant 0 : index
    %47 = vector.load %arg12[%c0_23, %c0_24] : memref<8x256xbf16, #tpu.memory_space<vmem>>, vector<8x128xbf16>
    tpu.vector_store %arg12[%c0_23, %c0_24], %46 {strides = array<i32>} : memref<8x256xbf16, #tpu.memory_space<vmem>>, vector<8x128xbf16>,
    %c0_25 = arith.constant 0 : index
    %c0_26 = arith.constant 0 : index
    %48 = vector.load %arg12[%c0_25, %c0_26] : memref<8x256xbf16, #tpu.memory_space<vmem>>, vector<8x256xbf16>
    %c8 = arith.constant 8 : index
    %c0_27 = arith.constant 0 : index
    %49 = vector.load %arg11[%c8, %c0_27] : memref<64x512xbf16, #tpu.memory_space<vmem>>, vector<8x512xbf16>
    %50 = arith.extf %49 : vector<8x512xbf16> to vector<8x512xf32>
    %51 = vector.extract_strided_slice %48 {offsets = [0, 0], sizes = [8, 128], strides = [1, 1]} : vector<8x256xbf16> to vector<8x128xbf16>
    %c0_28 = arith.constant 0 : index
    %c0_29 = arith.constant 0 : index
    %52 = vector.load %arg2[%c0_28, %c0_29] : memref<128x512xbf16, #tpu.memory_space<vmem>>, vector<128x512xbf16>
    %cst_30 = arith.constant dense<0.000000e+00> : vector<8x512xf32>
    %53 = tpu.matmul %51, %52, %cst_30 {dimension_numbers = #tpu.dot_dimension_numbers<[1], [0], [0], [1], [0, 0, 1, 1], [], []>} : vector<8x128xbf16>, vector<128x512xbf16>, vector<8x512xf32> -> vector<8x512xf32>
    %54 = arith.addf %50, %53 : vector<8x512xf32>
    %c0_31 = arith.constant 0 : index
    %c0_32 = arith.constant 0 : index
    %55 = vector.load %arg4[%c0_31, %c0_32] : memref<256x512xbf16, #tpu.memory_space<vmem>>, vector<256x512xbf16>
    %cst_33 = arith.constant dense<0.000000e+00> : vector<8x512xf32>
    %56 = tpu.matmul %48, %55, %cst_33 {dimension_numbers = #tpu.dot_dimension_numbers<[1], [0], [0], [1], [0, 0, 1, 1], [], []>} : vector<8x256xbf16>, vector<256x512xbf16>, vector<8x512xf32> -> vector<8x512xf32>
    %57 = arith.addf %56, %10 : vector<8x512xf32>
    %58 = vector.extract_strided_slice %54 {offsets = [0, 0], sizes = [8, 128], strides = [1, 1]} : vector<8x512xf32> to vector<8x128xf32>
    %59 = arith.negf %58 : vector<8x128xf32>
    %60 = math.exp %59 : vector<8x128xf32>
    %cst_34 = arith.constant 1.000000e+00 : f32
    %61 = vector.broadcast %cst_34 : f32 to vector<8x128xf32>
    %62 = arith.addf %61, %60 : vector<8x128xf32>
    %63 = arith.divf %61, %62 : vector<8x128xf32>
    %64 = vector.extract_strided_slice %54 {offsets = [0, 128], sizes = [8, 128], strides = [1, 1]} : vector<8x512xf32> to vector<8x128xf32>
    %65 = arith.negf %64 : vector<8x128xf32>
    %66 = math.exp %65 : vector<8x128xf32>
    %cst_35 = arith.constant 1.000000e+00 : f32
    %67 = vector.broadcast %cst_35 : f32 to vector<8x128xf32>
    %68 = arith.addf %67, %66 : vector<8x128xf32>
    %69 = arith.divf %67, %68 : vector<8x128xf32>
    %70 = vector.extract_strided_slice %54 {offsets = [0, 256], sizes = [8, 128], strides = [1, 1]} : vector<8x512xf32> to vector<8x128xf32>
    %71 = math.tanh %70 : vector<8x128xf32>
    %72 = vector.extract_strided_slice %54 {offsets = [0, 384], sizes = [8, 128], strides = [1, 1]} : vector<8x512xf32> to vector<8x128xf32>
    %73 = arith.negf %72 : vector<8x128xf32>
    %74 = math.exp %73 : vector<8x128xf32>
    %cst_36 = arith.constant 1.000000e+00 : f32
    %75 = vector.broadcast %cst_36 : f32 to vector<8x128xf32>
    %76 = arith.addf %75, %74 : vector<8x128xf32>
    %77 = arith.divf %75, %76 : vector<8x128xf32>
    %78 = arith.mulf %69, %43 : vector<8x128xf32>
    %79 = arith.mulf %63, %71 : vector<8x128xf32>
    %80 = arith.addf %78, %79 : vector<8x128xf32>
    %81 = math.tanh %80 : vector<8x128xf32>
    %82 = arith.mulf %77, %81 : vector<8x128xf32>
    %83 = arith.truncf %82 : vector<8x128xf32> to vector<8x128xbf16>
    %c0_37 = arith.constant 0 : index
    %c0_38 = arith.constant 0 : index
    %84 = vector.load %arg12[%c0_37, %c0_38] : memref<8x256xbf16, #tpu.memory_space<vmem>>, vector<8x128xbf16>
    tpu.vector_store %arg12[%c0_37, %c0_38], %83 {strides = array<i32>} : memref<8x256xbf16, #tpu.memory_space<vmem>>, vector<8x128xbf16>,
    %85 = vector.extract_strided_slice %57 {offsets = [0, 0], sizes = [8, 128], strides = [1, 1]} : vector<8x512xf32> to vector<8x128xf32>
    %86 = arith.negf %85 : vector<8x128xf32>
    %87 = math.exp %86 : vector<8x128xf32>
    %cst_39 = arith.constant 1.000000e+00 : f32
    %88 = vector.broadcast %cst_39 : f32 to vector<8x128xf32>
    %89 = arith.addf %88, %87 : vector<8x128xf32>
    %90 = arith.divf %88, %89 : vector<8x128xf32>
    %91 = vector.extract_strided_slice %57 {offsets = [0, 128], sizes = [8, 128], strides = [1, 1]} : vector<8x512xf32> to vector<8x128xf32>
    %92 = arith.negf %91 : vector<8x128xf32>
    %93 = math.exp %92 : vector<8x128xf32>
    %cst_40 = arith.constant 1.000000e+00 : f32
    %94 = vector.broadcast %cst_40 : f32 to vector<8x128xf32>
    %95 = arith.addf %94, %93 : vector<8x128xf32>
    %96 = arith.divf %94, %95 : vector<8x128xf32>
    %97 = vector.extract_strided_slice %57 {offsets = [0, 256], sizes = [8, 128], strides = [1, 1]} : vector<8x512xf32> to vector<8x128xf32>
    %98 = math.tanh %97 : vector<8x128xf32>
    %99 = vector.extract_strided_slice %57 {offsets = [0, 384], sizes = [8, 128], strides = [1, 1]} : vector<8x512xf32> to vector<8x128xf32>
    %100 = arith.negf %99 : vector<8x128xf32>
    %101 = math.exp %100 : vector<8x128xf32>
    %cst_41 = arith.constant 1.000000e+00 : f32
    %102 = vector.broadcast %cst_41 : f32 to vector<8x128xf32>
    %103 = arith.addf %102, %101 : vector<8x128xf32>
    %104 = arith.divf %102, %103 : vector<8x128xf32>
    %105 = arith.mulf %96, %11 : vector<8x128xf32>
    %106 = arith.mulf %90, %98 : vector<8x128xf32>
    %107 = arith.addf %105, %106 : vector<8x128xf32>
    %108 = math.tanh %107 : vector<8x128xf32>
    %109 = arith.mulf %104, %108 : vector<8x128xf32>
    %110 = arith.truncf %109 : vector<8x128xf32> to vector<8x128xbf16>
    %c0_42 = arith.constant 0 : index
    %c128 = arith.constant 128 : index
    %111 = vector.load %arg12[%c0_42, %c128] : memref<8x256xbf16, #tpu.memory_space<vmem>>, vector<8x128xbf16>
    tpu.vector_store %arg12[%c0_42, %c128], %110 {strides = array<i32>} : memref<8x256xbf16, #tpu.memory_space<vmem>>, vector<8x128xbf16>,
    %c0_43 = arith.constant 0 : index
    %c0_44 = arith.constant 0 : index
    %112 = vector.load %arg12[%c0_43, %c0_44] : memref<8x256xbf16, #tpu.memory_space<vmem>>, vector<8x256xbf16>
    %c16 = arith.constant 16 : index
    %c0_45 = arith.constant 0 : index
    %113 = vector.load %arg11[%c16, %c0_45] : memref<64x512xbf16, #tpu.memory_space<vmem>>, vector<8x512xbf16>
    %114 = arith.extf %113 : vector<8x512xbf16> to vector<8x512xf32>
    %115 = vector.extract_strided_slice %112 {offsets = [0, 0], sizes = [8, 128], strides = [1, 1]} : vector<8x256xbf16> to vector<8x128xbf16>
    %c0_46 = arith.constant 0 : index
    %c0_47 = arith.constant 0 : index
    %116 = vector.load %arg2[%c0_46, %c0_47] : memref<128x512xbf16, #tpu.memory_space<vmem>>, vector<128x512xbf16>
    %cst_48 = arith.constant dense<0.000000e+00> : vector<8x512xf32>
    %117 = tpu.matmul %115, %116, %cst_48 {dimension_numbers = #tpu.dot_dimension_numbers<[1], [0], [0], [1], [0, 0, 1, 1], [], []>} : vector<8x128xbf16>, vector<128x512xbf16>, vector<8x512xf32> -> vector<8x512xf32>
    %118 = arith.addf %114, %117 : vector<8x512xf32>
    %c0_49 = arith.constant 0 : index
    %c0_50 = arith.constant 0 : index
    %119 = vector.load %arg4[%c0_49, %c0_50] : memref<256x512xbf16, #tpu.memory_space<vmem>>, vector<256x512xbf16>
    %cst_51 = arith.constant dense<0.000000e+00> : vector<8x512xf32>
    %120 = tpu.matmul %112, %119, %cst_51 {dimension_numbers = #tpu.dot_dimension_numbers<[1], [0], [0], [1], [0, 0, 1, 1], [], []>} : vector<8x256xbf16>, vector<256x512xbf16>, vector<8x512xf32> -> vector<8x512xf32>
    %121 = arith.addf %120, %10 : vector<8x512xf32>
    %122 = vector.extract_strided_slice %118 {offsets = [0, 0], sizes = [8, 128], strides = [1, 1]} : vector<8x512xf32> to vector<8x128xf32>
    %123 = arith.negf %122 : vector<8x128xf32>
    %124 = math.exp %123 : vector<8x128xf32>
    %cst_52 = arith.constant 1.000000e+00 : f32
    %125 = vector.broadcast %cst_52 : f32 to vector<8x128xf32>
    %126 = arith.addf %125, %124 : vector<8x128xf32>
    %127 = arith.divf %125, %126 : vector<8x128xf32>
    %128 = vector.extract_strided_slice %118 {offsets = [0, 128], sizes = [8, 128], strides = [1, 1]} : vector<8x512xf32> to vector<8x128xf32>
    %129 = arith.negf %128 : vector<8x128xf32>
    %130 = math.exp %129 : vector<8x128xf32>
    %cst_53 = arith.constant 1.000000e+00 : f32
    %131 = vector.broadcast %cst_53 : f32 to vector<8x128xf32>
    %132 = arith.addf %131, %130 : vector<8x128xf32>
    %133 = arith.divf %131, %132 : vector<8x128xf32>
    %134 = vector.extract_strided_slice %118 {offsets = [0, 256], sizes = [8, 128], strides = [1, 1]} : vector<8x512xf32> to vector<8x128xf32>
    %135 = math.tanh %134 : vector<8x128xf32>
    %136 = vector.extract_strided_slice %118 {offsets = [0, 384], sizes = [8, 128], strides = [1, 1]} : vector<8x512xf32> to vector<8x128xf32>
    %137 = arith.negf %136 : vector<8x128xf32>
    %138 = math.exp %137 : vector<8x128xf32>
    %cst_54 = arith.constant 1.000000e+00 : f32
    %139 = vector.broadcast %cst_54 : f32 to vector<8x128xf32>
    %140 = arith.addf %139, %138 : vector<8x128xf32>
    %141 = arith.divf %139, %140 : vector<8x128xf32>
    %142 = arith.mulf %133, %80 : vector<8x128xf32>
    %143 = arith.mulf %127, %135 : vector<8x128xf32>
    %144 = arith.addf %142, %143 : vector<8x128xf32>
    %145 = math.tanh %144 : vector<8x128xf32>
    %146 = arith.mulf %141, %145 : vector<8x128xf32>
    %147 = arith.truncf %146 : vector<8x128xf32> to vector<8x128xbf16>
    %c0_55 = arith.constant 0 : index
    %c0_56 = arith.constant 0 : index
    %148 = vector.load %arg12[%c0_55, %c0_56] : memref<8x256xbf16, #tpu.memory_space<vmem>>, vector<8x128xbf16>
    tpu.vector_store %arg12[%c0_55, %c0_56], %147 {strides = array<i32>} : memref<8x256xbf16, #tpu.memory_space<vmem>>, vector<8x128xbf16>,
    %149 = vector.extract_strided_slice %121 {offsets = [0, 0], sizes = [8, 128], strides = [1, 1]} : vector<8x512xf32> to vector<8x128xf32>
    %150 = arith.negf %149 : vector<8x128xf32>
    %151 = math.exp %150 : vector<8x128xf32>
    %cst_57 = arith.constant 1.000000e+00 : f32
    %152 = vector.broadcast %cst_57 : f32 to vector<8x128xf32>
    %153 = arith.addf %152, %151 : vector<8x128xf32>
    %154 = arith.divf %152, %153 : vector<8x128xf32>
    %155 = vector.extract_strided_slice %121 {offsets = [0, 128], sizes = [8, 128], strides = [1, 1]} : vector<8x512xf32> to vector<8x128xf32>
    %156 = arith.negf %155 : vector<8x128xf32>
    %157 = math.exp %156 : vector<8x128xf32>
    %cst_58 = arith.constant 1.000000e+00 : f32
    %158 = vector.broadcast %cst_58 : f32 to vector<8x128xf32>
    %159 = arith.addf %158, %157 : vector<8x128xf32>
    %160 = arith.divf %158, %159 : vector<8x128xf32>
    %161 = vector.extract_strided_slice %121 {offsets = [0, 256], sizes = [8, 128], strides = [1, 1]} : vector<8x512xf32> to vector<8x128xf32>
    %162 = math.tanh %161 : vector<8x128xf32>
    %163 = vector.extract_strided_slice %121 {offsets = [0, 384], sizes = [8, 128], strides = [1, 1]} : vector<8x512xf32> to vector<8x128xf32>
    %164 = arith.negf %163 : vector<8x128xf32>
    %165 = math.exp %164 : vector<8x128xf32>
    %cst_59 = arith.constant 1.000000e+00 : f32
    %166 = vector.broadcast %cst_59 : f32 to vector<8x128xf32>
    %167 = arith.addf %166, %165 : vector<8x128xf32>
    %168 = arith.divf %166, %167 : vector<8x128xf32>
    %169 = arith.mulf %160, %107 : vector<8x128xf32>
    %170 = arith.mulf %154, %162 : vector<8x128xf32>
    %171 = arith.addf %169, %170 : vector<8x128xf32>
    %172 = math.tanh %171 : vector<8x128xf32>
    %173 = arith.mulf %168, %172 : vector<8x128xf32>
    %174 = arith.truncf %173 : vector<8x128xf32> to vector<8x128xbf16>
    %c0_60 = arith.constant 0 : index
    %c128_61 = arith.constant 128 : index
    %175 = vector.load %arg12[%c0_60, %c128_61] : memref<8x256xbf16, #tpu.memory_space<vmem>>, vector<8x128xbf16>
    tpu.vector_store %arg12[%c0_60, %c128_61], %174 {strides = array<i32>} : memref<8x256xbf16, #tpu.memory_space<vmem>>, vector<8x128xbf16>,
    %c0_62 = arith.constant 0 : index
    %c0_63 = arith.constant 0 : index
    %176 = vector.load %arg12[%c0_62, %c0_63] : memref<8x256xbf16, #tpu.memory_space<vmem>>, vector<8x256xbf16>
    %c24 = arith.constant 24 : index
    %c0_64 = arith.constant 0 : index
    %177 = vector.load %arg11[%c24, %c0_64] : memref<64x512xbf16, #tpu.memory_space<vmem>>, vector<8x512xbf16>
    %178 = arith.extf %177 : vector<8x512xbf16> to vector<8x512xf32>
    %179 = vector.extract_strided_slice %176 {offsets = [0, 0], sizes = [8, 128], strides = [1, 1]} : vector<8x256xbf16> to vector<8x128xbf16>
    %c0_65 = arith.constant 0 : index
    %c0_66 = arith.constant 0 : index
    %180 = vector.load %arg2[%c0_65, %c0_66] : memref<128x512xbf16, #tpu.memory_space<vmem>>, vector<128x512xbf16>
    %cst_67 = arith.constant dense<0.000000e+00> : vector<8x512xf32>
    %181 = tpu.matmul %179, %180, %cst_67 {dimension_numbers = #tpu.dot_dimension_numbers<[1], [0], [0], [1], [0, 0, 1, 1], [], []>} : vector<8x128xbf16>, vector<128x512xbf16>, vector<8x512xf32> -> vector<8x512xf32>
    %182 = arith.addf %178, %181 : vector<8x512xf32>
    %c0_68 = arith.constant 0 : index
    %c0_69 = arith.constant 0 : index
    %183 = vector.load %arg4[%c0_68, %c0_69] : memref<256x512xbf16, #tpu.memory_space<vmem>>, vector<256x512xbf16>
    %cst_70 = arith.constant dense<0.000000e+00> : vector<8x512xf32>
    %184 = tpu.matmul %176, %183, %cst_70 {dimension_numbers = #tpu.dot_dimension_numbers<[1], [0], [0], [1], [0, 0, 1, 1], [], []>} : vector<8x256xbf16>, vector<256x512xbf16>, vector<8x512xf32> -> vector<8x512xf32>
    %185 = arith.addf %184, %10 : vector<8x512xf32>
    %186 = vector.extract_strided_slice %182 {offsets = [0, 0], sizes = [8, 128], strides = [1, 1]} : vector<8x512xf32> to vector<8x128xf32>
    %187 = arith.negf %186 : vector<8x128xf32>
    %188 = math.exp %187 : vector<8x128xf32>
    %cst_71 = arith.constant 1.000000e+00 : f32
    %189 = vector.broadcast %cst_71 : f32 to vector<8x128xf32>
    %190 = arith.addf %189, %188 : vector<8x128xf32>
    %191 = arith.divf %189, %190 : vector<8x128xf32>
    %192 = vector.extract_strided_slice %182 {offsets = [0, 128], sizes = [8, 128], strides = [1, 1]} : vector<8x512xf32> to vector<8x128xf32>
    %193 = arith.negf %192 : vector<8x128xf32>
    %194 = math.exp %193 : vector<8x128xf32>
    %cst_72 = arith.constant 1.000000e+00 : f32
    %195 = vector.broadcast %cst_72 : f32 to vector<8x128xf32>
    %196 = arith.addf %195, %194 : vector<8x128xf32>
    %197 = arith.divf %195, %196 : vector<8x128xf32>
    %198 = vector.extract_strided_slice %182 {offsets = [0, 256], sizes = [8, 128], strides = [1, 1]} : vector<8x512xf32> to vector<8x128xf32>
    %199 = math.tanh %198 : vector<8x128xf32>
    %200 = vector.extract_strided_slice %182 {offsets = [0, 384], sizes = [8, 128], strides = [1, 1]} : vector<8x512xf32> to vector<8x128xf32>
    %201 = arith.negf %200 : vector<8x128xf32>
    %202 = math.exp %201 : vector<8x128xf32>
    %cst_73 = arith.constant 1.000000e+00 : f32
    %203 = vector.broadcast %cst_73 : f32 to vector<8x128xf32>
    %204 = arith.addf %203, %202 : vector<8x128xf32>
    %205 = arith.divf %203, %204 : vector<8x128xf32>
    %206 = arith.mulf %197, %144 : vector<8x128xf32>
    %207 = arith.mulf %191, %199 : vector<8x128xf32>
    %208 = arith.addf %206, %207 : vector<8x128xf32>
    %209 = math.tanh %208 : vector<8x128xf32>
    %210 = arith.mulf %205, %209 : vector<8x128xf32>
    %211 = arith.truncf %210 : vector<8x128xf32> to vector<8x128xbf16>
    %c0_74 = arith.constant 0 : index
    %c0_75 = arith.constant 0 : index
    %212 = vector.load %arg12[%c0_74, %c0_75] : memref<8x256xbf16, #tpu.memory_space<vmem>>, vector<8x128xbf16>
    tpu.vector_store %arg12[%c0_74, %c0_75], %211 {strides = array<i32>} : memref<8x256xbf16, #tpu.memory_space<vmem>>, vector<8x128xbf16>,
    %213 = vector.extract_strided_slice %185 {offsets = [0, 0], sizes = [8, 128], strides = [1, 1]} : vector<8x512xf32> to vector<8x128xf32>
    %214 = arith.negf %213 : vector<8x128xf32>
    %215 = math.exp %214 : vector<8x128xf32>
    %cst_76 = arith.constant 1.000000e+00 : f32
    %216 = vector.broadcast %cst_76 : f32 to vector<8x128xf32>
    %217 = arith.addf %216, %215 : vector<8x128xf32>
    %218 = arith.divf %216, %217 : vector<8x128xf32>
    %219 = vector.extract_strided_slice %185 {offsets = [0, 128], sizes = [8, 128], strides = [1, 1]} : vector<8x512xf32> to vector<8x128xf32>
    %220 = arith.negf %219 : vector<8x128xf32>
    %221 = math.exp %220 : vector<8x128xf32>
    %cst_77 = arith.constant 1.000000e+00 : f32
    %222 = vector.broadcast %cst_77 : f32 to vector<8x128xf32>
    %223 = arith.addf %222, %221 : vector<8x128xf32>
    %224 = arith.divf %222, %223 : vector<8x128xf32>
    %225 = vector.extract_strided_slice %185 {offsets = [0, 256], sizes = [8, 128], strides = [1, 1]} : vector<8x512xf32> to vector<8x128xf32>
    %226 = math.tanh %225 : vector<8x128xf32>
    %227 = vector.extract_strided_slice %185 {offsets = [0, 384], sizes = [8, 128], strides = [1, 1]} : vector<8x512xf32> to vector<8x128xf32>
    %228 = arith.negf %227 : vector<8x128xf32>
    %229 = math.exp %228 : vector<8x128xf32>
    %cst_78 = arith.constant 1.000000e+00 : f32
    %230 = vector.broadcast %cst_78 : f32 to vector<8x128xf32>
    %231 = arith.addf %230, %229 : vector<8x128xf32>
    %232 = arith.divf %230, %231 : vector<8x128xf32>
    %233 = arith.mulf %224, %171 : vector<8x128xf32>
    %234 = arith.mulf %218, %226 : vector<8x128xf32>
    %235 = arith.addf %233, %234 : vector<8x128xf32>
    %236 = math.tanh %235 : vector<8x128xf32>
    %237 = arith.mulf %232, %236 : vector<8x128xf32>
    %238 = arith.truncf %237 : vector<8x128xf32> to vector<8x128xbf16>
    %c0_79 = arith.constant 0 : index
    %c128_80 = arith.constant 128 : index
    %239 = vector.load %arg12[%c0_79, %c128_80] : memref<8x256xbf16, #tpu.memory_space<vmem>>, vector<8x128xbf16>
    tpu.vector_store %arg12[%c0_79, %c128_80], %238 {strides = array<i32>} : memref<8x256xbf16, #tpu.memory_space<vmem>>, vector<8x128xbf16>,
    %c0_81 = arith.constant 0 : index
    %c0_82 = arith.constant 0 : index
    %240 = vector.load %arg12[%c0_81, %c0_82] : memref<8x256xbf16, #tpu.memory_space<vmem>>, vector<8x256xbf16>
    %c32 = arith.constant 32 : index
    %c0_83 = arith.constant 0 : index
    %241 = vector.load %arg11[%c32, %c0_83] : memref<64x512xbf16, #tpu.memory_space<vmem>>, vector<8x512xbf16>
    %242 = arith.extf %241 : vector<8x512xbf16> to vector<8x512xf32>
    %243 = vector.extract_strided_slice %240 {offsets = [0, 0], sizes = [8, 128], strides = [1, 1]} : vector<8x256xbf16> to vector<8x128xbf16>
    %c0_84 = arith.constant 0 : index
    %c0_85 = arith.constant 0 : index
    %244 = vector.load %arg2[%c0_84, %c0_85] : memref<128x512xbf16, #tpu.memory_space<vmem>>, vector<128x512xbf16>
    %cst_86 = arith.constant dense<0.000000e+00> : vector<8x512xf32>
    %245 = tpu.matmul %243, %244, %cst_86 {dimension_numbers = #tpu.dot_dimension_numbers<[1], [0], [0], [1], [0, 0, 1, 1], [], []>} : vector<8x128xbf16>, vector<128x512xbf16>, vector<8x512xf32> -> vector<8x512xf32>
    %246 = arith.addf %242, %245 : vector<8x512xf32>
    %c0_87 = arith.constant 0 : index
    %c0_88 = arith.constant 0 : index
    %247 = vector.load %arg4[%c0_87, %c0_88] : memref<256x512xbf16, #tpu.memory_space<vmem>>, vector<256x512xbf16>
    %cst_89 = arith.constant dense<0.000000e+00> : vector<8x512xf32>
    %248 = tpu.matmul %240, %247, %cst_89 {dimension_numbers = #tpu.dot_dimension_numbers<[1], [0], [0], [1], [0, 0, 1, 1], [], []>} : vector<8x256xbf16>, vector<256x512xbf16>, vector<8x512xf32> -> vector<8x512xf32>
    %249 = arith.addf %248, %10 : vector<8x512xf32>
    %250 = vector.extract_strided_slice %246 {offsets = [0, 0], sizes = [8, 128], strides = [1, 1]} : vector<8x512xf32> to vector<8x128xf32>
    %251 = arith.negf %250 : vector<8x128xf32>
    %252 = math.exp %251 : vector<8x128xf32>
    %cst_90 = arith.constant 1.000000e+00 : f32
    %253 = vector.broadcast %cst_90 : f32 to vector<8x128xf32>
    %254 = arith.addf %253, %252 : vector<8x128xf32>
    %255 = arith.divf %253, %254 : vector<8x128xf32>
    %256 = vector.extract_strided_slice %246 {offsets = [0, 128], sizes = [8, 128], strides = [1, 1]} : vector<8x512xf32> to vector<8x128xf32>
    %257 = arith.negf %256 : vector<8x128xf32>
    %258 = math.exp %257 : vector<8x128xf32>
    %cst_91 = arith.constant 1.000000e+00 : f32
    %259 = vector.broadcast %cst_91 : f32 to vector<8x128xf32>
    %260 = arith.addf %259, %258 : vector<8x128xf32>
    %261 = arith.divf %259, %260 : vector<8x128xf32>
    %262 = vector.extract_strided_slice %246 {offsets = [0, 256], sizes = [8, 128], strides = [1, 1]} : vector<8x512xf32> to vector<8x128xf32>
    %263 = math.tanh %262 : vector<8x128xf32>
    %264 = vector.extract_strided_slice %246 {offsets = [0, 384], sizes = [8, 128], strides = [1, 1]} : vector<8x512xf32> to vector<8x128xf32>
    %265 = arith.negf %264 : vector<8x128xf32>
    %266 = math.exp %265 : vector<8x128xf32>
    %cst_92 = arith.constant 1.000000e+00 : f32
    %267 = vector.broadcast %cst_92 : f32 to vector<8x128xf32>
    %268 = arith.addf %267, %266 : vector<8x128xf32>
    %269 = arith.divf %267, %268 : vector<8x128xf32>
    %270 = arith.mulf %261, %208 : vector<8x128xf32>
    %271 = arith.mulf %255, %263 : vector<8x128xf32>
    %272 = arith.addf %270, %271 : vector<8x128xf32>
    %273 = math.tanh %272 : vector<8x128xf32>
    %274 = arith.mulf %269, %273 : vector<8x128xf32>
    %275 = arith.truncf %274 : vector<8x128xf32> to vector<8x128xbf16>
    %c0_93 = arith.constant 0 : index
    %c0_94 = arith.constant 0 : index
    %276 = vector.load %arg12[%c0_93, %c0_94] : memref<8x256xbf16, #tpu.memory_space<vmem>>, vector<8x128xbf16>
    tpu.vector_store %arg12[%c0_93, %c0_94], %275 {strides = array<i32>} : memref<8x256xbf16, #tpu.memory_space<vmem>>, vector<8x128xbf16>,
    %277 = vector.extract_strided_slice %249 {offsets = [0, 0], sizes = [8, 128], strides = [1, 1]} : vector<8x512xf32> to vector<8x128xf32>
    %278 = arith.negf %277 : vector<8x128xf32>
    %279 = math.exp %278 : vector<8x128xf32>
    %cst_95 = arith.constant 1.000000e+00 : f32
    %280 = vector.broadcast %cst_95 : f32 to vector<8x128xf32>
    %281 = arith.addf %280, %279 : vector<8x128xf32>
    %282 = arith.divf %280, %281 : vector<8x128xf32>
    %283 = vector.extract_strided_slice %249 {offsets = [0, 128], sizes = [8, 128], strides = [1, 1]} : vector<8x512xf32> to vector<8x128xf32>
    %284 = arith.negf %283 : vector<8x128xf32>
    %285 = math.exp %284 : vector<8x128xf32>
    %cst_96 = arith.constant 1.000000e+00 : f32
    %286 = vector.broadcast %cst_96 : f32 to vector<8x128xf32>
    %287 = arith.addf %286, %285 : vector<8x128xf32>
    %288 = arith.divf %286, %287 : vector<8x128xf32>
    %289 = vector.extract_strided_slice %249 {offsets = [0, 256], sizes = [8, 128], strides = [1, 1]} : vector<8x512xf32> to vector<8x128xf32>
    %290 = math.tanh %289 : vector<8x128xf32>
    %291 = vector.extract_strided_slice %249 {offsets = [0, 384], sizes = [8, 128], strides = [1, 1]} : vector<8x512xf32> to vector<8x128xf32>
    %292 = arith.negf %291 : vector<8x128xf32>
    %293 = math.exp %292 : vector<8x128xf32>
    %cst_97 = arith.constant 1.000000e+00 : f32
    %294 = vector.broadcast %cst_97 : f32 to vector<8x128xf32>
    %295 = arith.addf %294, %293 : vector<8x128xf32>
    %296 = arith.divf %294, %295 : vector<8x128xf32>
    %297 = arith.mulf %288, %235 : vector<8x128xf32>
    %298 = arith.mulf %282, %290 : vector<8x128xf32>
    %299 = arith.addf %297, %298 : vector<8x128xf32>
    %300 = math.tanh %299 : vector<8x128xf32>
    %301 = arith.mulf %296, %300 : vector<8x128xf32>
    %302 = arith.truncf %301 : vector<8x128xf32> to vector<8x128xbf16>
    %c0_98 = arith.constant 0 : index
    %c128_99 = arith.constant 128 : index
    %303 = vector.load %arg12[%c0_98, %c128_99] : memref<8x256xbf16, #tpu.memory_space<vmem>>, vector<8x128xbf16>
    tpu.vector_store %arg12[%c0_98, %c128_99], %302 {strides = array<i32>} : memref<8x256xbf16, #tpu.memory_space<vmem>>, vector<8x128xbf16>,
    %c0_100 = arith.constant 0 : index
    %c0_101 = arith.constant 0 : index
    %304 = vector.load %arg12[%c0_100, %c0_101] : memref<8x256xbf16, #tpu.memory_space<vmem>>, vector<8x256xbf16>
    %c40 = arith.constant 40 : index
    %c0_102 = arith.constant 0 : index
    %305 = vector.load %arg11[%c40, %c0_102] : memref<64x512xbf16, #tpu.memory_space<vmem>>, vector<8x512xbf16>
    %306 = arith.extf %305 : vector<8x512xbf16> to vector<8x512xf32>
    %307 = vector.extract_strided_slice %304 {offsets = [0, 0], sizes = [8, 128], strides = [1, 1]} : vector<8x256xbf16> to vector<8x128xbf16>
    %c0_103 = arith.constant 0 : index
    %c0_104 = arith.constant 0 : index
    %308 = vector.load %arg2[%c0_103, %c0_104] : memref<128x512xbf16, #tpu.memory_space<vmem>>, vector<128x512xbf16>
    %cst_105 = arith.constant dense<0.000000e+00> : vector<8x512xf32>
    %309 = tpu.matmul %307, %308, %cst_105 {dimension_numbers = #tpu.dot_dimension_numbers<[1], [0], [0], [1], [0, 0, 1, 1], [], []>} : vector<8x128xbf16>, vector<128x512xbf16>, vector<8x512xf32> -> vector<8x512xf32>
    %310 = arith.addf %306, %309 : vector<8x512xf32>
    %c0_106 = arith.constant 0 : index
    %c0_107 = arith.constant 0 : index
    %311 = vector.load %arg4[%c0_106, %c0_107] : memref<256x512xbf16, #tpu.memory_space<vmem>>, vector<256x512xbf16>
    %cst_108 = arith.constant dense<0.000000e+00> : vector<8x512xf32>
    %312 = tpu.matmul %304, %311, %cst_108 {dimension_numbers = #tpu.dot_dimension_numbers<[1], [0], [0], [1], [0, 0, 1, 1], [], []>} : vector<8x256xbf16>, vector<256x512xbf16>, vector<8x512xf32> -> vector<8x512xf32>
    %313 = arith.addf %312, %10 : vector<8x512xf32>
    %314 = vector.extract_strided_slice %310 {offsets = [0, 0], sizes = [8, 128], strides = [1, 1]} : vector<8x512xf32> to vector<8x128xf32>
    %315 = arith.negf %314 : vector<8x128xf32>
    %316 = math.exp %315 : vector<8x128xf32>
    %cst_109 = arith.constant 1.000000e+00 : f32
    %317 = vector.broadcast %cst_109 : f32 to vector<8x128xf32>
    %318 = arith.addf %317, %316 : vector<8x128xf32>
    %319 = arith.divf %317, %318 : vector<8x128xf32>
    %320 = vector.extract_strided_slice %310 {offsets = [0, 128], sizes = [8, 128], strides = [1, 1]} : vector<8x512xf32> to vector<8x128xf32>
    %321 = arith.negf %320 : vector<8x128xf32>
    %322 = math.exp %321 : vector<8x128xf32>
    %cst_110 = arith.constant 1.000000e+00 : f32
    %323 = vector.broadcast %cst_110 : f32 to vector<8x128xf32>
    %324 = arith.addf %323, %322 : vector<8x128xf32>
    %325 = arith.divf %323, %324 : vector<8x128xf32>
    %326 = vector.extract_strided_slice %310 {offsets = [0, 256], sizes = [8, 128], strides = [1, 1]} : vector<8x512xf32> to vector<8x128xf32>
    %327 = math.tanh %326 : vector<8x128xf32>
    %328 = vector.extract_strided_slice %310 {offsets = [0, 384], sizes = [8, 128], strides = [1, 1]} : vector<8x512xf32> to vector<8x128xf32>
    %329 = arith.negf %328 : vector<8x128xf32>
    %330 = math.exp %329 : vector<8x128xf32>
    %cst_111 = arith.constant 1.000000e+00 : f32
    %331 = vector.broadcast %cst_111 : f32 to vector<8x128xf32>
    %332 = arith.addf %331, %330 : vector<8x128xf32>
    %333 = arith.divf %331, %332 : vector<8x128xf32>
    %334 = arith.mulf %325, %272 : vector<8x128xf32>
    %335 = arith.mulf %319, %327 : vector<8x128xf32>
    %336 = arith.addf %334, %335 : vector<8x128xf32>
    %337 = math.tanh %336 : vector<8x128xf32>
    %338 = arith.mulf %333, %337 : vector<8x128xf32>
    %339 = arith.truncf %338 : vector<8x128xf32> to vector<8x128xbf16>
    %c0_112 = arith.constant 0 : index
    %c0_113 = arith.constant 0 : index
    %340 = vector.load %arg12[%c0_112, %c0_113] : memref<8x256xbf16, #tpu.memory_space<vmem>>, vector<8x128xbf16>
    tpu.vector_store %arg12[%c0_112, %c0_113], %339 {strides = array<i32>} : memref<8x256xbf16, #tpu.memory_space<vmem>>, vector<8x128xbf16>,
    %341 = vector.extract_strided_slice %313 {offsets = [0, 0], sizes = [8, 128], strides = [1, 1]} : vector<8x512xf32> to vector<8x128xf32>
    %342 = arith.negf %341 : vector<8x128xf32>
    %343 = math.exp %342 : vector<8x128xf32>
    %cst_114 = arith.constant 1.000000e+00 : f32
    %344 = vector.broadcast %cst_114 : f32 to vector<8x128xf32>
    %345 = arith.addf %344, %343 : vector<8x128xf32>
    %346 = arith.divf %344, %345 : vector<8x128xf32>
    %347 = vector.extract_strided_slice %313 {offsets = [0, 128], sizes = [8, 128], strides = [1, 1]} : vector<8x512xf32> to vector<8x128xf32>
    %348 = arith.negf %347 : vector<8x128xf32>
    %349 = math.exp %348 : vector<8x128xf32>
    %cst_115 = arith.constant 1.000000e+00 : f32
    %350 = vector.broadcast %cst_115 : f32 to vector<8x128xf32>
    %351 = arith.addf %350, %349 : vector<8x128xf32>
    %352 = arith.divf %350, %351 : vector<8x128xf32>
    %353 = vector.extract_strided_slice %313 {offsets = [0, 256], sizes = [8, 128], strides = [1, 1]} : vector<8x512xf32> to vector<8x128xf32>
    %354 = math.tanh %353 : vector<8x128xf32>
    %355 = vector.extract_strided_slice %313 {offsets = [0, 384], sizes = [8, 128], strides = [1, 1]} : vector<8x512xf32> to vector<8x128xf32>
    %356 = arith.negf %355 : vector<8x128xf32>
    %357 = math.exp %356 : vector<8x128xf32>
    %cst_116 = arith.constant 1.000000e+00 : f32
    %358 = vector.broadcast %cst_116 : f32 to vector<8x128xf32>
    %359 = arith.addf %358, %357 : vector<8x128xf32>
    %360 = arith.divf %358, %359 : vector<8x128xf32>
    %361 = arith.mulf %352, %299 : vector<8x128xf32>
    %362 = arith.mulf %346, %354 : vector<8x128xf32>
    %363 = arith.addf %361, %362 : vector<8x128xf32>
    %364 = math.tanh %363 : vector<8x128xf32>
    %365 = arith.mulf %360, %364 : vector<8x128xf32>
    %366 = arith.truncf %365 : vector<8x128xf32> to vector<8x128xbf16>
    %c0_117 = arith.constant 0 : index
    %c128_118 = arith.constant 128 : index
    %367 = vector.load %arg12[%c0_117, %c128_118] : memref<8x256xbf16, #tpu.memory_space<vmem>>, vector<8x128xbf16>
    tpu.vector_store %arg12[%c0_117, %c128_118], %366 {strides = array<i32>} : memref<8x256xbf16, #tpu.memory_space<vmem>>, vector<8x128xbf16>,
    %c0_119 = arith.constant 0 : index
    %c0_120 = arith.constant 0 : index
    %368 = vector.load %arg12[%c0_119, %c0_120] : memref<8x256xbf16, #tpu.memory_space<vmem>>, vector<8x256xbf16>
    %c48 = arith.constant 48 : index
    %c0_121 = arith.constant 0 : index
    %369 = vector.load %arg11[%c48, %c0_121] : memref<64x512xbf16, #tpu.memory_space<vmem>>, vector<8x512xbf16>
    %370 = arith.extf %369 : vector<8x512xbf16> to vector<8x512xf32>
    %371 = vector.extract_strided_slice %368 {offsets = [0, 0], sizes = [8, 128], strides = [1, 1]} : vector<8x256xbf16> to vector<8x128xbf16>
    %c0_122 = arith.constant 0 : index
    %c0_123 = arith.constant 0 : index
    %372 = vector.load %arg2[%c0_122, %c0_123] : memref<128x512xbf16, #tpu.memory_space<vmem>>, vector<128x512xbf16>
    %cst_124 = arith.constant dense<0.000000e+00> : vector<8x512xf32>
    %373 = tpu.matmul %371, %372, %cst_124 {dimension_numbers = #tpu.dot_dimension_numbers<[1], [0], [0], [1], [0, 0, 1, 1], [], []>} : vector<8x128xbf16>, vector<128x512xbf16>, vector<8x512xf32> -> vector<8x512xf32>
    %374 = arith.addf %370, %373 : vector<8x512xf32>
    %c0_125 = arith.constant 0 : index
    %c0_126 = arith.constant 0 : index
    %375 = vector.load %arg4[%c0_125, %c0_126] : memref<256x512xbf16, #tpu.memory_space<vmem>>, vector<256x512xbf16>
    %cst_127 = arith.constant dense<0.000000e+00> : vector<8x512xf32>
    %376 = tpu.matmul %368, %375, %cst_127 {dimension_numbers = #tpu.dot_dimension_numbers<[1], [0], [0], [1], [0, 0, 1, 1], [], []>} : vector<8x256xbf16>, vector<256x512xbf16>, vector<8x512xf32> -> vector<8x512xf32>
    %377 = arith.addf %376, %10 : vector<8x512xf32>
    %378 = vector.extract_strided_slice %374 {offsets = [0, 0], sizes = [8, 128], strides = [1, 1]} : vector<8x512xf32> to vector<8x128xf32>
    %379 = arith.negf %378 : vector<8x128xf32>
    %380 = math.exp %379 : vector<8x128xf32>
    %cst_128 = arith.constant 1.000000e+00 : f32
    %381 = vector.broadcast %cst_128 : f32 to vector<8x128xf32>
    %382 = arith.addf %381, %380 : vector<8x128xf32>
    %383 = arith.divf %381, %382 : vector<8x128xf32>
    %384 = vector.extract_strided_slice %374 {offsets = [0, 128], sizes = [8, 128], strides = [1, 1]} : vector<8x512xf32> to vector<8x128xf32>
    %385 = arith.negf %384 : vector<8x128xf32>
    %386 = math.exp %385 : vector<8x128xf32>
    %cst_129 = arith.constant 1.000000e+00 : f32
    %387 = vector.broadcast %cst_129 : f32 to vector<8x128xf32>
    %388 = arith.addf %387, %386 : vector<8x128xf32>
    %389 = arith.divf %387, %388 : vector<8x128xf32>
    %390 = vector.extract_strided_slice %374 {offsets = [0, 256], sizes = [8, 128], strides = [1, 1]} : vector<8x512xf32> to vector<8x128xf32>
    %391 = math.tanh %390 : vector<8x128xf32>
    %392 = vector.extract_strided_slice %374 {offsets = [0, 384], sizes = [8, 128], strides = [1, 1]} : vector<8x512xf32> to vector<8x128xf32>
    %393 = arith.negf %392 : vector<8x128xf32>
    %394 = math.exp %393 : vector<8x128xf32>
    %cst_130 = arith.constant 1.000000e+00 : f32
    %395 = vector.broadcast %cst_130 : f32 to vector<8x128xf32>
    %396 = arith.addf %395, %394 : vector<8x128xf32>
    %397 = arith.divf %395, %396 : vector<8x128xf32>
    %398 = arith.mulf %389, %336 : vector<8x128xf32>
    %399 = arith.mulf %383, %391 : vector<8x128xf32>
    %400 = arith.addf %398, %399 : vector<8x128xf32>
    %401 = math.tanh %400 : vector<8x128xf32>
    %402 = arith.mulf %397, %401 : vector<8x128xf32>
    %403 = arith.truncf %402 : vector<8x128xf32> to vector<8x128xbf16>
    %c0_131 = arith.constant 0 : index
    %c0_132 = arith.constant 0 : index
    %404 = vector.load %arg12[%c0_131, %c0_132] : memref<8x256xbf16, #tpu.memory_space<vmem>>, vector<8x128xbf16>
    tpu.vector_store %arg12[%c0_131, %c0_132], %403 {strides = array<i32>} : memref<8x256xbf16, #tpu.memory_space<vmem>>, vector<8x128xbf16>,
    %405 = vector.extract_strided_slice %377 {offsets = [0, 0], sizes = [8, 128], strides = [1, 1]} : vector<8x512xf32> to vector<8x128xf32>
    %406 = arith.negf %405 : vector<8x128xf32>
    %407 = math.exp %406 : vector<8x128xf32>
    %cst_133 = arith.constant 1.000000e+00 : f32
    %408 = vector.broadcast %cst_133 : f32 to vector<8x128xf32>
    %409 = arith.addf %408, %407 : vector<8x128xf32>
    %410 = arith.divf %408, %409 : vector<8x128xf32>
    %411 = vector.extract_strided_slice %377 {offsets = [0, 128], sizes = [8, 128], strides = [1, 1]} : vector<8x512xf32> to vector<8x128xf32>
    %412 = arith.negf %411 : vector<8x128xf32>
    %413 = math.exp %412 : vector<8x128xf32>
    %cst_134 = arith.constant 1.000000e+00 : f32
    %414 = vector.broadcast %cst_134 : f32 to vector<8x128xf32>
    %415 = arith.addf %414, %413 : vector<8x128xf32>
    %416 = arith.divf %414, %415 : vector<8x128xf32>
    %417 = vector.extract_strided_slice %377 {offsets = [0, 256], sizes = [8, 128], strides = [1, 1]} : vector<8x512xf32> to vector<8x128xf32>
    %418 = math.tanh %417 : vector<8x128xf32>
    %419 = vector.extract_strided_slice %377 {offsets = [0, 384], sizes = [8, 128], strides = [1, 1]} : vector<8x512xf32> to vector<8x128xf32>
    %420 = arith.negf %419 : vector<8x128xf32>
    %421 = math.exp %420 : vector<8x128xf32>
    %cst_135 = arith.constant 1.000000e+00 : f32
    %422 = vector.broadcast %cst_135 : f32 to vector<8x128xf32>
    %423 = arith.addf %422, %421 : vector<8x128xf32>
    %424 = arith.divf %422, %423 : vector<8x128xf32>
    %425 = arith.mulf %416, %363 : vector<8x128xf32>
    %426 = arith.mulf %410, %418 : vector<8x128xf32>
    %427 = arith.addf %425, %426 : vector<8x128xf32>
    %428 = math.tanh %427 : vector<8x128xf32>
    %429 = arith.mulf %424, %428 : vector<8x128xf32>
    %430 = arith.truncf %429 : vector<8x128xf32> to vector<8x128xbf16>
    %c0_136 = arith.constant 0 : index
    %c128_137 = arith.constant 128 : index
    %431 = vector.load %arg12[%c0_136, %c128_137] : memref<8x256xbf16, #tpu.memory_space<vmem>>, vector<8x128xbf16>
    tpu.vector_store %arg12[%c0_136, %c128_137], %430 {strides = array<i32>} : memref<8x256xbf16, #tpu.memory_space<vmem>>, vector<8x128xbf16>,
    %c0_138 = arith.constant 0 : index
    %c0_139 = arith.constant 0 : index
    %432 = vector.load %arg12[%c0_138, %c0_139] : memref<8x256xbf16, #tpu.memory_space<vmem>>, vector<8x256xbf16>
    %c56 = arith.constant 56 : index
    %c0_140 = arith.constant 0 : index
    %433 = vector.load %arg11[%c56, %c0_140] : memref<64x512xbf16, #tpu.memory_space<vmem>>, vector<8x512xbf16>
    %434 = arith.extf %433 : vector<8x512xbf16> to vector<8x512xf32>
    %435 = vector.extract_strided_slice %432 {offsets = [0, 0], sizes = [8, 128], strides = [1, 1]} : vector<8x256xbf16> to vector<8x128xbf16>
    %c0_141 = arith.constant 0 : index
    %c0_142 = arith.constant 0 : index
    %436 = vector.load %arg2[%c0_141, %c0_142] : memref<128x512xbf16, #tpu.memory_space<vmem>>, vector<128x512xbf16>
    %cst_143 = arith.constant dense<0.000000e+00> : vector<8x512xf32>
    %437 = tpu.matmul %435, %436, %cst_143 {dimension_numbers = #tpu.dot_dimension_numbers<[1], [0], [0], [1], [0, 0, 1, 1], [], []>} : vector<8x128xbf16>, vector<128x512xbf16>, vector<8x512xf32> -> vector<8x512xf32>
    %438 = arith.addf %434, %437 : vector<8x512xf32>
    %c0_144 = arith.constant 0 : index
    %c0_145 = arith.constant 0 : index
    %439 = vector.load %arg4[%c0_144, %c0_145] : memref<256x512xbf16, #tpu.memory_space<vmem>>, vector<256x512xbf16>
    %cst_146 = arith.constant dense<0.000000e+00> : vector<8x512xf32>
    %440 = tpu.matmul %432, %439, %cst_146 {dimension_numbers = #tpu.dot_dimension_numbers<[1], [0], [0], [1], [0, 0, 1, 1], [], []>} : vector<8x256xbf16>, vector<256x512xbf16>, vector<8x512xf32> -> vector<8x512xf32>
    %441 = arith.addf %440, %10 : vector<8x512xf32>
    %442 = vector.extract_strided_slice %438 {offsets = [0, 0], sizes = [8, 128], strides = [1, 1]} : vector<8x512xf32> to vector<8x128xf32>
    %443 = arith.negf %442 : vector<8x128xf32>
    %444 = math.exp %443 : vector<8x128xf32>
    %cst_147 = arith.constant 1.000000e+00 : f32
    %445 = vector.broadcast %cst_147 : f32 to vector<8x128xf32>
    %446 = arith.addf %445, %444 : vector<8x128xf32>
    %447 = arith.divf %445, %446 : vector<8x128xf32>
    %448 = vector.extract_strided_slice %438 {offsets = [0, 128], sizes = [8, 128], strides = [1, 1]} : vector<8x512xf32> to vector<8x128xf32>
    %449 = arith.negf %448 : vector<8x128xf32>
    %450 = math.exp %449 : vector<8x128xf32>
    %cst_148 = arith.constant 1.000000e+00 : f32
    %451 = vector.broadcast %cst_148 : f32 to vector<8x128xf32>
    %452 = arith.addf %451, %450 : vector<8x128xf32>
    %453 = arith.divf %451, %452 : vector<8x128xf32>
    %454 = vector.extract_strided_slice %438 {offsets = [0, 256], sizes = [8, 128], strides = [1, 1]} : vector<8x512xf32> to vector<8x128xf32>
    %455 = math.tanh %454 : vector<8x128xf32>
    %456 = vector.extract_strided_slice %438 {offsets = [0, 384], sizes = [8, 128], strides = [1, 1]} : vector<8x512xf32> to vector<8x128xf32>
    %457 = arith.negf %456 : vector<8x128xf32>
    %458 = math.exp %457 : vector<8x128xf32>
    %cst_149 = arith.constant 1.000000e+00 : f32
    %459 = vector.broadcast %cst_149 : f32 to vector<8x128xf32>
    %460 = arith.addf %459, %458 : vector<8x128xf32>
    %461 = arith.divf %459, %460 : vector<8x128xf32>
    %462 = arith.mulf %453, %400 : vector<8x128xf32>
    %463 = arith.mulf %447, %455 : vector<8x128xf32>
    %464 = arith.addf %462, %463 : vector<8x128xf32>
    %465 = math.tanh %464 : vector<8x128xf32>
    %466 = arith.mulf %461, %465 : vector<8x128xf32>
    %467 = arith.truncf %466 : vector<8x128xf32> to vector<8x128xbf16>
    %c0_150 = arith.constant 0 : index
    %c0_151 = arith.constant 0 : index
    %468 = vector.load %arg12[%c0_150, %c0_151] : memref<8x256xbf16, #tpu.memory_space<vmem>>, vector<8x128xbf16>
    tpu.vector_store %arg12[%c0_150, %c0_151], %467 {strides = array<i32>} : memref<8x256xbf16, #tpu.memory_space<vmem>>, vector<8x128xbf16>,
    %469 = vector.extract_strided_slice %441 {offsets = [0, 0], sizes = [8, 128], strides = [1, 1]} : vector<8x512xf32> to vector<8x128xf32>
    %470 = arith.negf %469 : vector<8x128xf32>
    %471 = math.exp %470 : vector<8x128xf32>
    %cst_152 = arith.constant 1.000000e+00 : f32
    %472 = vector.broadcast %cst_152 : f32 to vector<8x128xf32>
    %473 = arith.addf %472, %471 : vector<8x128xf32>
    %474 = arith.divf %472, %473 : vector<8x128xf32>
    %475 = vector.extract_strided_slice %441 {offsets = [0, 128], sizes = [8, 128], strides = [1, 1]} : vector<8x512xf32> to vector<8x128xf32>
    %476 = arith.negf %475 : vector<8x128xf32>
    %477 = math.exp %476 : vector<8x128xf32>
    %cst_153 = arith.constant 1.000000e+00 : f32
    %478 = vector.broadcast %cst_153 : f32 to vector<8x128xf32>
    %479 = arith.addf %478, %477 : vector<8x128xf32>
    %480 = arith.divf %478, %479 : vector<8x128xf32>
    %481 = vector.extract_strided_slice %441 {offsets = [0, 256], sizes = [8, 128], strides = [1, 1]} : vector<8x512xf32> to vector<8x128xf32>
    %482 = math.tanh %481 : vector<8x128xf32>
    %483 = vector.extract_strided_slice %441 {offsets = [0, 384], sizes = [8, 128], strides = [1, 1]} : vector<8x512xf32> to vector<8x128xf32>
    %484 = arith.negf %483 : vector<8x128xf32>
    %485 = math.exp %484 : vector<8x128xf32>
    %cst_154 = arith.constant 1.000000e+00 : f32
    %486 = vector.broadcast %cst_154 : f32 to vector<8x128xf32>
    %487 = arith.addf %486, %485 : vector<8x128xf32>
    %488 = arith.divf %486, %487 : vector<8x128xf32>
    %489 = arith.mulf %480, %427 : vector<8x128xf32>
    %490 = arith.mulf %474, %482 : vector<8x128xf32>
    %491 = arith.addf %489, %490 : vector<8x128xf32>
    %492 = math.tanh %491 : vector<8x128xf32>
    %493 = arith.mulf %488, %492 : vector<8x128xf32>
    %494 = arith.truncf %493 : vector<8x128xf32> to vector<8x128xbf16>
    %c0_155 = arith.constant 0 : index
    %c128_156 = arith.constant 128 : index
    %495 = vector.load %arg12[%c0_155, %c128_156] : memref<8x256xbf16, #tpu.memory_space<vmem>>, vector<8x128xbf16>
    tpu.vector_store %arg12[%c0_155, %c128_156], %494 {strides = array<i32>} : memref<8x256xbf16, #tpu.memory_space<vmem>>, vector<8x128xbf16>,
    %c0_157 = arith.constant 0 : index
    %c0_158 = arith.constant 0 : index
    %496 = vector.load %arg12[%c0_157, %c0_158] : memref<8x256xbf16, #tpu.memory_space<vmem>>, vector<8x256xbf16>
    %c0_159 = arith.constant 0 : index
    %c0_160 = arith.constant 0 : index
    %497 = vector.load %arg4[%c0_159, %c0_160] : memref<256x512xbf16, #tpu.memory_space<vmem>>, vector<256x512xbf16>
    %cst_161 = arith.constant dense<0.000000e+00> : vector<8x512xf32>
    %498 = tpu.matmul %496, %497, %cst_161 {dimension_numbers = #tpu.dot_dimension_numbers<[1], [0], [0], [1], [0, 0, 1, 1], [], []>} : vector<8x256xbf16>, vector<256x512xbf16>, vector<8x512xf32> -> vector<8x512xf32>
    %499 = arith.addf %498, %10 : vector<8x512xf32>
    %500 = vector.extract_strided_slice %499 {offsets = [0, 0], sizes = [8, 128], strides = [1, 1]} : vector<8x512xf32> to vector<8x128xf32>
    %501 = arith.negf %500 : vector<8x128xf32>
    %502 = math.exp %501 : vector<8x128xf32>
    %cst_162 = arith.constant 1.000000e+00 : f32
    %503 = vector.broadcast %cst_162 : f32 to vector<8x128xf32>
    %504 = arith.addf %503, %502 : vector<8x128xf32>
    %505 = arith.divf %503, %504 : vector<8x128xf32>
    %506 = vector.extract_strided_slice %499 {offsets = [0, 128], sizes = [8, 128], strides = [1, 1]} : vector<8x512xf32> to vector<8x128xf32>
    %507 = arith.negf %506 : vector<8x128xf32>
    %508 = math.exp %507 : vector<8x128xf32>
    %cst_163 = arith.constant 1.000000e+00 : f32
    %509 = vector.broadcast %cst_163 : f32 to vector<8x128xf32>
    %510 = arith.addf %509, %508 : vector<8x128xf32>
    %511 = arith.divf %509, %510 : vector<8x128xf32>
    %512 = vector.extract_strided_slice %499 {offsets = [0, 256], sizes = [8, 128], strides = [1, 1]} : vector<8x512xf32> to vector<8x128xf32>
    %513 = math.tanh %512 : vector<8x128xf32>
    %514 = vector.extract_strided_slice %499 {offsets = [0, 384], sizes = [8, 128], strides = [1, 1]} : vector<8x512xf32> to vector<8x128xf32>
    %515 = arith.negf %514 : vector<8x128xf32>
    %516 = math.exp %515 : vector<8x128xf32>
    %cst_164 = arith.constant 1.000000e+00 : f32
    %517 = vector.broadcast %cst_164 : f32 to vector<8x128xf32>
    %518 = arith.addf %517, %516 : vector<8x128xf32>
    %519 = arith.divf %517, %518 : vector<8x128xf32>
    %520 = arith.mulf %511, %491 : vector<8x128xf32>
    %521 = arith.mulf %505, %513 : vector<8x128xf32>
    %522 = arith.addf %520, %521 : vector<8x128xf32>
    %523 = math.tanh %522 : vector<8x128xf32>
    %524 = arith.mulf %519, %523 : vector<8x128xf32>
    %525 = arith.truncf %524 : vector<8x128xf32> to vector<8x128xbf16>
    %c0_165 = arith.constant 0 : index
    %c128_166 = arith.constant 128 : index
    %526 = vector.load %arg12[%c0_165, %c128_166] : memref<8x256xbf16, #tpu.memory_space<vmem>>, vector<8x128xbf16>
    tpu.vector_store %arg12[%c0_165, %c128_166], %525 {strides = array<i32>} : memref<8x256xbf16, #tpu.memory_space<vmem>>, vector<8x128xbf16>,
    %c0_167 = arith.constant 0 : index
    %c0_168 = arith.constant 0 : index
    %c0_169 = arith.constant 0 : index
    %527 = vector.load %arg9[%c0_167, %c0_168, %c0_169] : memref<2x8x128xf32, #tpu.memory_space<vmem>>, vector<1x8x128xf32>
    %528 = vector.shape_cast %527 : vector<1x8x128xf32> to vector<8x128xf32>
    %529 = vector.shape_cast %466 : vector<8x128xf32> to vector<1x8x128xf32>
    tpu.vector_store %arg9[%c0_167, %c0_168, %c0_169], %529 {strides = array<i32>} : memref<2x8x128xf32, #tpu.memory_space<vmem>>, vector<1x8x128xf32>,
    %c1 = arith.constant 1 : index
    %c0_170 = arith.constant 0 : index
    %c0_171 = arith.constant 0 : index
    %530 = vector.load %arg9[%c1, %c0_170, %c0_171] : memref<2x8x128xf32, #tpu.memory_space<vmem>>, vector<1x8x128xf32>
    %531 = vector.shape_cast %530 : vector<1x8x128xf32> to vector<8x128xf32>
    %532 = vector.shape_cast %524 : vector<8x128xf32> to vector<1x8x128xf32>
    tpu.vector_store %arg9[%c1, %c0_170, %c0_171], %532 {strides = array<i32>} : memref<2x8x128xf32, #tpu.memory_space<vmem>>, vector<1x8x128xf32>,
    %c0_172 = arith.constant 0 : index
    %c0_173 = arith.constant 0 : index
    %c0_174 = arith.constant 0 : index
    %533 = vector.load %arg10[%c0_172, %c0_173, %c0_174] : memref<2x8x128xf32, #tpu.memory_space<vmem>>, vector<1x8x128xf32>
    %534 = vector.shape_cast %533 : vector<1x8x128xf32> to vector<8x128xf32>
    %535 = vector.shape_cast %464 : vector<8x128xf32> to vector<1x8x128xf32>
    tpu.vector_store %arg10[%c0_172, %c0_173, %c0_174], %535 {strides = array<i32>} : memref<2x8x128xf32, #tpu.memory_space<vmem>>, vector<1x8x128xf32>,
    %c1_175 = arith.constant 1 : index
    %c0_176 = arith.constant 0 : index
    %c0_177 = arith.constant 0 : index
    %536 = vector.load %arg10[%c1_175, %c0_176, %c0_177] : memref<2x8x128xf32, #tpu.memory_space<vmem>>, vector<1x8x128xf32>
    %537 = vector.shape_cast %536 : vector<1x8x128xf32> to vector<8x128xf32>
    %538 = vector.shape_cast %522 : vector<8x128xf32> to vector<1x8x128xf32>
    tpu.vector_store %arg10[%c1_175, %c0_176, %c0_177], %538 {strides = array<i32>} : memref<2x8x128xf32, #tpu.memory_space<vmem>>, vector<1x8x128xf32>,
    %c0_178 = arith.constant 0 : index
    %c128_179 = arith.constant 128 : index
    %539 = vector.load %arg12[%c0_178, %c128_179] : memref<8x256xbf16, #tpu.memory_space<vmem>>, vector<8x128xbf16>
    %c0_180 = arith.constant 0 : index
    %c0_181 = arith.constant 0 : index
    %540 = vector.load %arg6[%c0_180, %c0_181] : memref<128x128xbf16, #tpu.memory_space<vmem>>, vector<128x128xbf16>
    %cst_182 = arith.constant dense<0.000000e+00> : vector<8x128xf32>
    %541 = tpu.matmul %539, %540, %cst_182 {dimension_numbers = #tpu.dot_dimension_numbers<[1], [0], [0], [1], [0, 0, 1, 1], [], []>} : vector<8x128xbf16>, vector<128x128xbf16>, vector<8x128xf32> -> vector<8x128xf32>
    %c0_183 = arith.constant 0 : index
    %c0_184 = arith.constant 0 : index
    %542 = vector.load %arg7[%c0_183, %c0_184] : memref<1x128xf32, #tpu.memory_space<vmem>>, vector<1x128xf32>
    %543 = vector.broadcast %542 : vector<1x128xf32> to vector<8x128xf32>
    %544 = arith.addf %541, %543 : vector<8x128xf32>
    %545 = tpu.iota {dimensions = array<i32: 1>} : vector<8x128xi32>
    %c2_i32 = arith.constant 2 : i32
    %546 = vector.broadcast %c2_i32 : i32 to vector<8x128xi32>
    %547 = arith.cmpi slt, %545, %546 : vector<8x128xi32>
    %cst_185 = arith.constant -1.000000e+30 : f32
    %548 = vector.broadcast %cst_185 : f32 to vector<8x128xf32>
    %549 = arith.select %547, %544, %548 : vector<8x128xi1>, vector<8x128xf32>
    %cst_186 = arith.constant dense<0xFF800000> : vector<8xf32>
    %550 = vector.multi_reduction <maximumf>, %549, %cst_186 [1] : vector<8x128xf32> to vector<8xf32>
    %551 = vector.shape_cast %550 : vector<8xf32> to vector<8x1xf32>
    %552 = vector.broadcast %551 : vector<8x1xf32> to vector<8x128xf32>
    %553 = arith.subf %549, %552 : vector<8x128xf32>
    %554 = math.exp %553 : vector<8x128xf32>
    %cst_187 = arith.constant dense<0.000000e+00> : vector<8xf32>
    %555 = vector.multi_reduction <add>, %554, %cst_187 [1] : vector<8x128xf32> to vector<8xf32>
    %556 = vector.shape_cast %555 : vector<8xf32> to vector<8x1xf32>
    %557 = math.log %556 : vector<8x1xf32>
    %558 = vector.broadcast %557 : vector<8x1xf32> to vector<8x128xf32>
    %559 = arith.subf %553, %558 : vector<8x128xf32>
    %c0_188 = arith.constant 0 : index
    %c0_189 = arith.constant 0 : index
    %560 = vector.load %arg8[%c0_188, %c0_189] : memref<8x128xf32, #tpu.memory_space<vmem>>, vector<8x128xf32>
    tpu.vector_store %arg8[%c0_188, %c0_189], %559 {strides = array<i32>} : memref<8x128xf32, #tpu.memory_space<vmem>>, vector<8x128xf32>,
    return
  }
}

</mosaic_0001>

<bundles_post_ra>
// kernel: tpu_custom_call.1
= control target key start
LH: loop header
LB: loop body
LE: loop exit
PB: predicated region body
PF: predicated region fallthrough
CT: control target
= control target key end

     0   :  { %16 = vsyncpa [#allocation5], 0  ;;  %s11212_s0 = inlined_call_operand.hbm [shape: bf16[64,128], index: 0, kind: input, shape index: {}]   ;;  %s11213_s1 = inlined_call_operand.hbm [shape: bf16[128,512], index: 1, kind: input, shape index: {}]   ;;  %s11214_s2 = inlined_call_operand.hbm [shape: bf16[128,512], index: 2, kind: input, shape index: {}]   ;;  %s11215_s3 = inlined_call_operand.vmem [shape: f32[1,512], index: 3, kind: input, shape index: {}]   ;;  %s11216_s4 = inlined_call_operand.hbm [shape: bf16[256,512], index: 4, kind: input, shape index: {}]   ;;  %s11217_s5 = inlined_call_operand.vmem [shape: f32[1,512], index: 5, kind: input, shape index: {}]   ;;  %s11218_s6 = inlined_call_operand.hbm [shape: bf16[128,128], index: 6, kind: input, shape index: {}]   ;;  %s11219_s7 = inlined_call_operand.vmem [shape: f32[1,128], index: 7, kind: input, shape index: {}]   ;;  %s11220_s8 = inlined_call_operand.hbm [shape: f32[8,128], index: 8, kind: output, shape index: {0}]   ;;  %s11221_s9 = inlined_call_operand.hbm [shape: f32[2,8,128], index: 9, kind: output, shape index: {1}]   ;;  %s11222_s10 = inlined_call_operand.hbm [shape: f32[2,8,128], index: 10, kind: output, shape index: {2}]  }
   0x1   :  { %17 = vsyncpa [#allocation8], 0 }
   0x2   :  { %18 = vsyncpa [#allocation11], 0 }
   0x3   :  { %19 = vsyncpa [#allocation6], 0 }
   0x4   :  { %20 = vsyncpa [#allocation15], 0  ;;  %s9297_s13 = smov [#allocation7]   ;;  %s9111_s17 = scalar_lea.hbm %s11213_s1, 4096 }
   0x5   :  { %s38_s14 = sshll.u32 %s9297_s13, 4  ;;  %p9112_p0 = scmp.ne.s32.totalorder %s11213_s1, %s9111_s17  ;;  %s39_s14 = int_to_ptr.vmem [resolvable:$true] %s38_s14 }
   0x6   :  { %p9115_p1 = scmp.lt.u32.totalorder %s9111_s17, %s11213_s1 }
   0x8   :  { %p9117_p2 = pnand %p9115_p1, %p9112_p0 }
   0xa   :  { %9120 = shalt.err (!%p9117_p2)
}
   0xb   :  { %s9121_s22 = scalar_lea.vmem %s39_s14, 4096  ;;  %p9126_p4 = scmp.lt.s32.totalorder %s39_s14, %s39_s14 }
   0xc   :  { %p9122_p3 = scmp.ne.s32.totalorder %s39_s14, %s9121_s22  ;;  %p9127_p5 = scmp.lt.s32.totalorder %s9121_s22, %s9121_s22 }
   0xe   :  { %p9128_p6 = por %p9127_p5, %p9126_p4 }
  0x10   :  { %p9129_p7 = pnand %p9128_p6, %p9122_p3 }
  0x12   :  { %9132 = shalt.err (!%p9129_p7)
}
  0x13   :  { %s9298_s23 = smov 256   ;;  %s9299_s24 = smov 16  }
  0x14   :  { %44 = dma.hbm_to_vmem [thread:$0]  %s11213_s1, 4096, %s39_s14, [#allocation8], %s9298_s23, %s9298_s23, %s9299_s24  }
  0x15   :  { %s9300_s27 = smov [#allocation10]   ;;  %s9301_s29 = smov [#allocation4]  }
  0x16   :  { %s64_s28 = sshll.u32 %s9300_s27, 4  ;;  %s26_s30 = sshll.u32 %s9301_s29, 4  ;;  %s65_s28 = int_to_ptr.vmem [resolvable:$true] %s64_s28  ;;  %s27_s30 = int_to_ptr.vmem [resolvable:$true] %s26_s30 }
  0x17   :  { %s9133_s13 = scalar_lea.hbm %s11216_s4, 8192 }
  0x18   :  { %p9134_p8 = scmp.ne.s32.totalorder %s11216_s4, %s9133_s13  ;;  %p9137_p9 = scmp.lt.u32.totalorder %s9133_s13, %s11216_s4 }
  0x1a   :  { %p9139_p10 = pnand %p9137_p9, %p9134_p8 }
  0x1c   :  { %9142 = shalt.err (!%p9139_p10)
}
  0x1d   :  { %s9143_s1 = scalar_lea.vmem %s65_s28, 8192  ;;  %p9148_p12 = scmp.lt.s32.totalorder %s65_s28, %s65_s28 }
  0x1e   :  { %p9144_p11 = scmp.ne.s32.totalorder %s65_s28, %s9143_s1  ;;  %p9149_p13 = scmp.lt.s32.totalorder %s9143_s1, %s9143_s1 }
  0x20   :  { %p9150_p0 = por %p9149_p13, %p9148_p12 }
  0x22   :  { %p9151_p1 = pnand %p9150_p0, %p9144_p11 }
  0x24   :  { %9154 = shalt.err (!%p9151_p1)
}
  0x25   :  { %70 = dma.hbm_to_vmem [thread:$0]  %s11216_s4, 8192, %s65_s28, [#allocation11], %s9298_s23, %s9298_s23, %s9299_s24  }
  0x26   :  { %s9155_s22 = scalar_lea.hbm %s11212_s0, 512 }
  0x27   :  { %p9156_p2 = scmp.ne.s32.totalorder %s11212_s0, %s9155_s22  ;;  %p9159_p3 = scmp.lt.u32.totalorder %s9155_s22, %s11212_s0 }
  0x29   :  { %p9161_p4 = pnand %p9159_p3, %p9156_p2 }
  0x2b   :  { %9164 = shalt.err (!%p9161_p4)
}
  0x2c   :  { %s9165_s11 = scalar_lea.vmem %s27_s30, 512  ;;  %p9170_p6 = scmp.lt.s32.totalorder %s27_s30, %s27_s30 }
  0x2d   :  { %p9166_p5 = scmp.ne.s32.totalorder %s27_s30, %s9165_s11  ;;  %p9171_p7 = scmp.lt.s32.totalorder %s9165_s11, %s9165_s11 }
  0x2f   :  { %p9172_p8 = por %p9171_p7, %p9170_p6 }
  0x31   :  { %p9173_p9 = pnand %p9172_p8, %p9166_p5 }
  0x33   :  { %9176 = shalt.err (!%p9173_p9)
}
  0x34   :  { %s9302_s4 = smov 64   ;;  %s9303_s28 = smov 4  }
  0x35   :  { %32 = dma.hbm_to_vmem [thread:$0]  %s11212_s0, 512, %s27_s30, [#allocation5], %s9302_s4, %s9302_s4, %s9303_s28  }
  0x36   :  { %s9304_s15 = smov [#allocation9]   ;;  %s9305_s17 = smov [#allocation12]  }
  0x37   :  { %s50_s16 = sshll.u32 %s9304_s15, 4  ;;  %s78_s18 = sshll.u32 %s9305_s17, 4  ;;  %s51_s16 = int_to_ptr.vmem [resolvable:$true] %s50_s16  ;;  %s79_s18 = int_to_ptr.vmem [resolvable:$true] %s78_s18 }
  0x38   :  { %s9177_s19 = scalar_lea.hbm %s11214_s2, 4096 }
  0x39   :  { %p9178_p10 = scmp.ne.s32.totalorder %s11214_s2, %s9177_s19  ;;  %p9181_p11 = scmp.lt.u32.totalorder %s9177_s19, %s11214_s2 }
  0x3b   :  { %p9183_p12 = pnand %p9181_p11, %p9178_p10 }
  0x3d   :  { %9186 = shalt.err (!%p9183_p12)
}
  0x3e   :  { %s9187_s0 = scalar_lea.vmem %s51_s16, 4096  ;;  %p9192_p0 = scmp.lt.s32.totalorder %s51_s16, %s51_s16 }
  0x3f   :  { %p9188_p13 = scmp.ne.s32.totalorder %s51_s16, %s9187_s0  ;;  %p9193_p1 = scmp.lt.s32.totalorder %s9187_s0, %s9187_s0 }
  0x41   :  { %p9194_p2 = por %p9193_p1, %p9192_p0 }
  0x43   :  { %p9195_p3 = pnand %p9194_p2, %p9188_p13 }
  0x45   :  { %9198 = shalt.err (!%p9195_p3)
}
  0x46   :  { %56 = dma.hbm_to_vmem [thread:$0]  %s11214_s2, 4096, %s51_s16, [#allocation8], %s9298_s23, %s9298_s23, %s9299_s24  }
  0x47   :  { %s9199_s11 = scalar_lea.hbm %s11218_s6, 1024 }
  0x48   :  { %p9200_p4 = scmp.ne.s32.totalorder %s11218_s6, %s9199_s11  ;;  %p9203_p5 = scmp.lt.u32.totalorder %s9199_s11, %s11218_s6 }
  0x4a   :  { %p9205_p6 = pnand %p9203_p5, %p9200_p4 }
  0x4c   :  { %9208 = shalt.err (!%p9205_p6)
}
  0x4d   :  { %s9209_s1 = scalar_lea.vmem %s79_s18, 1024  ;;  %p9214_p8 = scmp.lt.s32.totalorder %s79_s18, %s79_s18 }
  0x4e   :  { %p9210_p7 = scmp.ne.s32.totalorder %s79_s18, %s9209_s1  ;;  %p9215_p9 = scmp.lt.s32.totalorder %s9209_s1, %s9209_s1 }
  0x50   :  { %p9216_p10 = por %p9215_p9, %p9214_p8 }
  0x52   :  { %p9217_p11 = pnand %p9216_p10, %p9210_p7 }
  0x54   :  { %9220 = shalt.err (!%p9217_p11)
}
  0x55   :  { %84 = dma.hbm_to_vmem [thread:$0]  %s11218_s6, 1024, %s79_s18, [#allocation11], %s9302_s4, %s9302_s4, %s9303_s28  }
  0x56   :  { %9287 = dma.done.wait [#allocation5], 512  }
  0x57   :  { %9288 = vsyncadd [#allocation5], 4294966784 }
  0x58   :  { %9289 = dma.done.wait [#allocation8], 8192  }
  0x59   :  { %9290 = vsyncadd [#allocation8], 4294959104 }
  0x5a   :  { %9291 = dma.done.wait [#allocation11], 9216  }
  0x5b   :  { %9292 = vsyncadd [#allocation11], 4294958080  ;;  %v11228_v0 = vmov 0   ;;  %v8199_v1 = vld [vmem:[#allocation7 + $0x4] ss:$16 sps:$4 sm:$0xff]   ;;  %v8260_v44 = vld [vmem:[#allocation4 + $0x8] sm:$0xff]  }
  0x5c   :  { %381 = vmatprep.mubr.bf16.mxu0 %v11228_v0  ;;  %549 = vst [vmem:[#allocation3] sm:$0xff] %v11228_v0  ;;  %454 = vmatprep.mubr.bf16.mxu1 %v11228_v0  ;;  %v8201_v2 = vld [vmem:[#allocation7 + $0xc] ss:$16 sps:$4 sm:$0xff]   ;;  %v8203_v3 = vld [vmem:[#allocation7] ss:$16 sps:$4 sm:$0xff]   ;;  %vm9308_vm0 = vmmov 0  }
  0x5d   :  { %349 = vmatprep.subr.bf16.mxu0 %v8199_v1  ;;  %v8204_v4 = vld [vmem:[#allocation7 + $0x8] ss:$16 sps:$4 sm:$0xff]   ;;  %422 = vmatprep.subr.bf16.mxu1 %v8201_v2  ;;  %v8205_v5 = vld [vmem:[#allocation7 + $0x24] ss:$16 sps:$4 sm:$0xff]   ;;  %v8207_v6 = vld [vmem:[#allocation7 + $0x2c] ss:$16 sps:$4 sm:$0xff]  }
  0x5e   :  { %350 = vmatpush1.bf16.msra.mxu0 %v8203_v3  ;;  %423 = vmatpush1.bf16.msra.mxu1 %v8204_v4  ;;  %v8209_v7 = vld [vmem:[#allocation7 + $0x20] ss:$16 sps:$4 sm:$0xff]   ;;  %v8210_v8 = vld [vmem:[#allocation7 + $0x28] ss:$16 sps:$4 sm:$0xff]   ;;  %v8211_v9 = vld [vmem:[#allocation7 + $0x44] ss:$16 sps:$4 sm:$0xff]  }
  0x5f   :  { %351 = vmatprep.subr.bf16.mxu0 %v8205_v5  ;;  %424 = vmatprep.subr.bf16.mxu1 %v8207_v6  ;;  %v8213_v10 = vld [vmem:[#allocation7 + $0x4c] ss:$16 sps:$4 sm:$0xff]   ;;  %v8215_v11 = vld [vmem:[#allocation7 + $0x40] ss:$16 sps:$4 sm:$0xff]   ;;  %v8216_v12 = vld [vmem:[#allocation7 + $0x48] ss:$16 sps:$4 sm:$0xff]  }
  0x60   :  { %v8217_v13 = vld [vmem:[#allocation7 + $0x64] ss:$16 sps:$4 sm:$0xff]   ;;  %v8219_v14 = vld [vmem:[#allocation7 + $0x6c] ss:$16 sps:$4 sm:$0xff]   ;;  %v8221_v15 = vld [vmem:[#allocation7 + $0x60] ss:$16 sps:$4 sm:$0xff]  }
  0x61   :  { %v8222_v16 = vld [vmem:[#allocation7 + $0x68] ss:$16 sps:$4 sm:$0xff]   ;;  %v8223_v17 = vld [vmem:[#allocation7 + $0x84] ss:$16 sps:$4 sm:$0xff]   ;;  %v8225_v18 = vld [vmem:[#allocation7 + $0x8c] ss:$16 sps:$4 sm:$0xff]  }
  0x62   :  { %352 = vmatpush1.bf16.msra.mxu0 %v8209_v7  ;;  %425 = vmatpush1.bf16.msra.mxu1 %v8210_v8  ;;  %v8227_v19 = vld [vmem:[#allocation7 + $0x80] ss:$16 sps:$4 sm:$0xff]   ;;  %v8228_v20 = vld [vmem:[#allocation7 + $0x88] ss:$16 sps:$4 sm:$0xff]   ;;  %v8229_v21 = vld [vmem:[#allocation7 + $0xa4] ss:$16 sps:$4 sm:$0xff]   ;;  %v11223_v8 = vlaneseq }
  0x63   :  { %353 = vmatprep.subr.bf16.mxu0 %v8211_v9  ;;  %426 = vmatprep.subr.bf16.mxu1 %v8213_v10  ;;  %v8231_v22 = vld [vmem:[#allocation7 + $0xac] ss:$16 sps:$4 sm:$0xff]   ;;  %v8233_v23 = vld [vmem:[#allocation7 + $0xa0] ss:$16 sps:$4 sm:$0xff]   ;;  %v8234_v24 = vld [vmem:[#allocation7 + $0xa8] ss:$16 sps:$4 sm:$0xff]  }
  0x64   :  { %v8235_v25 = vld [vmem:[#allocation7 + $0xc4] ss:$16 sps:$4 sm:$0xff]   ;;  %v8237_v26 = vld [vmem:[#allocation7 + $0xcc] ss:$16 sps:$4 sm:$0xff]   ;;  %v8239_v27 = vld [vmem:[#allocation7 + $0xc0] ss:$16 sps:$4 sm:$0xff]  }
  0x65   :  { %v8240_v28 = vld [vmem:[#allocation7 + $0xc8] ss:$16 sps:$4 sm:$0xff]   ;;  %v8241_v29 = vld [vmem:[#allocation7 + $0xe4] ss:$16 sps:$4 sm:$0xff]   ;;  %v8243_v30 = vld [vmem:[#allocation7 + $0xec] ss:$16 sps:$4 sm:$0xff]  }
  0x66   :  { %354 = vmatpush1.bf16.msra.mxu0 %v8215_v11  ;;  %427 = vmatpush1.bf16.msra.mxu1 %v8216_v12  ;;  %v8245_v31 = vld [vmem:[#allocation7 + $0xe0] ss:$16 sps:$4 sm:$0xff]   ;;  %v8246_v32 = vld [vmem:[#allocation7 + $0xe8] ss:$16 sps:$4 sm:$0xff]   ;;  %v9447_v33 = vld [vmem:[#allocation9 + $0x4] ss:$16 sps:$4 sm:$0xff]  }
  0x67   :  { %355 = vmatprep.subr.bf16.mxu0 %v8217_v13  ;;  %428 = vmatprep.subr.bf16.mxu1 %v8219_v14  ;;  %v9449_v34 = vld [vmem:[#allocation9 + $0xc] ss:$16 sps:$4 sm:$0xff]   ;;  %v8247_v35 = vld [vmem:[#allocation4] sm:$0xff]   ;;  %v9453_v37 = vld [vmem:[#allocation9 + $0x8] ss:$16 sps:$4 sm:$0xff]   ;;  %v9538_v9 = vshrl.u32 %v11223_v8, 7 }
  0x68   :  { %v9451_v36 = vld [vmem:[#allocation9] ss:$16 sps:$4 sm:$0xff]   ;;  %v9457_v38 = vld [vmem:[#allocation9 + $0x24] ss:$16 sps:$4 sm:$0xff]   ;;  %v9459_v39 = vld [vmem:[#allocation9 + $0x2c] ss:$16 sps:$4 sm:$0xff]  }
  0x69   :  { %v9461_v40 = vld [vmem:[#allocation9 + $0x20] ss:$16 sps:$4 sm:$0xff]   ;;  %v9465_v41 = vld [vmem:[#allocation9 + $0x28] ss:$16 sps:$4 sm:$0xff]   ;;  %v9469_v42 = vld [vmem:[#allocation9 + $0x44] ss:$16 sps:$4 sm:$0xff]  }
  0x6a   :  { %356 = vmatpush1.bf16.msra.mxu0 %v8221_v15  ;;  %429 = vmatpush1.bf16.msra.mxu1 %v8222_v16  ;;  %v9471_v43 = vld [vmem:[#allocation9 + $0x4c] ss:$16 sps:$4 sm:$0xff]   ;;  %v9475_v45 = vld [vmem:[#allocation9 + $0x40] ss:$16 sps:$4 sm:$0xff]   ;;  %v9477_v46 = vld [vmem:[#allocation9 + $0x48] ss:$16 sps:$4 sm:$0xff]  }
  0x6b   :  { %357 = vmatprep.subr.bf16.mxu0 %v8223_v17  ;;  %430 = vmatprep.subr.bf16.mxu1 %v8225_v18  ;;  %v9481_v47 = vld [vmem:[#allocation9 + $0x64] ss:$16 sps:$4 sm:$0xff]   ;;  %v9485_v48 = vld [vmem:[#allocation9 + $0x6c] ss:$16 sps:$4 sm:$0xff]   ;;  %v9487_v49 = vld [vmem:[#allocation9 + $0x60] ss:$16 sps:$4 sm:$0xff]  }
  0x6c   :  { %v9489_v50 = vld [vmem:[#allocation9 + $0x68] ss:$16 sps:$4 sm:$0xff]   ;;  %v9493_v51 = vld [vmem:[#allocation9 + $0x84] ss:$16 sps:$4 sm:$0xff]   ;;  %v9497_v52 = vld [vmem:[#allocation9 + $0x8c] ss:$16 sps:$4 sm:$0xff]  }
  0x6d   :  { %v8273_v53 = vld [vmem:[#allocation4 + $0x10] sm:$0xff]   ;;  %v8277_v55 = vld [vmem:[#allocation9 + $0x88] ss:$16 sps:$4 sm:$0xff]   ;;  %v8285_v57 = vld [vmem:[#allocation9 + $0xac] ss:$16 sps:$4 sm:$0xff]   ;;  %v11224_v10 = vsub.s32 2, %v9538_v9 }
  0x6e   :  { %358 = vmatpush1.bf16.msra.mxu0 %v8227_v19  ;;  %431 = vmatpush1.bf16.msra.mxu1 %v8228_v20  ;;  %v8274_v54 = vld [vmem:[#allocation9 + $0x80] ss:$16 sps:$4 sm:$0xff]   ;;  %v8282_v56 = vld [vmem:[#allocation9 + $0xa4] ss:$16 sps:$4 sm:$0xff]   ;;  %v8283_v59 = vld [vmem:[#allocation9 + $0xa8] ss:$16 sps:$4 sm:$0xff]  }
  0x6f   :  { %359 = vmatprep.subr.bf16.mxu0 %v8229_v21  ;;  %432 = vmatprep.subr.bf16.mxu1 %v8231_v22  ;;  %v8280_v58 = vld [vmem:[#allocation9 + $0xa0] ss:$16 sps:$4 sm:$0xff]   ;;  %v8289_v60 = vld [vmem:[#allocation9 + $0xc4] ss:$16 sps:$4 sm:$0xff]   ;;  %v8292_v61 = vld [vmem:[#allocation9 + $0xcc] ss:$16 sps:$4 sm:$0xff]  }
  0x70   :  { %v8286_v62 = vld [vmem:[#allocation4 + $0x18] sm:$0xff]   ;;  %v8287_v63 = vld [vmem:[#allocation9 + $0xc0] ss:$16 sps:$4 sm:$0xff]   ;;  %v8295_v2 = vld [vmem:[#allocation9 + $0xe4] ss:$16 sps:$4 sm:$0xff]   ;;  %v11225_v11 = vsub.s32 3, %v9538_v9 }
  0x71   :  { %v8290_v1 = vld [vmem:[#allocation9 + $0xc8] ss:$16 sps:$4 sm:$0xff]   ;;  %v8298_v3 = vld [vmem:[#allocation9 + $0xec] ss:$16 sps:$4 sm:$0xff]   ;;  %v8293_v4 = vld [vmem:[#allocation9 + $0xe0] ss:$16 sps:$4 sm:$0xff]  }
  0x72   :  { %360 = vmatpush1.bf16.msra.mxu0 %v8233_v23  ;;  %433 = vmatpush1.bf16.msra.mxu1 %v8234_v24  ;;  %v8296_v5 = vld [vmem:[#allocation9 + $0xe8] ss:$16 sps:$4 sm:$0xff]   ;;  %v9531_v6 = vld [vmem:[#allocation10 + $0x4] ss:$16 sps:$4 sm:$0xff]   ;;  %v9533_v7 = vld [vmem:[#allocation10 + $0xc] ss:$16 sps:$4 sm:$0xff]  }
  0x73   :  { %361 = vmatprep.subr.bf16.mxu0 %v8235_v25  ;;  %434 = vmatprep.subr.bf16.mxu1 %v8237_v26  ;;  %v11227_v12 = vsub.s32 0, %v9538_v9  ;;  %v143_v13 = vld [vmem:[%s11215_s3] sm:$0xf]  ;;  %v11226_v14 = vsub.s32 1, %v9538_v9  ;;  %s9309_s16 = smov [#allocation14]  }
  0x74   :  { %v9549_v15 = vrot.slane %v143_v13, %v11224_v10  ;;  %v9553_v16 = vrot.slane %v143_v13, %v11225_v11  ;;  %v9760_v8 = vld [vmem:[#allocation10 + $0x1a8] ss:$16 sps:$4 sm:$0xff]   ;;  %v9764_v10 = vld [vmem:[#allocation10 + $0x1c4] ss:$16 sps:$4 sm:$0xff]   ;;  %v9766_v11 = vld [vmem:[#allocation10 + $0x1cc] ss:$16 sps:$4 sm:$0xff]  }
  0x75   :  { %v9557_v17 = vrot.slane %v143_v13, %v11227_v12  ;;  %v9561_v19 = vrot.slane %v143_v13, %v11226_v14  ;;  %11436 = vst [vmem:[#allocation37_spill] sm:$0xff] %v9760_v8  ;;  %11437 = vst [vmem:[#allocation38_spill] sm:$0xff] %v9764_v10  ;;  %v9770_v14 = vld [vmem:[#allocation10 + $0x1c0] ss:$16 sps:$4 sm:$0xff]   ;;  %v9772_v12 = vld [vmem:[#allocation10 + $0x1c8] ss:$16 sps:$4 sm:$0xff]  }
  0x76   :  { %362 = vmatpush1.bf16.msra.mxu0 %v8239_v27  ;;  %435 = vmatpush1.bf16.msra.mxu1 %v8240_v28  ;;  %11438 = vst [vmem:[#allocation39_spill] sm:$0xff] %v9766_v11  ;;  %11439 = vst [vmem:[#allocation40_spill] sm:$0xff] %v9770_v14  ;;  %s7243_s18 = sshll.u32 %s9309_s16, 4  ;;  %s7244_s18 = int_to_ptr.vmem [resolvable:$true] %s7243_s18 }
  0x77   :  { %363 = vmatprep.subr.bf16.mxu0 %v8241_v29  ;;  %436 = vmatprep.subr.bf16.mxu1 %v8243_v30  ;;  %11440 = vst [vmem:[#allocation41_spill] sm:$0xff] %v9772_v12  ;;  %s9221_s14 = scalar_lea.vmem %s7244_s18, 256  ;;  %p9226_p13 = scmp.lt.s32.totalorder %s7244_s18, %s7244_s18 }
  0x78   :  { %p9222_p12 = scmp.ne.s32.totalorder %s7244_s18, %s9221_s14  ;;  %p9227_p0 = scmp.lt.s32.totalorder %s9221_s14, %s9221_s14 }
  0x7a   :  { %364 = vmatpush1.bf16.msra.mxu0 %v8245_v31  ;;  %437 = vmatpush1.bf16.msra.mxu1 %v8246_v32  ;;  %p9228_p1 = por %p9227_p0, %p9226_p13 }
  0x7b   :  { %751 = vmatprep.subr.bf16.mxu0 %v9447_v33  ;;  %792 = vmatprep.subr.bf16.mxu1 %v9449_v34 }
  0x7c   :  { %p9229_p2 = pnand %p9228_p1, %p9222_p12 }
  0x7d   :  { %382 = vmatmul.mubr.bf16.vlgmr.msra.gmra.mrb[0].mxu0 %v8247_v35  ;;  %455 = vmatmul.mubr.bf16.vlgmr.msra.gmra.mrb[0].mxu1 %v8247_v35 }
  0x7e   :  { %752 = vmatpush1.bf16.msra.mxu0 %v9451_v36  ;;  %793 = vmatpush1.bf16.msra.mxu1 %v9453_v37 }
  0x7f   :  { %753 = vmatprep.subr.bf16.mxu0 %v9457_v38  ;;  %794 = vmatprep.subr.bf16.mxu1 %v9459_v39 }
  0x80   :  { %391 = vmatprep.mubr.bf16.mxu0 %v11228_v0  ;;  %464 = vmatprep.mubr.bf16.mxu1 %v11228_v0 }
  0x82   :  { %754 = vmatpush1.bf16.msra.mxu0 %v9461_v40  ;;  %795 = vmatpush1.bf16.msra.mxu1 %v9465_v41 }
  0x83   :  { %755 = vmatprep.subr.bf16.mxu0 %v9469_v42  ;;  %796 = vmatprep.subr.bf16.mxu1 %v9471_v43 }
  0x85   :  { %392 = vmatmul.mubr.bf16.gmra.mrb[4].mxu0 %v8260_v44  ;;  %465 = vmatmul.mubr.bf16.gmra.mrb[4].mxu1 %v8260_v44 }
  0x86   :  { %756 = vmatpush1.bf16.msra.mxu0 %v9475_v45  ;;  %797 = vmatpush1.bf16.msra.mxu1 %v9477_v46 }
  0x87   :  { %757 = vmatprep.subr.bf16.mxu0 %v9481_v47  ;;  %798 = vmatprep.subr.bf16.mxu1 %v9485_v48 }
  0x88   :  { %401 = vmatprep.mubr.bf16.mxu0 %v11228_v0  ;;  %474 = vmatprep.mubr.bf16.mxu1 %v11228_v0 }
  0x8a   :  { %758 = vmatpush1.bf16.msra.mxu0 %v9487_v49  ;;  %799 = vmatpush1.bf16.msra.mxu1 %v9489_v50 }
  0x8b   :  { %759 = vmatprep.subr.bf16.mxu0 %v9493_v51  ;;  %800 = vmatprep.subr.bf16.mxu1 %v9497_v52 }
  0x8d   :  { %402 = vmatmul.mubr.bf16.gmra.mrb[8].mxu0 %v8273_v53  ;;  %475 = vmatmul.mubr.bf16.gmra.mrb[8].mxu1 %v8273_v53 }
  0x8e   :  { %760 = vmatpush1.bf16.msra.mxu0 %v8274_v54  ;;  %801 = vmatpush1.bf16.msra.mxu1 %v8277_v55 }
  0x8f   :  { %761 = vmatprep.subr.bf16.mxu0 %v8282_v56  ;;  %802 = vmatprep.subr.bf16.mxu1 %v8285_v57 }
  0x90   :  { %411 = vmatprep.mubr.bf16.mxu0 %v11228_v0  ;;  %484 = vmatprep.mubr.bf16.mxu1 %v11228_v0 }
  0x92   :  { %762 = vmatpush1.bf16.msra.mxu0 %v8280_v58  ;;  %803 = vmatpush1.bf16.msra.mxu1 %v8283_v59 }
  0x93   :  { %763 = vmatprep.subr.bf16.mxu0 %v8289_v60  ;;  %804 = vmatprep.subr.bf16.mxu1 %v8292_v61 }
  0x95   :  { %412 = vmatmul.mubr.bf16.gmra.mrb[12].mxu0 %v8286_v62  ;;  %485 = vmatmul.mubr.bf16.gmra.mrb[12].mxu1 %v8286_v62 }
  0x96   :  { %764 = vmatpush1.bf16.msra.mxu0 %v8287_v63  ;;  %805 = vmatpush1.bf16.msra.mxu1 %v8290_v1 }
  0x97   :  { %765 = vmatprep.subr.bf16.mxu0 %v8295_v2  ;;  %806 = vmatprep.subr.bf16.mxu1 %v8298_v3 }
  0x98   :  { %783 = vmatprep.mubr.bf16.mxu0 %v11228_v0  ;;  %824 = vmatprep.mubr.bf16.mxu1 %v11228_v0 }
  0x9a   :  { %766 = vmatpush1.bf16.msra.mxu0 %v8293_v4  ;;  %807 = vmatpush1.bf16.msra.mxu1 %v8296_v5 }
  0x9b   :  { %1076 = vmatprep.subr.bf16.mxu0 %v9447_v33  ;;  %1117 = vmatprep.subr.bf16.mxu1 %v9449_v34 }
  0x9d   :  { %784 = vmatmul.mubr.bf16.vlgmr.msra.gmra.mrb[16].mxu0 %v11228_v0  ;;  %825 = vmatmul.mubr.bf16.vlgmr.msra.gmra.mrb[16].mxu1 %v11228_v0 }
  0x9e   :  { %1077 = vmatpush1.bf16.msra.mxu0 %v9451_v36  ;;  %1118 = vmatpush1.bf16.msra.mxu1 %v9453_v37 }
  0x9f   :  { %1078 = vmatprep.subr.bf16.mxu0 %v9457_v38  ;;  %1119 = vmatprep.subr.bf16.mxu1 %v9459_v39 }
  0xa0   :  { %1108 = vmatprep.mubr.bf16.mxu0 %v11228_v0  ;;  %1149 = vmatprep.mubr.bf16.mxu1 %v11228_v0  ;;  %v9776_v0 = vld [vmem:[#allocation10 + $0x1e4] ss:$16 sps:$4 sm:$0xff]  }
  0xa1   :  { %11441 = vst [vmem:[#allocation42_spill] sm:$0xff] %v9776_v0 }
  0xa2   :  { %1079 = vmatpush1.bf16.msra.mxu0 %v9461_v40  ;;  %1120 = vmatpush1.bf16.msra.mxu1 %v9465_v41 }
  0xa3   :  { %1080 = vmatprep.subr.bf16.mxu0 %v9469_v42  ;;  %1121 = vmatprep.subr.bf16.mxu1 %v9471_v43 }
  0xa6   :  { %1081 = vmatpush1.bf16.msra.mxu0 %v9475_v45  ;;  %1122 = vmatpush1.bf16.msra.mxu1 %v9477_v46 }
  0xa7   :  { %1082 = vmatprep.subr.bf16.mxu0 %v9481_v47  ;;  %1123 = vmatprep.subr.bf16.mxu1 %v9485_v48 }
  0xaa   :  { %1083 = vmatpush1.bf16.msra.mxu0 %v9487_v49  ;;  %1124 = vmatpush1.bf16.msra.mxu1 %v9489_v50 }
  0xab   :  { %1084 = vmatprep.subr.bf16.mxu0 %v9493_v51  ;;  %1125 = vmatprep.subr.bf16.mxu1 %v9497_v52 }
  0xae   :  { %1085 = vmatpush1.bf16.msra.mxu0 %v8274_v54  ;;  %1126 = vmatpush1.bf16.msra.mxu1 %v8277_v55 }
  0xaf   :  { %1086 = vmatprep.subr.bf16.mxu0 %v8282_v56  ;;  %1127 = vmatprep.subr.bf16.mxu1 %v8285_v57 }
  0xb2   :  { %1087 = vmatpush1.bf16.msra.mxu0 %v8280_v58  ;;  %1128 = vmatpush1.bf16.msra.mxu1 %v8283_v59 }
  0xb3   :  { %1088 = vmatprep.subr.bf16.mxu0 %v8289_v60  ;;  %1129 = vmatprep.subr.bf16.mxu1 %v8292_v61 }
  0xb6   :  { %1089 = vmatpush1.bf16.msra.mxu0 %v8287_v63  ;;  %1130 = vmatpush1.bf16.msra.mxu1 %v8290_v1 }
  0xb7   :  { %1090 = vmatprep.subr.bf16.mxu0 %v8295_v2  ;;  %1131 = vmatprep.subr.bf16.mxu1 %v8298_v3 }
  0xba   :  { %1091 = vmatpush1.bf16.msra.mxu0 %v8293_v4  ;;  %1132 = vmatpush1.bf16.msra.mxu1 %v8296_v5 }
  0xbb   :  { %1553 = vmatprep.subr.bf16.mxu0 %v9531_v6  ;;  %1594 = vmatprep.subr.bf16.mxu1 %v9533_v7 }
 0x150   :  { %v383_v18 = vpop.f32.mrb[0].mxu0  ;;  %v456_v20 = vpop.f32.mrb[0].mxu1 }
 0x151   :  { %v385_v21 = vpop.f32.mrb[1].mxu0  ;;  %v457_v22 = vadd.f32 %v456_v20, %v9549_v15  ;;  %v458_v23 = vpop.f32.mrb[1].mxu1  ;;  %v384_v27 = vadd.f32 %v383_v18, %v9557_v17 }
 0x152   :  { %v387_v24 = vpop.f32.mrb[2].mxu0  ;;  %v459_v25 = vadd.f32 %v458_v23, %v9553_v16  ;;  %v460_v26 = vpop.f32.mrb[2].mxu1  ;;  %v386_v32 = vadd.f32 %v385_v21, %v9561_v19 }
 0x153   :  { %v388_v28 = vadd.f32 %v387_v24, %v9557_v17  ;;  %v389_v29 = vpop.f32.mrb[3].mxu0  ;;  %v461_v30 = vadd.f32 %v460_v26, %v9549_v15  ;;  %v462_v31 = vpop.f32.mrb[3].mxu1 }
 0x154   :  { %v390_v33 = vadd.f32 %v389_v29, %v9561_v19  ;;  %v463_v34 = vadd.f32 %v462_v31, %v9553_v16 }
 0x155   :  { %v495_v35 = vpack.c.bf16 %v388_v28, %v384_v27  ;;  %v497_v36 = vpack.c.bf16 %v461_v30, %v457_v22 }
 0x156   :  { %v496_v37 = vpack.c.bf16 %v390_v33, %v386_v32  ;;  %v498_v38 = vpack.c.bf16 %v463_v34, %v459_v25 }
 0x157   :  { %511 = vst [vmem:[#allocation2] sm:$0xff] %v495_v35  ;;  %513 = vst [vmem:[#allocation2 + $0x10] sm:$0xff] %v497_v36 }
 0x158   :  { %512 = vst [vmem:[#allocation2 + $0x8] sm:$0xff] %v496_v37  ;;  %v393_v39 = vpop.f32.mrb[4].mxu0  ;;  %514 = vst [vmem:[#allocation2 + $0x18] sm:$0xff] %v498_v38  ;;  %v466_v40 = vpop.f32.mrb[4].mxu1 }
 0x159   :  { %v395_v41 = vpop.f32.mrb[5].mxu0  ;;  %v467_v42 = vadd.f32 %v466_v40, %v9549_v15  ;;  %v468_v43 = vpop.f32.mrb[5].mxu1  ;;  %v394_v47 = vadd.f32 %v393_v39, %v9557_v17 }
 0x15a   :  { %v397_v44 = vpop.f32.mrb[6].mxu0  ;;  %v469_v45 = vadd.f32 %v468_v43, %v9553_v16  ;;  %v470_v46 = vpop.f32.mrb[6].mxu1  ;;  %v396_v52 = vadd.f32 %v395_v41, %v9561_v19 }
 0x15b   :  { %v398_v48 = vadd.f32 %v397_v44, %v9557_v17  ;;  %v399_v49 = vpop.f32.mrb[7].mxu0  ;;  %v471_v50 = vadd.f32 %v470_v46, %v9549_v15  ;;  %v472_v51 = vpop.f32.mrb[7].mxu1 }
 0x15c   :  { %v400_v53 = vadd.f32 %v399_v49, %v9561_v19  ;;  %v473_v54 = vadd.f32 %v472_v51, %v9553_v16 }
 0x15d   :  { %v499_v55 = vpack.c.bf16 %v398_v48, %v394_v47  ;;  %v501_v56 = vpack.c.bf16 %v471_v50, %v467_v42 }
 0x15e   :  { %v500_v57 = vpack.c.bf16 %v400_v53, %v396_v52  ;;  %v502_v58 = vpack.c.bf16 %v473_v54, %v469_v45  ;;  %v551_v44 = vld [vmem:[#allocation2] ss:$16 sps:$4 sm:$0xff]  }
 0x15f   :  { %515 = vst [vmem:[#allocation2 + $0x20] sm:$0xff] %v499_v55  ;;  %517 = vst [vmem:[#allocation2 + $0x30] sm:$0xff] %v501_v56  ;;  %v552_v47 = vld [vmem:[#allocation2 + $0x8] ss:$16 sps:$4 sm:$0xff]   ;;  %v555_v50 = vunpack.c.l.bf16 %v551_v44 }
 0x160   :  { %516 = vst [vmem:[#allocation2 + $0x28] sm:$0xff] %v500_v57  ;;  %v403_v59 = vpop.f32.mrb[8].mxu0  ;;  %518 = vst [vmem:[#allocation2 + $0x38] sm:$0xff] %v502_v58  ;;  %v476_v60 = vpop.f32.mrb[8].mxu1  ;;  %v556_v51 = vunpack.c.l.bf16 %v552_v47 }
 0x161   :  { %v405_v61 = vpop.f32.mrb[9].mxu0  ;;  %v477_v62 = vadd.f32 %v476_v60, %v9549_v15  ;;  %v478_v63 = vpop.f32.mrb[9].mxu1  ;;  %v404_v4 = vadd.f32 %v403_v59, %v9557_v17  ;;  %v558_v60 = vunpack.c.h.bf16 %v552_v47  ;;  %v9646_v47 = vld [vmem:[#allocation10 + $0x8c] ss:$16 sps:$4 sm:$0xff]  }
 0x162   :  { %v407_v1 = vpop.f32.mrb[10].mxu0  ;;  %v479_v2 = vadd.f32 %v478_v63, %v9553_v16  ;;  %v480_v3 = vpop.f32.mrb[10].mxu1  ;;  %v406_v21 = vadd.f32 %v405_v61, %v9561_v19 }
 0x163   :  { %v408_v5 = vadd.f32 %v407_v1, %v9557_v17  ;;  %v409_v13 = vpop.f32.mrb[11].mxu0  ;;  %v481_v18 = vadd.f32 %v480_v3, %v9549_v15  ;;  %v482_v20 = vpop.f32.mrb[11].mxu1 }
 0x164   :  { %v410_v22 = vadd.f32 %v409_v13, %v9561_v19  ;;  %v483_v23 = vadd.f32 %v482_v20, %v9553_v16 }
 0x165   :  { %v503_v24 = vpack.c.bf16 %v408_v5, %v404_v4  ;;  %v505_v25 = vpack.c.bf16 %v481_v18, %v477_v62  ;;  %v557_v62 = vunpack.c.h.bf16 %v551_v44  ;;  %v9638_v44 = vld [vmem:[#allocation10 + $0x60] ss:$16 sps:$4 sm:$0xff]  }
 0x166   :  { %v504_v26 = vpack.c.bf16 %v410_v22, %v406_v21  ;;  %v506_v27 = vpack.c.bf16 %v483_v23, %v479_v2 }
 0x167   :  { %519 = vst [vmem:[#allocation2 + $0x40] sm:$0xff] %v503_v24  ;;  %521 = vst [vmem:[#allocation2 + $0x50] sm:$0xff] %v505_v25 }
 0x168   :  { %520 = vst [vmem:[#allocation2 + $0x48] sm:$0xff] %v504_v26  ;;  %v413_v28 = vpop.f32.mrb[12].mxu0  ;;  %522 = vst [vmem:[#allocation2 + $0x58] sm:$0xff] %v506_v27  ;;  %v486_v29 = vpop.f32.mrb[12].mxu1 }
 0x169   :  { %v415_v30 = vpop.f32.mrb[13].mxu0  ;;  %v487_v31 = vadd.f32 %v486_v29, %v9549_v15  ;;  %v488_v32 = vpop.f32.mrb[13].mxu1  ;;  %v414_v36 = vadd.f32 %v413_v28, %v9557_v17 }
 0x16a   :  { %v417_v33 = vpop.f32.mrb[14].mxu0  ;;  %v489_v34 = vadd.f32 %v488_v32, %v9553_v16  ;;  %v490_v35 = vpop.f32.mrb[14].mxu1  ;;  %v416_v41 = vadd.f32 %v415_v30, %v9561_v19  ;;  %v9598_v30 = vld [vmem:[#allocation10] ss:$16 sps:$4 sm:$0xff]  }
 0x16b   :  { %v418_v37 = vadd.f32 %v417_v33, %v9557_v17  ;;  %v419_v38 = vpop.f32.mrb[15].mxu0  ;;  %v491_v39 = vadd.f32 %v490_v35, %v9549_v15  ;;  %v492_v40 = vpop.f32.mrb[15].mxu1  ;;  %v9604_v33 = vld [vmem:[#allocation10 + $0x24] ss:$16 sps:$4 sm:$0xff]  }
 0x16c   :  { %v420_v42 = vadd.f32 %v419_v38, %v9561_v19  ;;  %v493_v43 = vadd.f32 %v492_v40, %v9553_v16  ;;  %v9618_v38 = vld [vmem:[#allocation10 + $0x44] ss:$16 sps:$4 sm:$0xff]   ;;  %v9626_v40 = vld [vmem:[#allocation10 + $0x40] ss:$16 sps:$4 sm:$0xff]  }
 0x16d   :  { %v507_v45 = vpack.c.bf16 %v418_v37, %v414_v36  ;;  %v509_v46 = vpack.c.bf16 %v491_v39, %v487_v31  ;;  %v9600_v31 = vld [vmem:[#allocation10 + $0x8] ss:$16 sps:$4 sm:$0xff]   ;;  %v9614_v36 = vld [vmem:[#allocation10 + $0x20] ss:$16 sps:$4 sm:$0xff]   ;;  %v9620_v39 = vld [vmem:[#allocation10 + $0x4c] ss:$16 sps:$4 sm:$0xff]  }
 0x16e   :  { %v508_v48 = vpack.c.bf16 %v420_v42, %v416_v41  ;;  %v510_v49 = vpack.c.bf16 %v493_v43, %v489_v34  ;;  %v9606_v34 = vld [vmem:[#allocation10 + $0x2c] ss:$16 sps:$4 sm:$0xff]   ;;  %v9616_v37 = vld [vmem:[#allocation10 + $0x28] ss:$16 sps:$4 sm:$0xff]   ;;  %v9632_v42 = vld [vmem:[#allocation10 + $0x64] ss:$16 sps:$4 sm:$0xff]  }
 0x16f   :  { %523 = vst [vmem:[#allocation2 + $0x60] sm:$0xff] %v507_v45  ;;  %525 = vst [vmem:[#allocation2 + $0x70] sm:$0xff] %v509_v46  ;;  %v9628_v41 = vld [vmem:[#allocation10 + $0x48] ss:$16 sps:$4 sm:$0xff]   ;;  %v9634_v43 = vld [vmem:[#allocation10 + $0x6c] ss:$16 sps:$4 sm:$0xff]  }
 0x170   :  { %524 = vst [vmem:[#allocation2 + $0x68] sm:$0xff] %v508_v48  ;;  %526 = vst [vmem:[#allocation2 + $0x78] sm:$0xff] %v510_v49  ;;  %v785_v17 = vpop.f32.mrb[16].mxu0  ;;  %v826_v15 = vpop.f32.mrb[16].mxu1  ;;  %v9640_v45 = vld [vmem:[#allocation10 + $0x68] ss:$16 sps:$4 sm:$0xff]  }
 0x171   :  { %v833_v52 = vadd.f32 %v785_v17, %v555_v50  ;;  %v787_v53 = vpop.f32.mrb[17].mxu0  ;;  %v828_v54 = vpop.f32.mrb[17].mxu1  ;;  %v835_v1 = vadd.f32 %v826_v15, %v557_v62  ;;  %v9644_v46 = vld [vmem:[#allocation10 + $0x84] ss:$16 sps:$4 sm:$0xff]   ;;  %v9650_v48 = vld [vmem:[#allocation10 + $0x80] ss:$16 sps:$4 sm:$0xff]  }
 0x172   :  { %v834_v19 = vadd.f32 %v787_v53, %v556_v51  ;;  %v789_v55 = vpop.f32.mrb[18].mxu0  ;;  %v830_v16 = vpop.f32.mrb[18].mxu1  ;;  %v836_v61 = vadd.f32 %v828_v54, %v558_v60  ;;  %v9652_v49 = vld [vmem:[#allocation10 + $0x88] ss:$16 sps:$4 sm:$0xff]   ;;  %v9656_v50 = vld [vmem:[#allocation10 + $0xa4] ss:$16 sps:$4 sm:$0xff]  }
 0x173   :  { %v7344_v56 = vmul.f32 -1.442695, %v833_v52  ;;  %v790_v57 = vpop.f32.mrb[19].mxu0  ;;  %v831_v58 = vpop.f32.mrb[19].mxu1  ;;  %v9658_v17 = vld [vmem:[#allocation10 + $0xac] ss:$16 sps:$4 sm:$0xff]  }
 0x174   :  { %v7345_v59 = vmul.f32 -1.442695, %v834_v19  ;;  %v7346_v63 = vmul.f32 -1.442695, %v836_v61  ;;  %v9662_v15 = vld [vmem:[#allocation10 + $0xa0] ss:$16 sps:$4 sm:$0xff]  }
 0x175   :  { %8851 = vpow2.f32 %v7344_v56  ;;  %v9664_v51 = vld [vmem:[#allocation10 + $0xa8] ss:$16 sps:$4 sm:$0xff]   ;;  %v9668_v52 = vld [vmem:[#allocation10 + $0xc4] ss:$16 sps:$4 sm:$0xff]   ;;  %v9670_v53 = vld [vmem:[#allocation10 + $0xcc] ss:$16 sps:$4 sm:$0xff]  }
 0x176   :  { %8853 = vpow2.f32 %v7345_v59  ;;  %v9674_v54 = vld [vmem:[#allocation10 + $0xc0] ss:$16 sps:$4 sm:$0xff]   ;;  %v9676_v19 = vld [vmem:[#allocation10 + $0xc8] ss:$16 sps:$4 sm:$0xff]   ;;  %v9680_v55 = vld [vmem:[#allocation10 + $0xe4] ss:$16 sps:$4 sm:$0xff]  }
 0x177   :  { %8855 = vpow2.f32 %v7346_v63  ;;  %v9682_v16 = vld [vmem:[#allocation10 + $0xec] ss:$16 sps:$4 sm:$0xff]   ;;  %v9686_v56 = vld [vmem:[#allocation10 + $0xe0] ss:$16 sps:$4 sm:$0xff]   ;;  %v9688_v57 = vld [vmem:[#allocation10 + $0xe8] ss:$16 sps:$4 sm:$0xff]  }
 0x178   :  { %8857 = vtanh.f32 %v835_v1  ;;  %v9692_v58 = vld [vmem:[#allocation10 + $0x104] ss:$16 sps:$4 sm:$0xff]   ;;  %v9694_v59 = vld [vmem:[#allocation10 + $0x10c] ss:$16 sps:$4 sm:$0xff]   ;;  %v9698_v60 = vld [vmem:[#allocation10 + $0x100] ss:$16 sps:$4 sm:$0xff]  }
 0x179   :  { %v9700_v61 = vld [vmem:[#allocation10 + $0x108] ss:$16 sps:$4 sm:$0xff]   ;;  %v9704_v62 = vld [vmem:[#allocation10 + $0x124] ss:$16 sps:$4 sm:$0xff]   ;;  %v9706_v63 = vld [vmem:[#allocation10 + $0x12c] ss:$16 sps:$4 sm:$0xff]  }
 0x17a   :  { %v9710_v1 = vld [vmem:[#allocation10 + $0x120] ss:$16 sps:$4 sm:$0xff]  }
 0x17f   :  { %v8852_v2 = vpop.eup %8851 }
 0x180   :  { %v8854_v3 = vpop.eup %8853  ;;  %v840_v4 = vadd.f32 1.0, %v8852_v2  ;;  %v9712_v2 = vld [vmem:[#allocation10 + $0x128] ss:$16 sps:$4 sm:$0xff]  }
 0x181   :  { %v846_v5 = vadd.f32 1.0, %v8854_v3  ;;  %v8856_v13 = vpop.eup %8855  ;;  %v9716_v3 = vld [vmem:[#allocation10 + $0x144] ss:$16 sps:$4 sm:$0xff]  }
 0x182   :  { %8859 = vrcp.f32 %v840_v4  ;;  %v8858_v18 = vpop.eup %8857  ;;  %v853_v23 = vadd.f32 1.0, %v8856_v13  ;;  %11421 = vst [vmem:[#allocation22_spill] sm:$0xff] %v9716_v3  ;;  %v9718_v4 = vld [vmem:[#allocation10 + $0x14c] ss:$16 sps:$4 sm:$0xff]   ;;  %v9724_v13 = vld [vmem:[#allocation10 + $0x148] ss:$16 sps:$4 sm:$0xff]  }
 0x183   :  { %8861 = vrcp.f32 %v846_v5  ;;  %11422 = vst [vmem:[#allocation23_spill] sm:$0xff] %v9718_v4  ;;  %v9722_v5 = vld [vmem:[#allocation10 + $0x140] ss:$16 sps:$4 sm:$0xff]   ;;  %11424 = vst [vmem:[#allocation25_spill] sm:$0xff] %v9724_v13 }
 0x184   :  { %8863 = vrcp.f32 %v853_v23  ;;  %11423 = vst [vmem:[#allocation24_spill] sm:$0xff] %v9722_v5  ;;  %v9740_v23 = vld [vmem:[#allocation10 + $0x184] ss:$16 sps:$4 sm:$0xff]  }
 0x185   :  { %11429 = vst [vmem:[#allocation30_spill] sm:$0xff] %v9740_v23 }
 0x18c   :  { %v8860_v20 = vpop.eup %8859 }
 0x18d   :  { %v8862_v21 = vpop.eup %8861  ;;  %v857_v22 = vmul.f32 %v8860_v20, %v8858_v18  ;;  %v9728_v18 = vld [vmem:[#allocation10 + $0x164] ss:$16 sps:$4 sm:$0xff]   ;;  %v9730_v20 = vld [vmem:[#allocation10 + $0x16c] ss:$16 sps:$4 sm:$0xff]  }
 0x18e   :  { %v856_v24 = vmul.f32 0.0, %v8862_v21  ;;  %v8864_v26 = vpop.eup %8863  ;;  %11425 = vst [vmem:[#allocation26_spill] sm:$0xff] %v9728_v18  ;;  %11426 = vst [vmem:[#allocation27_spill] sm:$0xff] %v9730_v20  ;;  %v9734_v21 = vld [vmem:[#allocation10 + $0x160] ss:$16 sps:$4 sm:$0xff]  }
 0x18f   :  { %11427 = vst [vmem:[#allocation28_spill] sm:$0xff] %v9734_v21 }
 0x190   :  { %v9595_v25 = vadd.f32 %v857_v22, %v856_v24  ;;  %v9736_v22 = vld [vmem:[#allocation10 + $0x168] ss:$16 sps:$4 sm:$0xff]   ;;  %v9742_v24 = vld [vmem:[#allocation10 + $0x18c] ss:$16 sps:$4 sm:$0xff]  }
 0x191   :  { %11428 = vst [vmem:[#allocation29_spill] sm:$0xff] %v9736_v22  ;;  %11430 = vst [vmem:[#allocation31_spill] sm:$0xff] %v9742_v24 }
 0x192   :  { %8865 = vtanh.f32 %v9595_v25 }
 0x19c   :  { %v8866_v27 = vpop.eup %8865 }
 0x19d   :  { %v860_v28 = vmul.f32 %v8866_v27, %v8864_v26  ;;  %v9746_v26 = vld [vmem:[#allocation10 + $0x180] ss:$16 sps:$4 sm:$0xff]   ;;  %v9748_v27 = vld [vmem:[#allocation10 + $0x188] ss:$16 sps:$4 sm:$0xff]  }
 0x19e   :  { %11431 = vst [vmem:[#allocation32_spill] sm:$0xff] %v9746_v26  ;;  %11432 = vst [vmem:[#allocation33_spill] sm:$0xff] %v9748_v27 }
 0x19f   :  { %v861_v29 = vpack.c.bf16 %v860_v28, %v860_v28  ;;  %v9752_v28 = vld [vmem:[#allocation10 + $0x1a4] ss:$16 sps:$4 sm:$0xff]  }
 0x1a0   :  { %11433 = vst [vmem:[#allocation34_spill] sm:$0xff] %v9752_v28 }
 0x1a1   :  { %862 = vst [vmem:[#allocation3] sm:$0xf] %v861_v29  ;;  %v9754_v29 = vld [vmem:[#allocation10 + $0x1ac] ss:$16 sps:$4 sm:$0xff]  }
 0x1a2   :  { %11434 = vst [vmem:[#allocation35_spill] sm:$0xff] %v9754_v29 }
 0x1a8   :  { %v9602_v32 = vld [vmem:[#allocation3] sm:$0xff] }
 0x1a9   :  { %1109 = vmatmul.mubr.bf16.vlgmr.msra.gmra.mrb[20].mxu0 %v9602_v32  ;;  %1150 = vmatmul.mubr.bf16.vlgmr.msra.gmra.mrb[20].mxu1 %v9602_v32  ;;  %v7380_v35 = vcombine.high %v9602_v32, %v9602_v32 }
 0x1aa   :  { %1554 = vmatpush1.bf16.msra.mxu0 %v9598_v30  ;;  %1595 = vmatpush1.bf16.msra.mxu1 %v9600_v31 }
 0x1ab   :  { %1585 = vmatprep.mubr.bf16.mxu0 %v7380_v35  ;;  %1626 = vmatprep.mubr.bf16.mxu1 %v7380_v35  ;;  %v9758_v35 = vld [vmem:[#allocation10 + $0x1a0] ss:$16 sps:$4 sm:$0xff]  }
 0x1ac   :  { %1555 = vmatprep.subr.bf16.mxu0 %v9604_v33  ;;  %1596 = vmatprep.subr.bf16.mxu1 %v9606_v34  ;;  %11435 = vst [vmem:[#allocation36_spill] sm:$0xff] %v9758_v35 }
 0x1ae   :  { %1556 = vmatpush1.bf16.msra.mxu0 %v9614_v36  ;;  %1597 = vmatpush1.bf16.msra.mxu1 %v9616_v37 }
 0x1af   :  { %1557 = vmatprep.subr.bf16.mxu0 %v9618_v38  ;;  %1598 = vmatprep.subr.bf16.mxu1 %v9620_v39 }
 0x1b2   :  { %1558 = vmatpush1.bf16.msra.mxu0 %v9626_v40  ;;  %1599 = vmatpush1.bf16.msra.mxu1 %v9628_v41 }
 0x1b3   :  { %1559 = vmatprep.subr.bf16.mxu0 %v9632_v42  ;;  %1600 = vmatprep.subr.bf16.mxu1 %v9634_v43 }
 0x1b6   :  { %1560 = vmatpush1.bf16.msra.mxu0 %v9638_v44  ;;  %1601 = vmatpush1.bf16.msra.mxu1 %v9640_v45 }
 0x1b7   :  { %1561 = vmatprep.subr.bf16.mxu0 %v9644_v46  ;;  %1602 = vmatprep.subr.bf16.mxu1 %v9646_v47 }
 0x1ba   :  { %1562 = vmatpush1.bf16.msra.mxu0 %v9650_v48  ;;  %1603 = vmatpush1.bf16.msra.mxu1 %v9652_v49 }
 0x1bb   :  { %1563 = vmatprep.subr.bf16.mxu0 %v9656_v50  ;;  %1604 = vmatprep.subr.bf16.mxu1 %v9658_v17 }
 0x1be   :  { %1564 = vmatpush1.bf16.msra.mxu0 %v9662_v15  ;;  %1605 = vmatpush1.bf16.msra.mxu1 %v9664_v51 }
 0x1bf   :  { %1565 = vmatprep.subr.bf16.mxu0 %v9668_v52  ;;  %1606 = vmatprep.subr.bf16.mxu1 %v9670_v53 }
 0x1c2   :  { %1566 = vmatpush1.bf16.msra.mxu0 %v9674_v54  ;;  %1607 = vmatpush1.bf16.msra.mxu1 %v9676_v19 }
 0x1c3   :  { %1567 = vmatprep.subr.bf16.mxu0 %v9680_v55  ;;  %1608 = vmatprep.subr.bf16.mxu1 %v9682_v16 }
 0x1c6   :  { %1568 = vmatpush1.bf16.msra.mxu0 %v9686_v56  ;;  %1609 = vmatpush1.bf16.msra.mxu1 %v9688_v57 }
 0x1c7   :  { %1569 = vmatprep.subr.bf16.mxu0 %v9692_v58  ;;  %1610 = vmatprep.subr.bf16.mxu1 %v9694_v59 }
 0x1ca   :  { %1570 = vmatpush1.bf16.msra.mxu0 %v9698_v60  ;;  %1611 = vmatpush1.bf16.msra.mxu1 %v9700_v61 }
 0x1cb   :  { %1571 = vmatprep.subr.bf16.mxu0 %v9704_v62  ;;  %1612 = vmatprep.subr.bf16.mxu1 %v9706_v63 }
 0x1ce   :  { %1572 = vmatpush1.bf16.msra.mxu0 %v9710_v1  ;;  %1613 = vmatpush1.bf16.msra.mxu1 %v9712_v2 }
 0x1cf   :  { %1573 = vmatprep.subr.bf16.mxu0 %v9716_v3  ;;  %1614 = vmatprep.subr.bf16.mxu1 %v9718_v4 }
 0x1d2   :  { %1574 = vmatpush1.bf16.msra.mxu0 %v9722_v5  ;;  %1615 = vmatpush1.bf16.msra.mxu1 %v9724_v13 }
 0x1d3   :  { %1575 = vmatprep.subr.bf16.mxu0 %v9728_v18  ;;  %1616 = vmatprep.subr.bf16.mxu1 %v9730_v20 }
 0x1d6   :  { %1576 = vmatpush1.bf16.msra.mxu0 %v9734_v21  ;;  %1617 = vmatpush1.bf16.msra.mxu1 %v9736_v22 }
 0x1d7   :  { %1577 = vmatprep.subr.bf16.mxu0 %v9740_v23  ;;  %1618 = vmatprep.subr.bf16.mxu1 %v9742_v24 }
 0x1da   :  { %1578 = vmatpush1.bf16.msra.mxu0 %v9746_v26  ;;  %1619 = vmatpush1.bf16.msra.mxu1 %v9748_v27 }
 0x1db   :  { %1579 = vmatprep.subr.bf16.mxu0 %v9752_v28  ;;  %1620 = vmatprep.subr.bf16.mxu1 %v9754_v29  ;;  %v9778_v28 = vld [vmem:[#allocation10 + $0x1ec] ss:$16 sps:$4 sm:$0xff]   ;;  %v9782_v29 = vld [vmem:[#allocation10 + $0x1e0] ss:$16 sps:$4 sm:$0xff]  }
 0x1dc   :  { %11442 = vst [vmem:[#allocation43_spill] sm:$0xff] %v9778_v28  ;;  %11443 = vst [vmem:[#allocation44_spill] sm:$0xff] %v9782_v29 }
 0x1de   :  { %1580 = vmatpush1.bf16.msra.mxu0 %v9758_v35  ;;  %1621 = vmatpush1.bf16.msra.mxu1 %v9760_v8  ;;  %v9784_v35 = vld [vmem:[#allocation10 + $0x1e8] ss:$16 sps:$4 sm:$0xff]   ;;  %v867_v8 = vld [vmem:[#allocation2 + $0x18] sm:$0xf0] }
 0x1df   :  { %1581 = vmatprep.subr.bf16.mxu0 %v9764_v10  ;;  %1622 = vmatprep.subr.bf16.mxu1 %v9766_v11  ;;  %11444 = vst [vmem:[#allocation45_spill] sm:$0xff] %v9784_v35  ;;  %v7379_v11 = vcombine.low %v9602_v32, %v9602_v32  ;;  %v9796_v10 = vld [vmem:[#allocation9 + $0xc] ss:$16 sps:$4 sm:$0xff]   ;;  %v875_v21 = vrot.slane %v867_v8, 4 }
 0x1e0   :  { %11447 = vst [vmem:[#allocation47_spill] sm:$0xff] %v9796_v10  ;;  %v9808_v32 = vld [vmem:[#allocation9 + $0x2c] ss:$16 sps:$4 sm:$0xff]  }
 0x1e1   :  { %11451 = vst [vmem:[#allocation51_spill] sm:$0xff] %v9808_v32 }
 0x1e2   :  { %1582 = vmatpush1.bf16.msra.mxu0 %v9770_v14  ;;  %1623 = vmatpush1.bf16.msra.mxu1 %v9772_v12  ;;  %v11445_v14 = vmov 0   ;;  %v9794_v12 = vld [vmem:[#allocation9 + $0x4] ss:$16 sps:$4 sm:$0xff]  }
 0x1e3   :  { %1583 = vmatprep.subr.bf16.mxu0 %v9776_v0  ;;  %1624 = vmatprep.subr.bf16.mxu1 %v9778_v28  ;;  %11446 = vst [vmem:[#allocation46_spill] sm:$0xff] %v9794_v12  ;;  %v9798_v0 = vld [vmem:[#allocation9] ss:$16 sps:$4 sm:$0xff]   ;;  %v9800_v28 = vld [vmem:[#allocation9 + $0x8] ss:$16 sps:$4 sm:$0xff]  }
 0x1e4   :  { %11448 = vst [vmem:[#allocation48_spill] sm:$0xff] %v9798_v0  ;;  %11449 = vst [vmem:[#allocation49_spill] sm:$0xff] %v9800_v28 }
 0x1e6   :  { %1584 = vmatpush1.bf16.msra.mxu0 %v9782_v29  ;;  %1625 = vmatpush1.bf16.msra.mxu1 %v9784_v35  ;;  %v9812_v35 = vld [vmem:[#allocation9 + $0x28] ss:$16 sps:$4 sm:$0xff]   ;;  %v864_v29 = vld [vmem:[#allocation2] sm:$0xf0] }
 0x1e7   :  { %1888 = vmatprep.subr.bf16.mxu0 %v9794_v12  ;;  %1929 = vmatprep.subr.bf16.mxu1 %v9796_v10  ;;  %11453 = vst [vmem:[#allocation53_spill] sm:$0xff] %v9812_v35  ;;  %v9818_v10 = vld [vmem:[#allocation9 + $0x44] ss:$16 sps:$4 sm:$0xff]   ;;  %v9824_v12 = vld [vmem:[#allocation9 + $0x48] ss:$16 sps:$4 sm:$0xff]  }
 0x1e8   :  { %11454 = vst [vmem:[#allocation54_spill] sm:$0xff] %v9818_v10  ;;  %11457 = vst [vmem:[#allocation57_spill] sm:$0xff] %v9824_v12 }
 0x1e9   :  { %1586 = vmatmul.mubr.bf16.vlgmr.msra.gmra.mrb[24].mxu0 %v7379_v11  ;;  %1627 = vmatmul.mubr.bf16.vlgmr.msra.gmra.mrb[24].mxu1 %v7379_v11  ;;  %v9806_v11 = vld [vmem:[#allocation9 + $0x24] ss:$16 sps:$4 sm:$0xff]  }
 0x1ea   :  { %1920 = vmatprep.mubr.bf16.mxu0 %v11445_v14  ;;  %1961 = vmatprep.mubr.bf16.mxu1 %v11445_v14  ;;  %11450 = vst [vmem:[#allocation50_spill] sm:$0xff] %v9806_v11  ;;  %v9810_v14 = vld [vmem:[#allocation9 + $0x20] ss:$16 sps:$4 sm:$0xff]  }
 0x1eb   :  { %1889 = vmatpush1.bf16.msra.mxu0 %v9798_v0  ;;  %1930 = vmatpush1.bf16.msra.mxu1 %v9800_v28  ;;  %11452 = vst [vmem:[#allocation52_spill] sm:$0xff] %v9810_v14  ;;  %v9820_v0 = vld [vmem:[#allocation9 + $0x4c] ss:$16 sps:$4 sm:$0xff]   ;;  %v9822_v28 = vld [vmem:[#allocation9 + $0x40] ss:$16 sps:$4 sm:$0xff]  }
 0x1ec   :  { %1890 = vmatprep.subr.bf16.mxu0 %v9806_v11  ;;  %1931 = vmatprep.subr.bf16.mxu1 %v9808_v32  ;;  %11455 = vst [vmem:[#allocation55_spill] sm:$0xff] %v9820_v0  ;;  %11456 = vst [vmem:[#allocation56_spill] sm:$0xff] %v9822_v28  ;;  %v9830_v32 = vld [vmem:[#allocation9 + $0x64] ss:$16 sps:$4 sm:$0xff]   ;;  %v9836_v11 = vld [vmem:[#allocation9 + $0x68] ss:$16 sps:$4 sm:$0xff]  }
 0x1ed   :  { %11458 = vst [vmem:[#allocation58_spill] sm:$0xff] %v9830_v32  ;;  %11461 = vst [vmem:[#allocation61_spill] sm:$0xff] %v9836_v11 }
 0x1ef   :  { %1891 = vmatpush1.bf16.msra.mxu0 %v9810_v14  ;;  %1932 = vmatpush1.bf16.msra.mxu1 %v9812_v35  ;;  %v9832_v14 = vld [vmem:[#allocation9 + $0x6c] ss:$16 sps:$4 sm:$0xff]   ;;  %v9834_v35 = vld [vmem:[#allocation9 + $0x60] ss:$16 sps:$4 sm:$0xff]  }
 0x1f0   :  { %1892 = vmatprep.subr.bf16.mxu0 %v9818_v10  ;;  %1933 = vmatprep.subr.bf16.mxu1 %v9820_v0  ;;  %11459 = vst [vmem:[#allocation59_spill] sm:$0xff] %v9832_v14  ;;  %11460 = vst [vmem:[#allocation60_spill] sm:$0xff] %v9834_v35  ;;  %v9842_v0 = vld [vmem:[#allocation9 + $0x84] ss:$16 sps:$4 sm:$0xff]   ;;  %v9848_v10 = vld [vmem:[#allocation9 + $0x88] ss:$16 sps:$4 sm:$0xff]  }
 0x1f1   :  { %11462 = vst [vmem:[#allocation62_spill] sm:$0xff] %v9842_v0  ;;  %11465 = vst [vmem:[#allocation65_spill] sm:$0xff] %v9848_v10 }
 0x1f3   :  { %1893 = vmatpush1.bf16.msra.mxu0 %v9822_v28  ;;  %1934 = vmatpush1.bf16.msra.mxu1 %v9824_v12  ;;  %v9844_v28 = vld [vmem:[#allocation9 + $0x8c] ss:$16 sps:$4 sm:$0xff]   ;;  %v9846_v12 = vld [vmem:[#allocation9 + $0x80] ss:$16 sps:$4 sm:$0xff]  }
 0x1f4   :  { %1894 = vmatprep.subr.bf16.mxu0 %v9830_v32  ;;  %1935 = vmatprep.subr.bf16.mxu1 %v9832_v14  ;;  %11463 = vst [vmem:[#allocation63_spill] sm:$0xff] %v9844_v28  ;;  %11464 = vst [vmem:[#allocation64_spill] sm:$0xff] %v9846_v12  ;;  %v9854_v14 = vld [vmem:[#allocation9 + $0xa4] ss:$16 sps:$4 sm:$0xff]   ;;  %v9860_v32 = vld [vmem:[#allocation9 + $0xa8] ss:$16 sps:$4 sm:$0xff]  }
 0x1f5   :  { %11466 = vst [vmem:[#allocation66_spill] sm:$0xff] %v9854_v14  ;;  %11469 = vst [vmem:[#allocation69_spill] sm:$0xff] %v9860_v32 }
 0x1f7   :  { %1895 = vmatpush1.bf16.msra.mxu0 %v9834_v35  ;;  %1936 = vmatpush1.bf16.msra.mxu1 %v9836_v11  ;;  %v9856_v35 = vld [vmem:[#allocation9 + $0xac] ss:$16 sps:$4 sm:$0xff]   ;;  %v9858_v11 = vld [vmem:[#allocation9 + $0xa0] ss:$16 sps:$4 sm:$0xff]  }
 0x1f8   :  { %1896 = vmatprep.subr.bf16.mxu0 %v9842_v0  ;;  %1937 = vmatprep.subr.bf16.mxu1 %v9844_v28  ;;  %11467 = vst [vmem:[#allocation67_spill] sm:$0xff] %v9856_v35  ;;  %11468 = vst [vmem:[#allocation68_spill] sm:$0xff] %v9858_v11  ;;  %v9866_v28 = vld [vmem:[#allocation9 + $0xc4] ss:$16 sps:$4 sm:$0xff]   ;;  %v9872_v0 = vld [vmem:[#allocation9 + $0xc8] ss:$16 sps:$4 sm:$0xff]  }
 0x1f9   :  { %11470 = vst [vmem:[#allocation70_spill] sm:$0xff] %v9866_v28  ;;  %11473 = vst [vmem:[#allocation73_spill] sm:$0xff] %v9872_v0 }
 0x1fb   :  { %1897 = vmatpush1.bf16.msra.mxu0 %v9846_v12  ;;  %1938 = vmatpush1.bf16.msra.mxu1 %v9848_v10  ;;  %v9868_v12 = vld [vmem:[#allocation9 + $0xcc] ss:$16 sps:$4 sm:$0xff]   ;;  %v9870_v10 = vld [vmem:[#allocation9 + $0xc0] ss:$16 sps:$4 sm:$0xff]  }
 0x1fc   :  { %1898 = vmatprep.subr.bf16.mxu0 %v9854_v14  ;;  %1939 = vmatprep.subr.bf16.mxu1 %v9856_v35  ;;  %11471 = vst [vmem:[#allocation71_spill] sm:$0xff] %v9868_v12  ;;  %11472 = vst [vmem:[#allocation72_spill] sm:$0xff] %v9870_v10  ;;  %v9878_v35 = vld [vmem:[#allocation9 + $0xe4] ss:$16 sps:$4 sm:$0xff]   ;;  %v9884_v14 = vld [vmem:[#allocation9 + $0xe8] ss:$16 sps:$4 sm:$0xff]  }
 0x1fd   :  { %11474 = vst [vmem:[#allocation74_spill] sm:$0xff] %v9878_v35  ;;  %11477 = vst [vmem:[#allocation77_spill] sm:$0xff] %v9884_v14 }
 0x1ff   :  { %1899 = vmatpush1.bf16.msra.mxu0 %v9858_v11  ;;  %1940 = vmatpush1.bf16.msra.mxu1 %v9860_v32  ;;  %v9880_v11 = vld [vmem:[#allocation9 + $0xec] ss:$16 sps:$4 sm:$0xff]   ;;  %v9882_v32 = vld [vmem:[#allocation9 + $0xe0] ss:$16 sps:$4 sm:$0xff]  }
 0x200   :  { %1900 = vmatprep.subr.bf16.mxu0 %v9866_v28  ;;  %1941 = vmatprep.subr.bf16.mxu1 %v9868_v12  ;;  %11475 = vst [vmem:[#allocation75_spill] sm:$0xff] %v9880_v11  ;;  %11476 = vst [vmem:[#allocation76_spill] sm:$0xff] %v9882_v32 }
 0x203   :  { %1901 = vmatpush1.bf16.msra.mxu0 %v9870_v10  ;;  %1942 = vmatpush1.bf16.msra.mxu1 %v9872_v0  ;;  %v865_v10 = vld [vmem:[#allocation2 + $0x8] sm:$0xf0]  ;;  %v872_v0 = vrot.slane %v864_v29, 4 }
 0x204   :  { %1902 = vmatprep.subr.bf16.mxu0 %v9878_v35  ;;  %1943 = vmatprep.subr.bf16.mxu1 %v9880_v11  ;;  %v873_v12 = vrot.slane %v865_v10, 4 }
 0x205   :  { %v880_v28 = vunpack.c.l.bf16 %v872_v0 }
 0x206   :  { %v881_v24 = vunpack.c.l.bf16 %v873_v12 }
 0x207   :  { %1903 = vmatpush1.bf16.msra.mxu0 %v9882_v32  ;;  %1944 = vmatpush1.bf16.msra.mxu1 %v9884_v14 }
 0x208   :  { %2365 = vmatprep.subr.bf16.mxu0 %v9531_v6  ;;  %2406 = vmatprep.subr.bf16.mxu1 %v9533_v7  ;;  %v866_v6 = vld [vmem:[#allocation2 + $0x10] sm:$0xf0]  ;;  %v883_v7 = vunpack.c.l.bf16 %v875_v21 }
 0x209   :  { %v874_v0 = vrot.slane %v866_v6, 4 }
 0x20b   :  { %v882_v29 = vunpack.c.l.bf16 %v874_v0 }
 0x27c   :  { %v1110_v27 = vpop.f32.mrb[20].mxu0  ;;  %v1151_v26 = vpop.f32.mrb[20].mxu1 }
 0x27d   :  { %v1158_v35 = vadd.f32 %v1110_v27, %v880_v28  ;;  %v1112_v23 = vpop.f32.mrb[21].mxu0  ;;  %v1153_v11 = vpop.f32.mrb[21].mxu1  ;;  %v1160_v12 = vadd.f32 %v1151_v26, %v882_v29 }
 0x27e   :  { %v1159_v22 = vadd.f32 %v1112_v23, %v881_v24  ;;  %v1114_v32 = vpop.f32.mrb[22].mxu0  ;;  %v1155_v20 = vpop.f32.mrb[22].mxu1  ;;  %v1161_v10 = vadd.f32 %v1153_v11, %v883_v7  ;;  %v11478_v11 = vsub.s32 0, %v9538_v9 }
 0x27f   :  { %v7445_v14 = vmul.f32 -1.442695, %v1158_v35  ;;  %v1115_v18 = vpop.f32.mrb[23].mxu0  ;;  %v1156_v13 = vpop.f32.mrb[23].mxu1 }
 0x280   :  { %v7446_v5 = vmul.f32 -1.442695, %v1159_v22  ;;  %v7447_v4 = vmul.f32 -1.442695, %v1161_v10 }
 0x281   :  { %8867 = vpow2.f32 %v7445_v14 }
 0x282   :  { %8869 = vpow2.f32 %v7446_v5 }
 0x283   :  { %8871 = vpow2.f32 %v7447_v4 }
 0x284   :  { %8873 = vtanh.f32 %v1160_v12 }
 0x28b   :  { %v8868_v27 = vpop.eup %8867 }
 0x28c   :  { %v8870_v28 = vpop.eup %8869  ;;  %v1638_v3 = vadd.f32 1.0, %v8868_v27 }
 0x28d   :  { %v1644_v8 = vadd.f32 1.0, %v8870_v28  ;;  %v8872_v18 = vpop.eup %8871 }
 0x28e   :  { %8875 = vrcp.f32 %v1638_v3  ;;  %v8874_v13 = vpop.eup %8873  ;;  %v1651_v5 = vadd.f32 1.0, %v8872_v18  ;;  %v527_v3 = vld [vmem:[%s11217_s5] sm:$0xf] }
 0x28f   :  { %8877 = vrcp.f32 %v1644_v8  ;;  %v9901_v32 = vrot.slane %v527_v3, %v11478_v11 }
 0x290   :  { %8879 = vrcp.f32 %v1651_v5 }
 0x291   :  { %11479 = vst [vmem:[#allocation78_spill] sm:$0xff] %v9901_v32 }
 0x298   :  { %v8876_v20 = vpop.eup %8875 }
 0x299   :  { %v8878_v22 = vpop.eup %8877  ;;  %v1655_v14 = vmul.f32 %v8876_v20, %v8874_v13 }
 0x29a   :  { %v1654_v21 = vmul.f32 %v8878_v22, %v9595_v25  ;;  %v8880_v24 = vpop.eup %8879  ;;  %v11480_v25 = vsub.s32 1, %v9538_v9 }
 0x29c   :  { %v9893_v23 = vadd.f32 %v1655_v14, %v1654_v21  ;;  %v9905_v6 = vrot.slane %v527_v3, %v11480_v25  ;;  %v11482_v14 = vsub.s32 3, %v9538_v9 }
 0x29e   :  { %8881 = vtanh.f32 %v9893_v23  ;;  %11481 = vst [vmem:[#allocation79_spill] sm:$0xff] %v9905_v6  ;;  %v9911_v5 = vrot.slane %v527_v3, %v11482_v14 }
 0x2a0   :  { %11483 = vst [vmem:[#allocation80_spill] sm:$0xff] %v9911_v5 }
 0x2a8   :  { %v8882_v26 = vpop.eup %8881 }
 0x2a9   :  { %v1658_v4 = vmul.f32 %v8882_v26, %v8880_v24  ;;  %v11484_v24 = vsub.s32 2, %v9538_v9 }
 0x2ab   :  { %v1659_v35 = vpack.c.bf16 %v1658_v4, %v1658_v4  ;;  %v9916_v26 = vrot.slane %v527_v3, %v11484_v24  ;;  %v11523_v24 = vld [vmem:[#allocation58_spill] sm:$0xff] }
 0x2ad   :  { %1660 = vst [vmem:[#allocation3] sm:$0xf] %v1659_v35  ;;  %11485 = vst [vmem:[#allocation81_spill] sm:$0xff] %v9916_v26 }
 0x2bc   :  { %v1587_v7 = vpop.f32.mrb[24].mxu0  ;;  %v1628_v0 = vpop.f32.mrb[24].mxu1 }
 0x2bd   :  { %v1588_v10 = vadd.f32 %v1587_v7, %v9901_v32  ;;  %v1589_v29 = vpop.f32.mrb[25].mxu0  ;;  %v1630_v12 = vpop.f32.mrb[25].mxu1  ;;  %v1629_v35 = vadd.f32 %v1628_v0, %v9916_v26 }
 0x2be   :  { %v1590_v27 = vadd.f32 %v1589_v29, %v9905_v6  ;;  %v1591_v28 = vpop.f32.mrb[26].mxu0  ;;  %v1632_v8 = vpop.f32.mrb[26].mxu1  ;;  %v1631_v21 = vadd.f32 %v1630_v12, %v9911_v5 }
 0x2bf   :  { %v7448_v18 = vmul.f32 -1.442695, %v1588_v10  ;;  %v1592_v13 = vpop.f32.mrb[27].mxu0  ;;  %v1633_v20 = vpop.f32.mrb[27].mxu1 }
 0x2c0   :  { %v7449_v22 = vmul.f32 -1.442695, %v1590_v27  ;;  %v7450_v4 = vmul.f32 -1.442695, %v1631_v21 }
 0x2c1   :  { %8883 = vpow2.f32 %v7448_v18 }
 0x2c2   :  { %8885 = vpow2.f32 %v7449_v22 }
 0x2c3   :  { %8887 = vpow2.f32 %v7450_v4  ;;  %v11524_v4 = vld [vmem:[#allocation59_spill] sm:$0xff] }
 0x2c4   :  { %8889 = vtanh.f32 %v1629_v35  ;;  %v11525_v35 = vld [vmem:[#allocation60_spill] sm:$0xff] }
 0x2cb   :  { %v8884_v11 = vpop.eup %8883 }
 0x2cc   :  { %v8886_v25 = vpop.eup %8885  ;;  %v1664_v7 = vadd.f32 1.0, %v8884_v11  ;;  %v11526_v11 = vld [vmem:[#allocation61_spill] sm:$0xff] }
 0x2cd   :  { %v1670_v10 = vadd.f32 1.0, %v8886_v25  ;;  %v8888_v29 = vpop.eup %8887  ;;  %v11527_v25 = vld [vmem:[#allocation62_spill] sm:$0xff] }
 0x2ce   :  { %8891 = vrcp.f32 %v1664_v7  ;;  %v8890_v27 = vpop.eup %8889  ;;  %v1677_v18 = vadd.f32 1.0, %v8888_v29  ;;  %v11528_v7 = vld [vmem:[#allocation63_spill] sm:$0xff]  ;;  %v11530_v29 = vld [vmem:[#allocation65_spill] sm:$0xff] }
 0x2cf   :  { %8893 = vrcp.f32 %v1670_v10  ;;  %v11529_v10 = vld [vmem:[#allocation64_spill] sm:$0xff] }
 0x2d0   :  { %8895 = vrcp.f32 %v1677_v18  ;;  %v11535_v18 = vld [vmem:[#allocation70_spill] sm:$0xff] }
 0x2d8   :  { %v8892_v28 = vpop.eup %8891 }
 0x2d9   :  { %v8894_v8 = vpop.eup %8893  ;;  %v1681_v12 = vmul.f32 %v8892_v28, %v8890_v27  ;;  %v11531_v27 = vld [vmem:[#allocation66_spill] sm:$0xff]  ;;  %v11532_v28 = vld [vmem:[#allocation67_spill] sm:$0xff] }
 0x2da   :  { %v1680_v9 = vmul.f32 0.0, %v8894_v8  ;;  %v8896_v0 = vpop.eup %8895  ;;  %v11533_v8 = vld [vmem:[#allocation68_spill] sm:$0xff] }
 0x2dc   :  { %v9919_v3 = vadd.f32 %v1681_v12, %v1680_v9  ;;  %v11534_v12 = vld [vmem:[#allocation69_spill] sm:$0xff]  ;;  %v11536_v9 = vld [vmem:[#allocation71_spill] sm:$0xff] }
 0x2de   :  { %8897 = vtanh.f32 %v9919_v3 }
 0x2e8   :  { %v8898_v13 = vpop.eup %8897 }
 0x2e9   :  { %v1684_v20 = vmul.f32 %v8898_v13, %v8896_v0  ;;  %v11537_v0 = vld [vmem:[#allocation72_spill] sm:$0xff]  ;;  %v11538_v13 = vld [vmem:[#allocation73_spill] sm:$0xff] }
 0x2eb   :  { %v1685_v22 = vpack.c.bf16 %v1684_v20, %v1684_v20  ;;  %v11539_v20 = vld [vmem:[#allocation74_spill] sm:$0xff] }
 0x2ed   :  { %1686 = vst [vmem:[#allocation3 + $0x4] sm:$0xf] %v1685_v22  ;;  %v11540_v22 = vld [vmem:[#allocation75_spill] sm:$0xff] }
 0x2f4   :  { %v9922_v14 = vld [vmem:[#allocation3] sm:$0xff] }
 0x2f5   :  { %1921 = vmatmul.mubr.bf16.vlgmr.msra.gmra.mrb[28].mxu0 %v9922_v14  ;;  %1962 = vmatmul.mubr.bf16.vlgmr.msra.gmra.mrb[28].mxu1 %v9922_v14  ;;  %v7484_v21 = vcombine.high %v9922_v14, %v9922_v14 }
 0x2f6   :  { %2366 = vmatpush1.bf16.msra.mxu0 %v9598_v30  ;;  %2407 = vmatpush1.bf16.msra.mxu1 %v9600_v31  ;;  %v11486_v30 = vld [vmem:[#allocation22_spill] sm:$0xff]  ;;  %v11487_v31 = vld [vmem:[#allocation23_spill] sm:$0xff] }
 0x2f7   :  { %2397 = vmatprep.mubr.bf16.mxu0 %v7484_v21  ;;  %2438 = vmatprep.mubr.bf16.mxu1 %v7484_v21  ;;  %v11542_v21 = vld [vmem:[#allocation77_spill] sm:$0xff] }
 0x2f8   :  { %2367 = vmatprep.subr.bf16.mxu0 %v9604_v33  ;;  %2408 = vmatprep.subr.bf16.mxu1 %v9606_v34  ;;  %v11488_v33 = vld [vmem:[#allocation24_spill] sm:$0xff]  ;;  %v11489_v34 = vld [vmem:[#allocation25_spill] sm:$0xff] }
 0x2fa   :  { %2368 = vmatpush1.bf16.msra.mxu0 %v9614_v36  ;;  %2409 = vmatpush1.bf16.msra.mxu1 %v9616_v37  ;;  %v11490_v36 = vld [vmem:[#allocation26_spill] sm:$0xff]  ;;  %v11491_v37 = vld [vmem:[#allocation27_spill] sm:$0xff] }
 0x2fb   :  { %2369 = vmatprep.subr.bf16.mxu0 %v9618_v38  ;;  %2410 = vmatprep.subr.bf16.mxu1 %v9620_v39  ;;  %v11492_v38 = vld [vmem:[#allocation28_spill] sm:$0xff]  ;;  %v11493_v39 = vld [vmem:[#allocation29_spill] sm:$0xff] }
 0x2fe   :  { %2370 = vmatpush1.bf16.msra.mxu0 %v9626_v40  ;;  %2411 = vmatpush1.bf16.msra.mxu1 %v9628_v41  ;;  %v11494_v40 = vld [vmem:[#allocation30_spill] sm:$0xff]  ;;  %v11495_v41 = vld [vmem:[#allocation31_spill] sm:$0xff] }
 0x2ff   :  { %2371 = vmatprep.subr.bf16.mxu0 %v9632_v42  ;;  %2412 = vmatprep.subr.bf16.mxu1 %v9634_v43  ;;  %v11496_v42 = vld [vmem:[#allocation32_spill] sm:$0xff]  ;;  %v11497_v43 = vld [vmem:[#allocation33_spill] sm:$0xff] }
 0x302   :  { %2372 = vmatpush1.bf16.msra.mxu0 %v9638_v44  ;;  %2413 = vmatpush1.bf16.msra.mxu1 %v9640_v45  ;;  %v11498_v44 = vld [vmem:[#allocation34_spill] sm:$0xff]  ;;  %v11499_v45 = vld [vmem:[#allocation35_spill] sm:$0xff] }
 0x303   :  { %2373 = vmatprep.subr.bf16.mxu0 %v9644_v46  ;;  %2414 = vmatprep.subr.bf16.mxu1 %v9646_v47  ;;  %v11500_v46 = vld [vmem:[#allocation36_spill] sm:$0xff]  ;;  %v11501_v47 = vld [vmem:[#allocation37_spill] sm:$0xff] }
 0x306   :  { %2374 = vmatpush1.bf16.msra.mxu0 %v9650_v48  ;;  %2415 = vmatpush1.bf16.msra.mxu1 %v9652_v49  ;;  %v11502_v48 = vld [vmem:[#allocation38_spill] sm:$0xff]  ;;  %v11503_v49 = vld [vmem:[#allocation39_spill] sm:$0xff] }
 0x307   :  { %2375 = vmatprep.subr.bf16.mxu0 %v9656_v50  ;;  %2416 = vmatprep.subr.bf16.mxu1 %v9658_v17  ;;  %v11504_v50 = vld [vmem:[#allocation40_spill] sm:$0xff]  ;;  %v11505_v17 = vld [vmem:[#allocation41_spill] sm:$0xff] }
 0x30a   :  { %2376 = vmatpush1.bf16.msra.mxu0 %v9662_v15  ;;  %2417 = vmatpush1.bf16.msra.mxu1 %v9664_v51  ;;  %v11506_v15 = vld [vmem:[#allocation42_spill] sm:$0xff]  ;;  %v11507_v51 = vld [vmem:[#allocation43_spill] sm:$0xff] }
 0x30b   :  { %2377 = vmatprep.subr.bf16.mxu0 %v9668_v52  ;;  %2418 = vmatprep.subr.bf16.mxu1 %v9670_v53  ;;  %v11508_v52 = vld [vmem:[#allocation44_spill] sm:$0xff]  ;;  %v11509_v53 = vld [vmem:[#allocation45_spill] sm:$0xff] }
 0x30e   :  { %2378 = vmatpush1.bf16.msra.mxu0 %v9674_v54  ;;  %2419 = vmatpush1.bf16.msra.mxu1 %v9676_v19  ;;  %v7483_v54 = vcombine.low %v9922_v14, %v9922_v14  ;;  %v11510_v19 = vld [vmem:[#allocation46_spill] sm:$0xff]  ;;  %v11541_v14 = vld [vmem:[#allocation76_spill] sm:$0xff] }
 0x30f   :  { %2379 = vmatprep.subr.bf16.mxu0 %v9680_v55  ;;  %2420 = vmatprep.subr.bf16.mxu1 %v9682_v16  ;;  %v11511_v55 = vld [vmem:[#allocation47_spill] sm:$0xff]  ;;  %v11512_v16 = vld [vmem:[#allocation48_spill] sm:$0xff] }
 0x312   :  { %2380 = vmatpush1.bf16.msra.mxu0 %v9686_v56  ;;  %2421 = vmatpush1.bf16.msra.mxu1 %v9688_v57  ;;  %v11513_v56 = vld [vmem:[#allocation49_spill] sm:$0xff]  ;;  %v11514_v57 = vld [vmem:[#allocation50_spill] sm:$0xff] }
 0x313   :  { %2381 = vmatprep.subr.bf16.mxu0 %v9692_v58  ;;  %2422 = vmatprep.subr.bf16.mxu1 %v9694_v59  ;;  %v11515_v58 = vld [vmem:[#allocation51_spill] sm:$0xff]  ;;  %v11516_v59 = vmov 0  }
 0x316   :  { %2382 = vmatpush1.bf16.msra.mxu0 %v9698_v60  ;;  %2423 = vmatpush1.bf16.msra.mxu1 %v9700_v61  ;;  %v11517_v60 = vld [vmem:[#allocation52_spill] sm:$0xff]  ;;  %v11518_v61 = vld [vmem:[#allocation53_spill] sm:$0xff] }
 0x317   :  { %2383 = vmatprep.subr.bf16.mxu0 %v9704_v62  ;;  %2424 = vmatprep.subr.bf16.mxu1 %v9706_v63  ;;  %v11519_v62 = vld [vmem:[#allocation54_spill] sm:$0xff]  ;;  %v11520_v63 = vld [vmem:[#allocation55_spill] sm:$0xff] }
 0x31a   :  { %2384 = vmatpush1.bf16.msra.mxu0 %v9710_v1  ;;  %2425 = vmatpush1.bf16.msra.mxu1 %v9712_v2  ;;  %v11521_v1 = vld [vmem:[#allocation56_spill] sm:$0xff]  ;;  %v11522_v2 = vld [vmem:[#allocation57_spill] sm:$0xff] }
 0x31b   :  { %2385 = vmatprep.subr.bf16.mxu0 %v11486_v30  ;;  %2426 = vmatprep.subr.bf16.mxu1 %v11487_v31  ;;  %v10026_v30 = vld [vmem:[#allocation10 + $0x4] ss:$16 sps:$4 sm:$0xff]   ;;  %v10028_v31 = vld [vmem:[#allocation10 + $0xc] ss:$16 sps:$4 sm:$0xff]  }
 0x31e   :  { %2386 = vmatpush1.bf16.msra.mxu0 %v11488_v33  ;;  %2427 = vmatpush1.bf16.msra.mxu1 %v11489_v34  ;;  %v1688_v33 = vld [vmem:[#allocation2 + $0x20] ss:$16 sps:$4 sm:$0xff]   ;;  %v1689_v34 = vld [vmem:[#allocation2 + $0x28] ss:$16 sps:$4 sm:$0xff]  }
 0x31f   :  { %2387 = vmatprep.subr.bf16.mxu0 %v11490_v36  ;;  %2428 = vmatprep.subr.bf16.mxu1 %v11491_v37  ;;  %v1692_v36 = vunpack.c.l.bf16 %v1688_v33 }
 0x322   :  { %2388 = vmatpush1.bf16.msra.mxu0 %v11492_v38  ;;  %2429 = vmatpush1.bf16.msra.mxu1 %v11493_v39  ;;  %v1693_v39 = vunpack.c.l.bf16 %v1689_v34 }
 0x323   :  { %2389 = vmatprep.subr.bf16.mxu0 %v11494_v40  ;;  %2430 = vmatprep.subr.bf16.mxu1 %v11495_v41 }
 0x326   :  { %2390 = vmatpush1.bf16.msra.mxu0 %v11496_v42  ;;  %2431 = vmatpush1.bf16.msra.mxu1 %v11497_v43 }
 0x327   :  { %2391 = vmatprep.subr.bf16.mxu0 %v11498_v44  ;;  %2432 = vmatprep.subr.bf16.mxu1 %v11499_v45 }
 0x32a   :  { %2392 = vmatpush1.bf16.msra.mxu0 %v11500_v46  ;;  %2433 = vmatpush1.bf16.msra.mxu1 %v11501_v47 }
 0x32b   :  { %2393 = vmatprep.subr.bf16.mxu0 %v11502_v48  ;;  %2434 = vmatprep.subr.bf16.mxu1 %v11503_v49 }
 0x32e   :  { %2394 = vmatpush1.bf16.msra.mxu0 %v11504_v50  ;;  %2435 = vmatpush1.bf16.msra.mxu1 %v11505_v17  ;;  %v1695_v50 = vunpack.c.h.bf16 %v1689_v34 }
 0x32f   :  { %2395 = vmatprep.subr.bf16.mxu0 %v11506_v15  ;;  %2436 = vmatprep.subr.bf16.mxu1 %v11507_v51  ;;  %v1694_v15 = vunpack.c.h.bf16 %v1688_v33 }
 0x332   :  { %2396 = vmatpush1.bf16.msra.mxu0 %v11508_v52  ;;  %2437 = vmatpush1.bf16.msra.mxu1 %v11509_v53 }
 0x333   :  { %2712 = vmatprep.subr.bf16.mxu0 %v11510_v19  ;;  %2753 = vmatprep.subr.bf16.mxu1 %v11511_v55 }
 0x335   :  { %2398 = vmatmul.mubr.bf16.vlgmr.msra.gmra.mrb[32].mxu0 %v7483_v54  ;;  %2439 = vmatmul.mubr.bf16.vlgmr.msra.gmra.mrb[32].mxu1 %v7483_v54 }
 0x336   :  { %2713 = vmatpush1.bf16.msra.mxu0 %v11512_v16  ;;  %2754 = vmatpush1.bf16.msra.mxu1 %v11513_v56 }
 0x337   :  { %2714 = vmatprep.subr.bf16.mxu0 %v11514_v57  ;;  %2755 = vmatprep.subr.bf16.mxu1 %v11515_v58 }
 0x338   :  { %2744 = vmatprep.mubr.bf16.mxu0 %v11516_v59  ;;  %2785 = vmatprep.mubr.bf16.mxu1 %v11516_v59 }
 0x33a   :  { %2715 = vmatpush1.bf16.msra.mxu0 %v11517_v60  ;;  %2756 = vmatpush1.bf16.msra.mxu1 %v11518_v61 }
 0x33b   :  { %2716 = vmatprep.subr.bf16.mxu0 %v11519_v62  ;;  %2757 = vmatprep.subr.bf16.mxu1 %v11520_v63 }
 0x33e   :  { %2717 = vmatpush1.bf16.msra.mxu0 %v11521_v1  ;;  %2758 = vmatpush1.bf16.msra.mxu1 %v11522_v2 }
 0x33f   :  { %2718 = vmatprep.subr.bf16.mxu0 %v11523_v24  ;;  %2759 = vmatprep.subr.bf16.mxu1 %v11524_v4 }
 0x342   :  { %2719 = vmatpush1.bf16.msra.mxu0 %v11525_v35  ;;  %2760 = vmatpush1.bf16.msra.mxu1 %v11526_v11 }
 0x343   :  { %2720 = vmatprep.subr.bf16.mxu0 %v11527_v25  ;;  %2761 = vmatprep.subr.bf16.mxu1 %v11528_v7 }
 0x346   :  { %2721 = vmatpush1.bf16.msra.mxu0 %v11529_v10  ;;  %2762 = vmatpush1.bf16.msra.mxu1 %v11530_v29 }
 0x347   :  { %2722 = vmatprep.subr.bf16.mxu0 %v11531_v27  ;;  %2763 = vmatprep.subr.bf16.mxu1 %v11532_v28 }
 0x34a   :  { %2723 = vmatpush1.bf16.msra.mxu0 %v11533_v8  ;;  %2764 = vmatpush1.bf16.msra.mxu1 %v11534_v12 }
 0x34b   :  { %2724 = vmatprep.subr.bf16.mxu0 %v11535_v18  ;;  %2765 = vmatprep.subr.bf16.mxu1 %v11536_v9 }
 0x34e   :  { %2725 = vmatpush1.bf16.msra.mxu0 %v11537_v0  ;;  %2766 = vmatpush1.bf16.msra.mxu1 %v11538_v13 }
 0x34f   :  { %2726 = vmatprep.subr.bf16.mxu0 %v11539_v20  ;;  %2767 = vmatprep.subr.bf16.mxu1 %v11540_v22 }
 0x352   :  { %2727 = vmatpush1.bf16.msra.mxu0 %v11541_v14  ;;  %2768 = vmatpush1.bf16.msra.mxu1 %v11542_v21 }
 0x353   :  { %3189 = vmatprep.subr.bf16.mxu0 %v10026_v30  ;;  %3230 = vmatprep.subr.bf16.mxu1 %v10028_v31 }
 0x3c8   :  { %v1922_v37 = vpop.f32.mrb[28].mxu0  ;;  %v1963_v38 = vpop.f32.mrb[28].mxu1 }
 0x3c9   :  { %v1970_v40 = vadd.f32 %v1922_v37, %v1692_v36  ;;  %v1924_v41 = vpop.f32.mrb[29].mxu0  ;;  %v1965_v42 = vpop.f32.mrb[29].mxu1  ;;  %v1972_v52 = vadd.f32 %v1963_v38, %v1694_v15  ;;  %v10062_v15 = vld [vmem:[#allocation10 + $0x28] ss:$16 sps:$4 sm:$0xff]  }
 0x3ca   :  { %v1971_v43 = vadd.f32 %v1924_v41, %v1693_v39  ;;  %v1926_v44 = vpop.f32.mrb[30].mxu0  ;;  %v1967_v45 = vpop.f32.mrb[30].mxu1  ;;  %v1973_v17 = vadd.f32 %v1965_v42, %v1695_v50  ;;  %v10052_v50 = vld [vmem:[#allocation10 + $0x2c] ss:$16 sps:$4 sm:$0xff]  }
 0x3cb   :  { %v7549_v46 = vmul.f32 -1.442695, %v1970_v40  ;;  %v1927_v47 = vpop.f32.mrb[31].mxu0  ;;  %v1968_v48 = vpop.f32.mrb[31].mxu1 }
 0x3cc   :  { %v7550_v49 = vmul.f32 -1.442695, %v1971_v43  ;;  %v7551_v51 = vmul.f32 -1.442695, %v1973_v17  ;;  %v10046_v47 = vld [vmem:[#allocation10 + $0x8] ss:$16 sps:$4 sm:$0xff]  }
 0x3cd   :  { %8899 = vpow2.f32 %v7549_v46  ;;  %v10044_v46 = vld [vmem:[#allocation10] ss:$16 sps:$4 sm:$0xff]  }
 0x3ce   :  { %8901 = vpow2.f32 %v7550_v49  ;;  %v10050_v49 = vld [vmem:[#allocation10 + $0x24] ss:$16 sps:$4 sm:$0xff]   ;;  %v10060_v17 = vld [vmem:[#allocation10 + $0x20] ss:$16 sps:$4 sm:$0xff]  }
 0x3cf   :  { %8903 = vpow2.f32 %v7551_v51  ;;  %v10064_v51 = vld [vmem:[#allocation10 + $0x44] ss:$16 sps:$4 sm:$0xff]  }
 0x3d0   :  { %8905 = vtanh.f32 %v1972_v52  ;;  %v10066_v52 = vld [vmem:[#allocation10 + $0x4c] ss:$16 sps:$4 sm:$0xff]  }
 0x3d7   :  { %v8900_v53 = vpop.eup %8899 }
 0x3d8   :  { %v8902_v54 = vpop.eup %8901  ;;  %v2450_v19 = vadd.f32 1.0, %v8900_v53  ;;  %v10072_v53 = vld [vmem:[#allocation10 + $0x40] ss:$16 sps:$4 sm:$0xff]  }
 0x3d9   :  { %v2456_v55 = vadd.f32 1.0, %v8902_v54  ;;  %v8904_v16 = vpop.eup %8903  ;;  %v10074_v54 = vld [vmem:[#allocation10 + $0x48] ss:$16 sps:$4 sm:$0xff]  }
 0x3da   :  { %8907 = vrcp.f32 %v2450_v19  ;;  %v8906_v56 = vpop.eup %8905  ;;  %v2463_v61 = vadd.f32 1.0, %v8904_v16  ;;  %v10078_v19 = vld [vmem:[#allocation10 + $0x64] ss:$16 sps:$4 sm:$0xff]   ;;  %v10084_v16 = vld [vmem:[#allocation10 + $0x60] ss:$16 sps:$4 sm:$0xff]  }
 0x3db   :  { %8909 = vrcp.f32 %v2456_v55  ;;  %v10080_v55 = vld [vmem:[#allocation10 + $0x6c] ss:$16 sps:$4 sm:$0xff]  }
 0x3dc   :  { %8911 = vrcp.f32 %v2463_v61  ;;  %v10098_v61 = vld [vmem:[#allocation10 + $0x88] ss:$16 sps:$4 sm:$0xff]  }
 0x3e4   :  { %v8908_v57 = vpop.eup %8907 }
 0x3e5   :  { %v8910_v58 = vpop.eup %8909  ;;  %v2467_v60 = vmul.f32 %v8908_v57, %v8906_v56  ;;  %v10086_v56 = vld [vmem:[#allocation10 + $0x68] ss:$16 sps:$4 sm:$0xff]   ;;  %v10090_v57 = vld [vmem:[#allocation10 + $0x84] ss:$16 sps:$4 sm:$0xff]  }
 0x3e6   :  { %v2466_v62 = vmul.f32 %v8910_v58, %v9893_v23  ;;  %v8912_v1 = vpop.eup %8911  ;;  %v10092_v58 = vld [vmem:[#allocation10 + $0x8c] ss:$16 sps:$4 sm:$0xff]  }
 0x3e8   :  { %v10033_v63 = vadd.f32 %v2467_v60, %v2466_v62  ;;  %v10096_v60 = vld [vmem:[#allocation10 + $0x80] ss:$16 sps:$4 sm:$0xff]   ;;  %v10102_v62 = vld [vmem:[#allocation10 + $0xa4] ss:$16 sps:$4 sm:$0xff]  }
 0x3ea   :  { %8913 = vtanh.f32 %v10033_v63 }
 0x3f4   :  { %v8914_v2 = vpop.eup %8913 }
 0x3f5   :  { %v2470_v24 = vmul.f32 %v8914_v2, %v8912_v1  ;;  %v10104_v1 = vld [vmem:[#allocation10 + $0xac] ss:$16 sps:$4 sm:$0xff]   ;;  %v10108_v2 = vld [vmem:[#allocation10 + $0xa0] ss:$16 sps:$4 sm:$0xff]  }
 0x3f7   :  { %v2471_v4 = vpack.c.bf16 %v2470_v24, %v2470_v24  ;;  %v10110_v24 = vld [vmem:[#allocation10 + $0xa8] ss:$16 sps:$4 sm:$0xff]  }
 0x3f9   :  { %2472 = vst [vmem:[#allocation3] sm:$0xf] %v2471_v4  ;;  %v10114_v4 = vld [vmem:[#allocation10 + $0xc4] ss:$16 sps:$4 sm:$0xff]  }
 0x408   :  { %v2399_v35 = vpop.f32.mrb[32].mxu0  ;;  %v2440_v11 = vpop.f32.mrb[32].mxu1 }
 0x409   :  { %v2400_v25 = vadd.f32 %v2399_v35, %v9901_v32  ;;  %v2401_v7 = vpop.f32.mrb[33].mxu0  ;;  %v2442_v10 = vpop.f32.mrb[33].mxu1  ;;  %v2441_v13 = vadd.f32 %v2440_v11, %v9916_v26  ;;  %v10116_v35 = vld [vmem:[#allocation10 + $0xcc] ss:$16 sps:$4 sm:$0xff]   ;;  %v10120_v11 = vld [vmem:[#allocation10 + $0xc0] ss:$16 sps:$4 sm:$0xff]  }
 0x40a   :  { %v2402_v29 = vadd.f32 %v2401_v7, %v9905_v6  ;;  %v2403_v27 = vpop.f32.mrb[34].mxu0  ;;  %v2444_v23 = vpop.f32.mrb[34].mxu1  ;;  %v2443_v9 = vadd.f32 %v2442_v10, %v9911_v5  ;;  %v10126_v7 = vld [vmem:[#allocation10 + $0xe4] ss:$16 sps:$4 sm:$0xff]   ;;  %v10128_v10 = vld [vmem:[#allocation10 + $0xec] ss:$16 sps:$4 sm:$0xff]  }
 0x40b   :  { %v7552_v28 = vmul.f32 -1.442695, %v2400_v25  ;;  %v2404_v8 = vpop.f32.mrb[35].mxu0  ;;  %v2445_v12 = vpop.f32.mrb[35].mxu1  ;;  %v10122_v25 = vld [vmem:[#allocation10 + $0xc8] ss:$16 sps:$4 sm:$0xff]  }
 0x40c   :  { %v7553_v18 = vmul.f32 -1.442695, %v2402_v29  ;;  %v7554_v0 = vmul.f32 -1.442695, %v2443_v9  ;;  %v10132_v29 = vld [vmem:[#allocation10 + $0xe0] ss:$16 sps:$4 sm:$0xff]  }
 0x40d   :  { %8915 = vpow2.f32 %v7552_v28  ;;  %v10134_v27 = vld [vmem:[#allocation10 + $0xe8] ss:$16 sps:$4 sm:$0xff]   ;;  %v10138_v23 = vld [vmem:[#allocation10 + $0x104] ss:$16 sps:$4 sm:$0xff]   ;;  %v10140_v28 = vld [vmem:[#allocation10 + $0x10c] ss:$16 sps:$4 sm:$0xff]  }
 0x40e   :  { %8917 = vpow2.f32 %v7553_v18  ;;  %v10144_v8 = vld [vmem:[#allocation10 + $0x100] ss:$16 sps:$4 sm:$0xff]   ;;  %v10146_v12 = vld [vmem:[#allocation10 + $0x108] ss:$16 sps:$4 sm:$0xff]   ;;  %v10150_v18 = vld [vmem:[#allocation10 + $0x124] ss:$16 sps:$4 sm:$0xff]  }
 0x40f   :  { %8919 = vpow2.f32 %v7554_v0  ;;  %11543 = vst [vmem:[#allocation22_spill] sm:$0xff] %v10150_v18  ;;  %v10152_v9 = vld [vmem:[#allocation10 + $0x12c] ss:$16 sps:$4 sm:$0xff]   ;;  %v10156_v0 = vld [vmem:[#allocation10 + $0x120] ss:$16 sps:$4 sm:$0xff]  }
 0x410   :  { %8921 = vtanh.f32 %v2441_v13  ;;  %11544 = vst [vmem:[#allocation23_spill] sm:$0xff] %v10152_v9  ;;  %11545 = vst [vmem:[#allocation24_spill] sm:$0xff] %v10156_v0  ;;  %v10158_v13 = vld [vmem:[#allocation10 + $0x128] ss:$16 sps:$4 sm:$0xff]  }
 0x411   :  { %11546 = vst [vmem:[#allocation25_spill] sm:$0xff] %v10158_v13 }
 0x417   :  { %v8916_v20 = vpop.eup %8915 }
 0x418   :  { %v8918_v22 = vpop.eup %8917  ;;  %v2476_v14 = vadd.f32 1.0, %v8916_v20  ;;  %v10162_v20 = vld [vmem:[#allocation10 + $0x144] ss:$16 sps:$4 sm:$0xff]  }
 0x419   :  { %v2482_v21 = vadd.f32 1.0, %v8918_v22  ;;  %v8920_v33 = vpop.eup %8919  ;;  %11547 = vst [vmem:[#allocation26_spill] sm:$0xff] %v10162_v20  ;;  %v10164_v22 = vld [vmem:[#allocation10 + $0x14c] ss:$16 sps:$4 sm:$0xff]  }
 0x41a   :  { %8923 = vrcp.f32 %v2476_v14  ;;  %v8922_v34 = vpop.eup %8921  ;;  %v2489_v39 = vadd.f32 1.0, %v8920_v33  ;;  %11548 = vst [vmem:[#allocation27_spill] sm:$0xff] %v10164_v22  ;;  %v10168_v14 = vld [vmem:[#allocation10 + $0x140] ss:$16 sps:$4 sm:$0xff]   ;;  %v10174_v33 = vld [vmem:[#allocation10 + $0x164] ss:$16 sps:$4 sm:$0xff]  }
 0x41b   :  { %8925 = vrcp.f32 %v2482_v21  ;;  %11549 = vst [vmem:[#allocation28_spill] sm:$0xff] %v10168_v14  ;;  %v10170_v21 = vld [vmem:[#allocation10 + $0x148] ss:$16 sps:$4 sm:$0xff]   ;;  %11551 = vst [vmem:[#allocation30_spill] sm:$0xff] %v10174_v33 }
 0x41c   :  { %8927 = vrcp.f32 %v2489_v39  ;;  %11550 = vst [vmem:[#allocation29_spill] sm:$0xff] %v10170_v21  ;;  %v10188_v39 = vld [vmem:[#allocation10 + $0x18c] ss:$16 sps:$4 sm:$0xff]  }
 0x41d   :  { %11556 = vst [vmem:[#allocation35_spill] sm:$0xff] %v10188_v39 }
 0x424   :  { %v8924_v36 = vpop.eup %8923 }
 0x425   :  { %v8926_v37 = vpop.eup %8925  ;;  %v2493_v38 = vmul.f32 %v8924_v36, %v8922_v34  ;;  %v10176_v34 = vld [vmem:[#allocation10 + $0x16c] ss:$16 sps:$4 sm:$0xff]   ;;  %v10180_v36 = vld [vmem:[#allocation10 + $0x160] ss:$16 sps:$4 sm:$0xff]  }
 0x426   :  { %v2492_v40 = vmul.f32 %v8926_v37, %v9919_v3  ;;  %v8928_v42 = vpop.eup %8927  ;;  %11552 = vst [vmem:[#allocation31_spill] sm:$0xff] %v10176_v34  ;;  %11553 = vst [vmem:[#allocation32_spill] sm:$0xff] %v10180_v36  ;;  %v10182_v37 = vld [vmem:[#allocation10 + $0x168] ss:$16 sps:$4 sm:$0xff]  }
 0x427   :  { %11554 = vst [vmem:[#allocation33_spill] sm:$0xff] %v10182_v37 }
 0x428   :  { %v10041_v41 = vadd.f32 %v2493_v38, %v2492_v40  ;;  %v10186_v38 = vld [vmem:[#allocation10 + $0x184] ss:$16 sps:$4 sm:$0xff]   ;;  %v10192_v40 = vld [vmem:[#allocation10 + $0x180] ss:$16 sps:$4 sm:$0xff]  }
 0x429   :  { %11555 = vst [vmem:[#allocation34_spill] sm:$0xff] %v10186_v38  ;;  %11557 = vst [vmem:[#allocation36_spill] sm:$0xff] %v10192_v40 }
 0x42a   :  { %8929 = vtanh.f32 %v10041_v41 }
 0x434   :  { %v8930_v43 = vpop.eup %8929 }
 0x435   :  { %v2496_v44 = vmul.f32 %v8930_v43, %v8928_v42  ;;  %v10194_v42 = vld [vmem:[#allocation10 + $0x188] ss:$16 sps:$4 sm:$0xff]   ;;  %v10198_v43 = vld [vmem:[#allocation10 + $0x1a4] ss:$16 sps:$4 sm:$0xff]  }
 0x436   :  { %11558 = vst [vmem:[#allocation37_spill] sm:$0xff] %v10194_v42  ;;  %11559 = vst [vmem:[#allocation38_spill] sm:$0xff] %v10198_v43 }
 0x437   :  { %v2497_v45 = vpack.c.bf16 %v2496_v44, %v2496_v44  ;;  %v10200_v44 = vld [vmem:[#allocation10 + $0x1ac] ss:$16 sps:$4 sm:$0xff]  }
 0x438   :  { %11560 = vst [vmem:[#allocation39_spill] sm:$0xff] %v10200_v44 }
 0x439   :  { %2498 = vst [vmem:[#allocation3 + $0x4] sm:$0xf] %v2497_v45  ;;  %v10204_v45 = vld [vmem:[#allocation10 + $0x1a0] ss:$16 sps:$4 sm:$0xff]  }
 0x43a   :  { %11561 = vst [vmem:[#allocation40_spill] sm:$0xff] %v10204_v45 }
 0x440   :  { %v10048_v48 = vld [vmem:[#allocation3] sm:$0xff] }
 0x441   :  { %2745 = vmatmul.mubr.bf16.vlgmr.msra.gmra.mrb[36].mxu0 %v10048_v48  ;;  %2786 = vmatmul.mubr.bf16.vlgmr.msra.gmra.mrb[36].mxu1 %v10048_v48  ;;  %v7588_v3 = vcombine.high %v10048_v48, %v10048_v48 }
 0x442   :  { %3190 = vmatpush1.bf16.msra.mxu0 %v10044_v46  ;;  %3231 = vmatpush1.bf16.msra.mxu1 %v10046_v47 }
 0x443   :  { %3221 = vmatprep.mubr.bf16.mxu0 %v7588_v3  ;;  %3262 = vmatprep.mubr.bf16.mxu1 %v7588_v3  ;;  %v10206_v3 = vld [vmem:[#allocation10 + $0x1a8] ss:$16 sps:$4 sm:$0xff]  }
 0x444   :  { %3191 = vmatprep.subr.bf16.mxu0 %v10050_v49  ;;  %3232 = vmatprep.subr.bf16.mxu1 %v10052_v50  ;;  %11562 = vst [vmem:[#allocation41_spill] sm:$0xff] %v10206_v3 }
 0x446   :  { %3192 = vmatpush1.bf16.msra.mxu0 %v10060_v17  ;;  %3233 = vmatpush1.bf16.msra.mxu1 %v10062_v15 }
 0x447   :  { %3193 = vmatprep.subr.bf16.mxu0 %v10064_v51  ;;  %3234 = vmatprep.subr.bf16.mxu1 %v10066_v52 }
 0x44a   :  { %3194 = vmatpush1.bf16.msra.mxu0 %v10072_v53  ;;  %3235 = vmatpush1.bf16.msra.mxu1 %v10074_v54 }
 0x44b   :  { %3195 = vmatprep.subr.bf16.mxu0 %v10078_v19  ;;  %3236 = vmatprep.subr.bf16.mxu1 %v10080_v55 }
 0x44e   :  { %3196 = vmatpush1.bf16.msra.mxu0 %v10084_v16  ;;  %3237 = vmatpush1.bf16.msra.mxu1 %v10086_v56 }
 0x44f   :  { %3197 = vmatprep.subr.bf16.mxu0 %v10090_v57  ;;  %3238 = vmatprep.subr.bf16.mxu1 %v10092_v58 }
 0x452   :  { %3198 = vmatpush1.bf16.msra.mxu0 %v10096_v60  ;;  %3239 = vmatpush1.bf16.msra.mxu1 %v10098_v61 }
 0x453   :  { %3199 = vmatprep.subr.bf16.mxu0 %v10102_v62  ;;  %3240 = vmatprep.subr.bf16.mxu1 %v10104_v1 }
 0x456   :  { %3200 = vmatpush1.bf16.msra.mxu0 %v10108_v2  ;;  %3241 = vmatpush1.bf16.msra.mxu1 %v10110_v24 }
 0x457   :  { %3201 = vmatprep.subr.bf16.mxu0 %v10114_v4  ;;  %3242 = vmatprep.subr.bf16.mxu1 %v10116_v35 }
 0x45a   :  { %3202 = vmatpush1.bf16.msra.mxu0 %v10120_v11  ;;  %3243 = vmatpush1.bf16.msra.mxu1 %v10122_v25 }
 0x45b   :  { %3203 = vmatprep.subr.bf16.mxu0 %v10126_v7  ;;  %3244 = vmatprep.subr.bf16.mxu1 %v10128_v10 }
 0x45e   :  { %3204 = vmatpush1.bf16.msra.mxu0 %v10132_v29  ;;  %3245 = vmatpush1.bf16.msra.mxu1 %v10134_v27 }
 0x45f   :  { %3205 = vmatprep.subr.bf16.mxu0 %v10138_v23  ;;  %3246 = vmatprep.subr.bf16.mxu1 %v10140_v28 }
 0x462   :  { %3206 = vmatpush1.bf16.msra.mxu0 %v10144_v8  ;;  %3247 = vmatpush1.bf16.msra.mxu1 %v10146_v12 }
 0x463   :  { %3207 = vmatprep.subr.bf16.mxu0 %v10150_v18  ;;  %3248 = vmatprep.subr.bf16.mxu1 %v10152_v9 }
 0x466   :  { %3208 = vmatpush1.bf16.msra.mxu0 %v10156_v0  ;;  %3249 = vmatpush1.bf16.msra.mxu1 %v10158_v13 }
 0x467   :  { %3209 = vmatprep.subr.bf16.mxu0 %v10162_v20  ;;  %3250 = vmatprep.subr.bf16.mxu1 %v10164_v22 }
 0x46a   :  { %3210 = vmatpush1.bf16.msra.mxu0 %v10168_v14  ;;  %3251 = vmatpush1.bf16.msra.mxu1 %v10170_v21 }
 0x46b   :  { %3211 = vmatprep.subr.bf16.mxu0 %v10174_v33  ;;  %3252 = vmatprep.subr.bf16.mxu1 %v10176_v34 }
 0x46e   :  { %3212 = vmatpush1.bf16.msra.mxu0 %v10180_v36  ;;  %3253 = vmatpush1.bf16.msra.mxu1 %v10182_v37  ;;  %v10210_v37 = vld [vmem:[#allocation10 + $0x1c4] ss:$16 sps:$4 sm:$0xff]  }
 0x46f   :  { %3213 = vmatprep.subr.bf16.mxu0 %v10186_v38  ;;  %3254 = vmatprep.subr.bf16.mxu1 %v10188_v39  ;;  %11563 = vst [vmem:[#allocation42_spill] sm:$0xff] %v10210_v37  ;;  %v10212_v38 = vld [vmem:[#allocation10 + $0x1cc] ss:$16 sps:$4 sm:$0xff]   ;;  %v10216_v39 = vld [vmem:[#allocation10 + $0x1c0] ss:$16 sps:$4 sm:$0xff]  }
 0x470   :  { %11564 = vst [vmem:[#allocation43_spill] sm:$0xff] %v10212_v38  ;;  %11565 = vst [vmem:[#allocation44_spill] sm:$0xff] %v10216_v39 }
 0x472   :  { %3214 = vmatpush1.bf16.msra.mxu0 %v10192_v40  ;;  %3255 = vmatpush1.bf16.msra.mxu1 %v10194_v42  ;;  %v10218_v40 = vld [vmem:[#allocation10 + $0x1c8] ss:$16 sps:$4 sm:$0xff]   ;;  %v10222_v42 = vld [vmem:[#allocation10 + $0x1e4] ss:$16 sps:$4 sm:$0xff]  }
 0x473   :  { %3215 = vmatprep.subr.bf16.mxu0 %v10198_v43  ;;  %3256 = vmatprep.subr.bf16.mxu1 %v10200_v44  ;;  %11566 = vst [vmem:[#allocation45_spill] sm:$0xff] %v10218_v40  ;;  %11567 = vst [vmem:[#allocation46_spill] sm:$0xff] %v10222_v42  ;;  %v10224_v43 = vld [vmem:[#allocation10 + $0x1ec] ss:$16 sps:$4 sm:$0xff]   ;;  %v10228_v44 = vld [vmem:[#allocation10 + $0x1e0] ss:$16 sps:$4 sm:$0xff]  }
 0x474   :  { %11568 = vst [vmem:[#allocation47_spill] sm:$0xff] %v10224_v43  ;;  %11569 = vst [vmem:[#allocation48_spill] sm:$0xff] %v10228_v44 }
 0x476   :  { %3216 = vmatpush1.bf16.msra.mxu0 %v10204_v45  ;;  %3257 = vmatpush1.bf16.msra.mxu1 %v10206_v3  ;;  %v10230_v45 = vld [vmem:[#allocation10 + $0x1e8] ss:$16 sps:$4 sm:$0xff]  }
 0x477   :  { %3217 = vmatprep.subr.bf16.mxu0 %v10210_v37  ;;  %3258 = vmatprep.subr.bf16.mxu1 %v10212_v38  ;;  %11570 = vst [vmem:[#allocation49_spill] sm:$0xff] %v10230_v45  ;;  %v7587_v38 = vcombine.low %v10048_v48, %v10048_v48  ;;  %v10252_v48 = vld [vmem:[#allocation9 + $0x24] ss:$16 sps:$4 sm:$0xff]  }
 0x478   :  { %11575 = vst [vmem:[#allocation54_spill] sm:$0xff] %v10252_v48  ;;  %v2503_v37 = vld [vmem:[#allocation2 + $0x38] sm:$0xf0] }
 0x47a   :  { %3218 = vmatpush1.bf16.msra.mxu0 %v10216_v39  ;;  %3259 = vmatpush1.bf16.msra.mxu1 %v10218_v40  ;;  %v10240_v40 = vld [vmem:[#allocation9 + $0x4] ss:$16 sps:$4 sm:$0xff]   ;;  %v10242_v39 = vld [vmem:[#allocation9 + $0xc] ss:$16 sps:$4 sm:$0xff]  }
 0x47b   :  { %3219 = vmatprep.subr.bf16.mxu0 %v10222_v42  ;;  %3260 = vmatprep.subr.bf16.mxu1 %v10224_v43  ;;  %11571 = vst [vmem:[#allocation50_spill] sm:$0xff] %v10240_v40  ;;  %11572 = vst [vmem:[#allocation51_spill] sm:$0xff] %v10242_v39  ;;  %v10244_v42 = vld [vmem:[#allocation9] ss:$16 sps:$4 sm:$0xff]   ;;  %v10246_v43 = vld [vmem:[#allocation9 + $0x8] ss:$16 sps:$4 sm:$0xff]  }
 0x47c   :  { %11573 = vst [vmem:[#allocation52_spill] sm:$0xff] %v10244_v42  ;;  %11574 = vst [vmem:[#allocation53_spill] sm:$0xff] %v10246_v43 }
 0x47e   :  { %3220 = vmatpush1.bf16.msra.mxu0 %v10228_v44  ;;  %3261 = vmatpush1.bf16.msra.mxu1 %v10230_v45  ;;  %v10258_v45 = vld [vmem:[#allocation9 + $0x28] ss:$16 sps:$4 sm:$0xff]   ;;  %v10322_v44 = vld [vmem:[#allocation9 + $0xe4] ss:$16 sps:$4 sm:$0xff]  }
 0x47f   :  { %3524 = vmatprep.subr.bf16.mxu0 %v10240_v40  ;;  %3565 = vmatprep.subr.bf16.mxu1 %v10242_v39  ;;  %11578 = vst [vmem:[#allocation57_spill] sm:$0xff] %v10258_v45  ;;  %v10264_v39 = vld [vmem:[#allocation9 + $0x44] ss:$16 sps:$4 sm:$0xff]   ;;  %v10270_v40 = vld [vmem:[#allocation9 + $0x48] ss:$16 sps:$4 sm:$0xff]   ;;  %11599 = vst [vmem:[#allocation82_spill] sm:$0xff] %v10322_v44 }
 0x480   :  { %11579 = vst [vmem:[#allocation58_spill] sm:$0xff] %v10264_v39  ;;  %11582 = vst [vmem:[#allocation61_spill] sm:$0xff] %v10270_v40 }
 0x481   :  { %3222 = vmatmul.mubr.bf16.vlgmr.msra.gmra.mrb[40].mxu0 %v7587_v38  ;;  %3263 = vmatmul.mubr.bf16.vlgmr.msra.gmra.mrb[40].mxu1 %v7587_v38  ;;  %v10254_v38 = vld [vmem:[#allocation9 + $0x2c] ss:$16 sps:$4 sm:$0xff]  }
 0x482   :  { %3556 = vmatprep.mubr.bf16.mxu0 %v11516_v59  ;;  %3597 = vmatprep.mubr.bf16.mxu1 %v11516_v59  ;;  %11576 = vst [vmem:[#allocation55_spill] sm:$0xff] %v10254_v38  ;;  %v10256_v59 = vld [vmem:[#allocation9 + $0x20] ss:$16 sps:$4 sm:$0xff]  }
 0x483   :  { %3525 = vmatpush1.bf16.msra.mxu0 %v10244_v42  ;;  %3566 = vmatpush1.bf16.msra.mxu1 %v10246_v43  ;;  %11577 = vst [vmem:[#allocation56_spill] sm:$0xff] %v10256_v59  ;;  %v10266_v42 = vld [vmem:[#allocation9 + $0x4c] ss:$16 sps:$4 sm:$0xff]   ;;  %v10268_v43 = vld [vmem:[#allocation9 + $0x40] ss:$16 sps:$4 sm:$0xff]  }
 0x484   :  { %3526 = vmatprep.subr.bf16.mxu0 %v10252_v48  ;;  %3567 = vmatprep.subr.bf16.mxu1 %v10254_v38  ;;  %11580 = vst [vmem:[#allocation59_spill] sm:$0xff] %v10266_v42  ;;  %11581 = vst [vmem:[#allocation60_spill] sm:$0xff] %v10268_v43  ;;  %v10276_v38 = vld [vmem:[#allocation9 + $0x64] ss:$16 sps:$4 sm:$0xff]   ;;  %v10282_v48 = vld [vmem:[#allocation9 + $0x68] ss:$16 sps:$4 sm:$0xff]  }
 0x485   :  { %11583 = vst [vmem:[#allocation62_spill] sm:$0xff] %v10276_v38  ;;  %11586 = vst [vmem:[#allocation65_spill] sm:$0xff] %v10282_v48 }
 0x487   :  { %3527 = vmatpush1.bf16.msra.mxu0 %v10256_v59  ;;  %3568 = vmatpush1.bf16.msra.mxu1 %v10258_v45  ;;  %v10278_v59 = vld [vmem:[#allocation9 + $0x6c] ss:$16 sps:$4 sm:$0xff]   ;;  %v10280_v45 = vld [vmem:[#allocation9 + $0x60] ss:$16 sps:$4 sm:$0xff]  }
 0x488   :  { %3528 = vmatprep.subr.bf16.mxu0 %v10264_v39  ;;  %3569 = vmatprep.subr.bf16.mxu1 %v10266_v42  ;;  %11584 = vst [vmem:[#allocation63_spill] sm:$0xff] %v10278_v59  ;;  %11585 = vst [vmem:[#allocation64_spill] sm:$0xff] %v10280_v45  ;;  %v10288_v42 = vld [vmem:[#allocation9 + $0x84] ss:$16 sps:$4 sm:$0xff]   ;;  %v10294_v39 = vld [vmem:[#allocation9 + $0x88] ss:$16 sps:$4 sm:$0xff]  }
 0x489   :  { %11587 = vst [vmem:[#allocation66_spill] sm:$0xff] %v10288_v42  ;;  %11590 = vst [vmem:[#allocation69_spill] sm:$0xff] %v10294_v39 }
 0x48b   :  { %3529 = vmatpush1.bf16.msra.mxu0 %v10268_v43  ;;  %3570 = vmatpush1.bf16.msra.mxu1 %v10270_v40  ;;  %v10290_v43 = vld [vmem:[#allocation9 + $0x8c] ss:$16 sps:$4 sm:$0xff]   ;;  %v10292_v40 = vld [vmem:[#allocation9 + $0x80] ss:$16 sps:$4 sm:$0xff]  }
 0x48c   :  { %3530 = vmatprep.subr.bf16.mxu0 %v10276_v38  ;;  %3571 = vmatprep.subr.bf16.mxu1 %v10278_v59  ;;  %11588 = vst [vmem:[#allocation67_spill] sm:$0xff] %v10290_v43  ;;  %11589 = vst [vmem:[#allocation68_spill] sm:$0xff] %v10292_v40  ;;  %v10300_v59 = vld [vmem:[#allocation9 + $0xa4] ss:$16 sps:$4 sm:$0xff]   ;;  %v10306_v38 = vld [vmem:[#allocation9 + $0xa8] ss:$16 sps:$4 sm:$0xff]  }
 0x48d   :  { %11591 = vst [vmem:[#allocation70_spill] sm:$0xff] %v10300_v59  ;;  %11594 = vst [vmem:[#allocation73_spill] sm:$0xff] %v10306_v38 }
 0x48f   :  { %3531 = vmatpush1.bf16.msra.mxu0 %v10280_v45  ;;  %3572 = vmatpush1.bf16.msra.mxu1 %v10282_v48  ;;  %v10302_v45 = vld [vmem:[#allocation9 + $0xac] ss:$16 sps:$4 sm:$0xff]   ;;  %v10304_v48 = vld [vmem:[#allocation9 + $0xa0] ss:$16 sps:$4 sm:$0xff]  }
 0x490   :  { %3532 = vmatprep.subr.bf16.mxu0 %v10288_v42  ;;  %3573 = vmatprep.subr.bf16.mxu1 %v10290_v43  ;;  %11592 = vst [vmem:[#allocation71_spill] sm:$0xff] %v10302_v45  ;;  %11593 = vst [vmem:[#allocation72_spill] sm:$0xff] %v10304_v48  ;;  %v10312_v43 = vld [vmem:[#allocation9 + $0xc4] ss:$16 sps:$4 sm:$0xff]   ;;  %v10318_v42 = vld [vmem:[#allocation9 + $0xc8] ss:$16 sps:$4 sm:$0xff]  }
 0x491   :  { %11595 = vst [vmem:[#allocation74_spill] sm:$0xff] %v10312_v43  ;;  %11598 = vst [vmem:[#allocation77_spill] sm:$0xff] %v10318_v42 }
 0x493   :  { %3533 = vmatpush1.bf16.msra.mxu0 %v10292_v40  ;;  %3574 = vmatpush1.bf16.msra.mxu1 %v10294_v39  ;;  %v10314_v40 = vld [vmem:[#allocation9 + $0xcc] ss:$16 sps:$4 sm:$0xff]   ;;  %v10316_v39 = vld [vmem:[#allocation9 + $0xc0] ss:$16 sps:$4 sm:$0xff]  }
 0x494   :  { %3534 = vmatprep.subr.bf16.mxu0 %v10300_v59  ;;  %3575 = vmatprep.subr.bf16.mxu1 %v10302_v45  ;;  %11596 = vst [vmem:[#allocation75_spill] sm:$0xff] %v10314_v40  ;;  %11597 = vst [vmem:[#allocation76_spill] sm:$0xff] %v10316_v39  ;;  %v10330_v45 = vld [vmem:[#allocation9 + $0xec] ss:$16 sps:$4 sm:$0xff]  }
 0x495   :  { %11602 = vst [vmem:[#allocation85_spill] sm:$0xff] %v10330_v45 }
 0x497   :  { %3535 = vmatpush1.bf16.msra.mxu0 %v10304_v48  ;;  %3576 = vmatpush1.bf16.msra.mxu1 %v10306_v38  ;;  %v10326_v48 = vld [vmem:[#allocation9 + $0xe0] ss:$16 sps:$4 sm:$0xff]   ;;  %v10328_v38 = vld [vmem:[#allocation9 + $0xe8] ss:$16 sps:$4 sm:$0xff]  }
 0x498   :  { %3536 = vmatprep.subr.bf16.mxu0 %v10312_v43  ;;  %3577 = vmatprep.subr.bf16.mxu1 %v10314_v40  ;;  %11600 = vst [vmem:[#allocation83_spill] sm:$0xff] %v10326_v48  ;;  %11601 = vst [vmem:[#allocation84_spill] sm:$0xff] %v10328_v38 }
 0x49b   :  { %3537 = vmatpush1.bf16.msra.mxu0 %v10316_v39  ;;  %3578 = vmatpush1.bf16.msra.mxu1 %v10318_v42  ;;  %v2500_v39 = vld [vmem:[#allocation2 + $0x20] sm:$0xf0]  ;;  %v2501_v42 = vld [vmem:[#allocation2 + $0x28] sm:$0xf0] }
 0x49c   :  { %3538 = vmatprep.subr.bf16.mxu0 %v10322_v44  ;;  %3579 = vmatprep.subr.bf16.mxu1 %v10330_v45  ;;  %v2508_v40 = vrot.slane %v2500_v39, 4  ;;  %v2509_v43 = vrot.slane %v2501_v42, 4 }
 0x49e   :  { %v2516_v59 = vunpack.c.l.bf16 %v2508_v40  ;;  %v2517_v34 = vunpack.c.l.bf16 %v2509_v43 }
 0x49f   :  { %3539 = vmatpush1.bf16.msra.mxu0 %v10326_v48  ;;  %3580 = vmatpush1.bf16.msra.mxu1 %v10328_v38  ;;  %v2511_v48 = vrot.slane %v2503_v37, 4 }
 0x4a0   :  { %4001 = vmatprep.subr.bf16.mxu0 %v10026_v30  ;;  %4042 = vmatprep.subr.bf16.mxu1 %v10028_v31  ;;  %v2502_v31 = vld [vmem:[#allocation2 + $0x30] sm:$0xf0] }
 0x4a1   :  { %v2519_v39 = vunpack.c.l.bf16 %v2511_v48  ;;  %v2510_v40 = vrot.slane %v2502_v31, 4 }
 0x4a3   :  { %v2518_v0 = vunpack.c.l.bf16 %v2510_v40 }
 0x514   :  { %v2746_v3 = vpop.f32.mrb[36].mxu0  ;;  %v2787_v36 = vpop.f32.mrb[36].mxu1 }
 0x515   :  { %v2794_v44 = vadd.f32 %v2746_v3, %v2516_v59  ;;  %v2748_v33 = vpop.f32.mrb[37].mxu0  ;;  %v2789_v45 = vpop.f32.mrb[37].mxu1  ;;  %v2796_v43 = vadd.f32 %v2787_v36, %v2518_v0 }
 0x516   :  { %v2795_v21 = vadd.f32 %v2748_v33, %v2517_v34  ;;  %v2750_v14 = vpop.f32.mrb[38].mxu0  ;;  %v2791_v38 = vpop.f32.mrb[38].mxu1  ;;  %v2797_v42 = vadd.f32 %v2789_v45, %v2519_v39 }
 0x517   :  { %v7653_v22 = vmul.f32 -1.442695, %v2794_v44  ;;  %v2751_v30 = vpop.f32.mrb[39].mxu0  ;;  %v2792_v20 = vpop.f32.mrb[39].mxu1 }
 0x518   :  { %v7654_v13 = vmul.f32 -1.442695, %v2795_v21  ;;  %v7655_v9 = vmul.f32 -1.442695, %v2797_v42 }
 0x519   :  { %8931 = vpow2.f32 %v7653_v22 }
 0x51a   :  { %8933 = vpow2.f32 %v7654_v13 }
 0x51b   :  { %8935 = vpow2.f32 %v7655_v9 }
 0x51c   :  { %8937 = vtanh.f32 %v2796_v43 }
 0x523   :  { %v8932_v59 = vpop.eup %8931 }
 0x524   :  { %v8934_v3 = vpop.eup %8933  ;;  %v3274_v18 = vadd.f32 1.0, %v8932_v59 }
 0x525   :  { %v3280_v14 = vadd.f32 1.0, %v8934_v3  ;;  %v8936_v33 = vpop.eup %8935 }
 0x526   :  { %8939 = vrcp.f32 %v3274_v18  ;;  %v8938_v20 = vpop.eup %8937  ;;  %v3287_v13 = vadd.f32 1.0, %v8936_v33 }
 0x527   :  { %8941 = vrcp.f32 %v3280_v14 }
 0x528   :  { %8943 = vrcp.f32 %v3287_v13 }
 0x530   :  { %v8940_v34 = vpop.eup %8939 }
 0x531   :  { %v8942_v21 = vpop.eup %8941  ;;  %v3291_v22 = vmul.f32 %v8940_v34, %v8938_v20 }
 0x532   :  { %v3290_v37 = vmul.f32 %v8942_v21, %v10033_v63  ;;  %v8944_v0 = vpop.eup %8943 }
 0x534   :  { %v10339_v44 = vadd.f32 %v3291_v22, %v3290_v37 }
 0x536   :  { %8945 = vtanh.f32 %v10339_v44 }
 0x540   :  { %v8946_v36 = vpop.eup %8945 }
 0x541   :  { %v3294_v9 = vmul.f32 %v8946_v36, %v8944_v0 }
 0x543   :  { %v3295_v45 = vpack.c.bf16 %v3294_v9, %v3294_v9 }
 0x545   :  { %3296 = vst [vmem:[#allocation3] sm:$0xf] %v3295_v45 }
 0x554   :  { %v3223_v18 = vpop.f32.mrb[40].mxu0  ;;  %v3264_v48 = vpop.f32.mrb[40].mxu1 }
 0x555   :  { %v3224_v38 = vadd.f32 %v3223_v18, %v9901_v32  ;;  %v3225_v30 = vpop.f32.mrb[41].mxu0  ;;  %v3266_v31 = vpop.f32.mrb[41].mxu1  ;;  %v3265_v20 = vadd.f32 %v3264_v48, %v9916_v26 }
 0x556   :  { %v3226_v39 = vadd.f32 %v3225_v30, %v9905_v6  ;;  %v3227_v40 = vpop.f32.mrb[42].mxu0  ;;  %v3268_v63 = vpop.f32.mrb[42].mxu1  ;;  %v3267_v14 = vadd.f32 %v3266_v31, %v9911_v5 }
 0x557   :  { %v7656_v42 = vmul.f32 -1.442695, %v3224_v38  ;;  %v3228_v43 = vpop.f32.mrb[43].mxu0  ;;  %v3269_v59 = vpop.f32.mrb[43].mxu1 }
 0x558   :  { %v7657_v3 = vmul.f32 -1.442695, %v3226_v39  ;;  %v7658_v33 = vmul.f32 -1.442695, %v3267_v14  ;;  %v11637_v43 = vmov 0   ;;  %v11638_v59 = vld [vmem:[#allocation56_spill] sm:$0xff] }
 0x559   :  { %8947 = vpow2.f32 %v7656_v42  ;;  %v11640_v14 = vld [vmem:[#allocation58_spill] sm:$0xff] }
 0x55a   :  { %8949 = vpow2.f32 %v7657_v3  ;;  %v11639_v3 = vld [vmem:[#allocation57_spill] sm:$0xff] }
 0x55b   :  { %8951 = vpow2.f32 %v7658_v33  ;;  %v11641_v33 = vld [vmem:[#allocation59_spill] sm:$0xff] }
 0x55c   :  { %8953 = vtanh.f32 %v3265_v20  ;;  %v11642_v20 = vld [vmem:[#allocation60_spill] sm:$0xff] }
 0x563   :  { %v8948_v34 = vpop.eup %8947 }
 0x564   :  { %v8950_v21 = vpop.eup %8949  ;;  %v3300_v22 = vadd.f32 1.0, %v8948_v34  ;;  %v11643_v34 = vld [vmem:[#allocation61_spill] sm:$0xff] }
 0x565   :  { %v3306_v13 = vadd.f32 1.0, %v8950_v21  ;;  %v8952_v37 = vpop.eup %8951  ;;  %v11644_v21 = vld [vmem:[#allocation62_spill] sm:$0xff] }
 0x566   :  { %8955 = vrcp.f32 %v3300_v22  ;;  %v8954_v0 = vpop.eup %8953  ;;  %v3313_v18 = vadd.f32 1.0, %v8952_v37  ;;  %v11645_v22 = vld [vmem:[#allocation63_spill] sm:$0xff]  ;;  %v11647_v37 = vld [vmem:[#allocation65_spill] sm:$0xff] }
 0x567   :  { %8957 = vrcp.f32 %v3306_v13  ;;  %v11646_v13 = vld [vmem:[#allocation64_spill] sm:$0xff] }
 0x568   :  { %8959 = vrcp.f32 %v3313_v18  ;;  %v11652_v18 = vld [vmem:[#allocation70_spill] sm:$0xff] }
 0x570   :  { %v8956_v36 = vpop.eup %8955 }
 0x571   :  { %v8958_v9 = vpop.eup %8957  ;;  %v3317_v45 = vmul.f32 %v8956_v36, %v8954_v0  ;;  %v11648_v0 = vld [vmem:[#allocation66_spill] sm:$0xff]  ;;  %v11649_v36 = vld [vmem:[#allocation67_spill] sm:$0xff] }
 0x572   :  { %v3316_v38 = vmul.f32 %v8958_v9, %v10041_v41  ;;  %v8960_v48 = vpop.eup %8959  ;;  %v11603_v41 = vld [vmem:[#allocation22_spill] sm:$0xff]  ;;  %v11650_v9 = vld [vmem:[#allocation68_spill] sm:$0xff] }
 0x574   :  { %v10347_v30 = vadd.f32 %v3317_v45, %v3316_v38  ;;  %v11651_v45 = vld [vmem:[#allocation69_spill] sm:$0xff]  ;;  %v11653_v38 = vld [vmem:[#allocation71_spill] sm:$0xff] }
 0x576   :  { %8961 = vtanh.f32 %v10347_v30 }
 0x580   :  { %v8962_v31 = vpop.eup %8961 }
 0x581   :  { %v3320_v39 = vmul.f32 %v8962_v31, %v8960_v48  ;;  %v11654_v48 = vld [vmem:[#allocation72_spill] sm:$0xff]  ;;  %v11655_v31 = vld [vmem:[#allocation73_spill] sm:$0xff] }
 0x583   :  { %v3321_v40 = vpack.c.bf16 %v3320_v39, %v3320_v39  ;;  %v11656_v39 = vld [vmem:[#allocation74_spill] sm:$0xff] }
 0x585   :  { %3322 = vst [vmem:[#allocation3 + $0x4] sm:$0xf] %v3321_v40  ;;  %v11657_v40 = vld [vmem:[#allocation75_spill] sm:$0xff] }
 0x58c   :  { %v10350_v63 = vld [vmem:[#allocation3] sm:$0xff] }
 0x58d   :  { %3557 = vmatmul.mubr.bf16.vlgmr.msra.gmra.mrb[44].mxu0 %v10350_v63  ;;  %3598 = vmatmul.mubr.bf16.vlgmr.msra.gmra.mrb[44].mxu1 %v10350_v63  ;;  %v7692_v42 = vcombine.high %v10350_v63, %v10350_v63 }
 0x58e   :  { %4002 = vmatpush1.bf16.msra.mxu0 %v10044_v46  ;;  %4043 = vmatpush1.bf16.msra.mxu1 %v10046_v47  ;;  %v11604_v46 = vld [vmem:[#allocation23_spill] sm:$0xff]  ;;  %v11605_v47 = vld [vmem:[#allocation24_spill] sm:$0xff] }
 0x58f   :  { %4033 = vmatprep.mubr.bf16.mxu0 %v7692_v42  ;;  %4074 = vmatprep.mubr.bf16.mxu1 %v7692_v42  ;;  %v11659_v42 = vld [vmem:[#allocation77_spill] sm:$0xff] }
 0x590   :  { %4003 = vmatprep.subr.bf16.mxu0 %v10050_v49  ;;  %4044 = vmatprep.subr.bf16.mxu1 %v10052_v50  ;;  %v11606_v49 = vld [vmem:[#allocation25_spill] sm:$0xff]  ;;  %v11607_v50 = vld [vmem:[#allocation26_spill] sm:$0xff] }
 0x592   :  { %4004 = vmatpush1.bf16.msra.mxu0 %v10060_v17  ;;  %4045 = vmatpush1.bf16.msra.mxu1 %v10062_v15  ;;  %v11608_v17 = vld [vmem:[#allocation27_spill] sm:$0xff]  ;;  %v11609_v15 = vld [vmem:[#allocation28_spill] sm:$0xff] }
 0x593   :  { %4005 = vmatprep.subr.bf16.mxu0 %v10064_v51  ;;  %4046 = vmatprep.subr.bf16.mxu1 %v10066_v52  ;;  %v11610_v51 = vld [vmem:[#allocation29_spill] sm:$0xff]  ;;  %v11611_v52 = vld [vmem:[#allocation30_spill] sm:$0xff] }
 0x596   :  { %4006 = vmatpush1.bf16.msra.mxu0 %v10072_v53  ;;  %4047 = vmatpush1.bf16.msra.mxu1 %v10074_v54  ;;  %v11612_v53 = vld [vmem:[#allocation31_spill] sm:$0xff]  ;;  %v11613_v54 = vld [vmem:[#allocation32_spill] sm:$0xff] }
 0x597   :  { %4007 = vmatprep.subr.bf16.mxu0 %v10078_v19  ;;  %4048 = vmatprep.subr.bf16.mxu1 %v10080_v55  ;;  %v11614_v19 = vld [vmem:[#allocation33_spill] sm:$0xff]  ;;  %v11615_v55 = vld [vmem:[#allocation34_spill] sm:$0xff] }
 0x59a   :  { %4008 = vmatpush1.bf16.msra.mxu0 %v10084_v16  ;;  %4049 = vmatpush1.bf16.msra.mxu1 %v10086_v56  ;;  %v11616_v16 = vld [vmem:[#allocation35_spill] sm:$0xff]  ;;  %v11617_v56 = vld [vmem:[#allocation36_spill] sm:$0xff] }
 0x59b   :  { %4009 = vmatprep.subr.bf16.mxu0 %v10090_v57  ;;  %4050 = vmatprep.subr.bf16.mxu1 %v10092_v58  ;;  %v11618_v57 = vld [vmem:[#allocation37_spill] sm:$0xff]  ;;  %v11619_v58 = vld [vmem:[#allocation38_spill] sm:$0xff] }
 0x59e   :  { %4010 = vmatpush1.bf16.msra.mxu0 %v10096_v60  ;;  %4051 = vmatpush1.bf16.msra.mxu1 %v10098_v61  ;;  %v11620_v60 = vld [vmem:[#allocation39_spill] sm:$0xff]  ;;  %v11621_v61 = vld [vmem:[#allocation40_spill] sm:$0xff] }
 0x59f   :  { %4011 = vmatprep.subr.bf16.mxu0 %v10102_v62  ;;  %4052 = vmatprep.subr.bf16.mxu1 %v10104_v1  ;;  %v11622_v62 = vld [vmem:[#allocation41_spill] sm:$0xff]  ;;  %v11623_v1 = vld [vmem:[#allocation42_spill] sm:$0xff] }
 0x5a2   :  { %4012 = vmatpush1.bf16.msra.mxu0 %v10108_v2  ;;  %4053 = vmatpush1.bf16.msra.mxu1 %v10110_v24  ;;  %v11624_v2 = vld [vmem:[#allocation43_spill] sm:$0xff]  ;;  %v11625_v24 = vld [vmem:[#allocation44_spill] sm:$0xff] }
 0x5a3   :  { %4013 = vmatprep.subr.bf16.mxu0 %v10114_v4  ;;  %4054 = vmatprep.subr.bf16.mxu1 %v10116_v35  ;;  %v11626_v4 = vld [vmem:[#allocation45_spill] sm:$0xff]  ;;  %v11627_v35 = vld [vmem:[#allocation46_spill] sm:$0xff] }
 0x5a6   :  { %4014 = vmatpush1.bf16.msra.mxu0 %v10120_v11  ;;  %4055 = vmatpush1.bf16.msra.mxu1 %v10122_v25  ;;  %v11628_v11 = vld [vmem:[#allocation47_spill] sm:$0xff]  ;;  %v11629_v25 = vld [vmem:[#allocation48_spill] sm:$0xff] }
 0x5a7   :  { %4015 = vmatprep.subr.bf16.mxu0 %v10126_v7  ;;  %4056 = vmatprep.subr.bf16.mxu1 %v10128_v10  ;;  %v11630_v7 = vld [vmem:[#allocation49_spill] sm:$0xff]  ;;  %v7691_v10 = vcombine.low %v10350_v63, %v10350_v63  ;;  %v11658_v63 = vld [vmem:[#allocation76_spill] sm:$0xff] }
 0x5aa   :  { %4016 = vmatpush1.bf16.msra.mxu0 %v10132_v29  ;;  %4057 = vmatpush1.bf16.msra.mxu1 %v10134_v27  ;;  %v11631_v29 = vld [vmem:[#allocation50_spill] sm:$0xff]  ;;  %v11632_v27 = vld [vmem:[#allocation51_spill] sm:$0xff] }
 0x5ab   :  { %4017 = vmatprep.subr.bf16.mxu0 %v10138_v23  ;;  %4058 = vmatprep.subr.bf16.mxu1 %v10140_v28  ;;  %v11633_v23 = vld [vmem:[#allocation52_spill] sm:$0xff]  ;;  %v11634_v28 = vld [vmem:[#allocation53_spill] sm:$0xff] }
 0x5ae   :  { %4018 = vmatpush1.bf16.msra.mxu0 %v10144_v8  ;;  %4059 = vmatpush1.bf16.msra.mxu1 %v10146_v12  ;;  %v11635_v8 = vld [vmem:[#allocation54_spill] sm:$0xff]  ;;  %v11636_v12 = vld [vmem:[#allocation55_spill] sm:$0xff] }
 0x5af   :  { %4019 = vmatprep.subr.bf16.mxu0 %v11603_v41  ;;  %4060 = vmatprep.subr.bf16.mxu1 %v11604_v46  ;;  %v11660_v41 = vld [vmem:[#allocation82_spill] sm:$0xff]  ;;  %v11661_v46 = vld [vmem:[#allocation85_spill] sm:$0xff] }
 0x5b2   :  { %4020 = vmatpush1.bf16.msra.mxu0 %v11605_v47  ;;  %4061 = vmatpush1.bf16.msra.mxu1 %v11606_v49  ;;  %v11662_v47 = vld [vmem:[#allocation83_spill] sm:$0xff]  ;;  %v11663_v49 = vld [vmem:[#allocation84_spill] sm:$0xff] }
 0x5b3   :  { %4021 = vmatprep.subr.bf16.mxu0 %v11607_v50  ;;  %4062 = vmatprep.subr.bf16.mxu1 %v11608_v17  ;;  %v10454_v50 = vld [vmem:[#allocation10 + $0x4] ss:$16 sps:$4 sm:$0xff]   ;;  %v10456_v17 = vld [vmem:[#allocation10 + $0xc] ss:$16 sps:$4 sm:$0xff]  }
 0x5b6   :  { %4022 = vmatpush1.bf16.msra.mxu0 %v11609_v15  ;;  %4063 = vmatpush1.bf16.msra.mxu1 %v11610_v51  ;;  %v3324_v15 = vld [vmem:[#allocation2 + $0x40] ss:$16 sps:$4 sm:$0xff]   ;;  %v3325_v51 = vld [vmem:[#allocation2 + $0x48] ss:$16 sps:$4 sm:$0xff]  }
 0x5b7   :  { %4023 = vmatprep.subr.bf16.mxu0 %v11611_v52  ;;  %4064 = vmatprep.subr.bf16.mxu1 %v11612_v53  ;;  %v3328_v52 = vunpack.c.l.bf16 %v3324_v15 }
 0x5ba   :  { %4024 = vmatpush1.bf16.msra.mxu0 %v11613_v54  ;;  %4065 = vmatpush1.bf16.msra.mxu1 %v11614_v19  ;;  %v3329_v19 = vunpack.c.l.bf16 %v3325_v51 }
 0x5bb   :  { %4025 = vmatprep.subr.bf16.mxu0 %v11615_v55  ;;  %4066 = vmatprep.subr.bf16.mxu1 %v11616_v16 }
 0x5be   :  { %4026 = vmatpush1.bf16.msra.mxu0 %v11617_v56  ;;  %4067 = vmatpush1.bf16.msra.mxu1 %v11618_v57 }
 0x5bf   :  { %4027 = vmatprep.subr.bf16.mxu0 %v11619_v58  ;;  %4068 = vmatprep.subr.bf16.mxu1 %v11620_v60 }
 0x5c2   :  { %4028 = vmatpush1.bf16.msra.mxu0 %v11621_v61  ;;  %4069 = vmatpush1.bf16.msra.mxu1 %v11622_v62 }
 0x5c3   :  { %4029 = vmatprep.subr.bf16.mxu0 %v11623_v1  ;;  %4070 = vmatprep.subr.bf16.mxu1 %v11624_v2 }
 0x5c6   :  { %4030 = vmatpush1.bf16.msra.mxu0 %v11625_v24  ;;  %4071 = vmatpush1.bf16.msra.mxu1 %v11626_v4  ;;  %v3331_v24 = vunpack.c.h.bf16 %v3325_v51 }
 0x5c7   :  { %4031 = vmatprep.subr.bf16.mxu0 %v11627_v35  ;;  %4072 = vmatprep.subr.bf16.mxu1 %v11628_v11  ;;  %v3330_v35 = vunpack.c.h.bf16 %v3324_v15 }
 0x5ca   :  { %4032 = vmatpush1.bf16.msra.mxu0 %v11629_v25  ;;  %4073 = vmatpush1.bf16.msra.mxu1 %v11630_v7 }
 0x5cb   :  { %4348 = vmatprep.subr.bf16.mxu0 %v11631_v29  ;;  %4389 = vmatprep.subr.bf16.mxu1 %v11632_v27 }
 0x5cd   :  { %4034 = vmatmul.mubr.bf16.vlgmr.msra.gmra.mrb[48].mxu0 %v7691_v10  ;;  %4075 = vmatmul.mubr.bf16.vlgmr.msra.gmra.mrb[48].mxu1 %v7691_v10 }
 0x5ce   :  { %4349 = vmatpush1.bf16.msra.mxu0 %v11633_v23  ;;  %4390 = vmatpush1.bf16.msra.mxu1 %v11634_v28 }
 0x5cf   :  { %4350 = vmatprep.subr.bf16.mxu0 %v11635_v8  ;;  %4391 = vmatprep.subr.bf16.mxu1 %v11636_v12 }
 0x5d0   :  { %4380 = vmatprep.mubr.bf16.mxu0 %v11637_v43  ;;  %4421 = vmatprep.mubr.bf16.mxu1 %v11637_v43 }
 0x5d2   :  { %4351 = vmatpush1.bf16.msra.mxu0 %v11638_v59  ;;  %4392 = vmatpush1.bf16.msra.mxu1 %v11639_v3 }
 0x5d3   :  { %4352 = vmatprep.subr.bf16.mxu0 %v11640_v14  ;;  %4393 = vmatprep.subr.bf16.mxu1 %v11641_v33 }
 0x5d6   :  { %4353 = vmatpush1.bf16.msra.mxu0 %v11642_v20  ;;  %4394 = vmatpush1.bf16.msra.mxu1 %v11643_v34 }
 0x5d7   :  { %4354 = vmatprep.subr.bf16.mxu0 %v11644_v21  ;;  %4395 = vmatprep.subr.bf16.mxu1 %v11645_v22 }
 0x5da   :  { %4355 = vmatpush1.bf16.msra.mxu0 %v11646_v13  ;;  %4396 = vmatpush1.bf16.msra.mxu1 %v11647_v37 }
 0x5db   :  { %4356 = vmatprep.subr.bf16.mxu0 %v11648_v0  ;;  %4397 = vmatprep.subr.bf16.mxu1 %v11649_v36 }
 0x5de   :  { %4357 = vmatpush1.bf16.msra.mxu0 %v11650_v9  ;;  %4398 = vmatpush1.bf16.msra.mxu1 %v11651_v45 }
 0x5df   :  { %4358 = vmatprep.subr.bf16.mxu0 %v11652_v18  ;;  %4399 = vmatprep.subr.bf16.mxu1 %v11653_v38 }
 0x5e2   :  { %4359 = vmatpush1.bf16.msra.mxu0 %v11654_v48  ;;  %4400 = vmatpush1.bf16.msra.mxu1 %v11655_v31 }
 0x5e3   :  { %4360 = vmatprep.subr.bf16.mxu0 %v11656_v39  ;;  %4401 = vmatprep.subr.bf16.mxu1 %v11657_v40 }
 0x5e6   :  { %4361 = vmatpush1.bf16.msra.mxu0 %v11658_v63  ;;  %4402 = vmatpush1.bf16.msra.mxu1 %v11659_v42 }
 0x5e7   :  { %4362 = vmatprep.subr.bf16.mxu0 %v11660_v41  ;;  %4403 = vmatprep.subr.bf16.mxu1 %v11661_v46 }
 0x5ea   :  { %4363 = vmatpush1.bf16.msra.mxu0 %v11662_v47  ;;  %4404 = vmatpush1.bf16.msra.mxu1 %v11663_v49 }
 0x5eb   :  { %4825 = vmatprep.subr.bf16.mxu0 %v10454_v50  ;;  %4866 = vmatprep.subr.bf16.mxu1 %v10456_v17 }
 0x660   :  { %v3558_v53 = vpop.f32.mrb[44].mxu0  ;;  %v3599_v54 = vpop.f32.mrb[44].mxu1 }
 0x661   :  { %v3606_v55 = vadd.f32 %v3558_v53, %v3328_v52  ;;  %v3560_v16 = vpop.f32.mrb[45].mxu0  ;;  %v3601_v56 = vpop.f32.mrb[45].mxu1  ;;  %v3608_v25 = vadd.f32 %v3599_v54, %v3330_v35  ;;  %v10490_v35 = vld [vmem:[#allocation10 + $0x28] ss:$16 sps:$4 sm:$0xff]  }
 0x662   :  { %v3607_v57 = vadd.f32 %v3560_v16, %v3329_v19  ;;  %v3562_v58 = vpop.f32.mrb[46].mxu0  ;;  %v3603_v60 = vpop.f32.mrb[46].mxu1  ;;  %v3609_v4 = vadd.f32 %v3601_v56, %v3331_v24  ;;  %v10480_v24 = vld [vmem:[#allocation10 + $0x2c] ss:$16 sps:$4 sm:$0xff]  }
 0x663   :  { %v7757_v61 = vmul.f32 -1.442695, %v3606_v55  ;;  %v3563_v62 = vpop.f32.mrb[47].mxu0  ;;  %v3604_v1 = vpop.f32.mrb[47].mxu1 }
 0x664   :  { %v7758_v2 = vmul.f32 -1.442695, %v3607_v57  ;;  %v7759_v11 = vmul.f32 -1.442695, %v3609_v4  ;;  %v10474_v62 = vld [vmem:[#allocation10 + $0x8] ss:$16 sps:$4 sm:$0xff]  }
 0x665   :  { %8963 = vpow2.f32 %v7757_v61  ;;  %v10472_v61 = vld [vmem:[#allocation10] ss:$16 sps:$4 sm:$0xff]  }
 0x666   :  { %8965 = vpow2.f32 %v7758_v2  ;;  %v10478_v2 = vld [vmem:[#allocation10 + $0x24] ss:$16 sps:$4 sm:$0xff]   ;;  %v10488_v4 = vld [vmem:[#allocation10 + $0x20] ss:$16 sps:$4 sm:$0xff]  }
 0x667   :  { %8967 = vpow2.f32 %v7759_v11  ;;  %v10492_v11 = vld [vmem:[#allocation10 + $0x44] ss:$16 sps:$4 sm:$0xff]  }
 0x668   :  { %8969 = vtanh.f32 %v3608_v25  ;;  %v10494_v25 = vld [vmem:[#allocation10 + $0x4c] ss:$16 sps:$4 sm:$0xff]  }
 0x66f   :  { %v8964_v7 = vpop.eup %8963 }
 0x670   :  { %v8966_v10 = vpop.eup %8965  ;;  %v4086_v29 = vadd.f32 1.0, %v8964_v7  ;;  %v10500_v7 = vld [vmem:[#allocation10 + $0x40] ss:$16 sps:$4 sm:$0xff]  }
 0x671   :  { %v4092_v27 = vadd.f32 1.0, %v8966_v10  ;;  %v8968_v23 = vpop.eup %8967  ;;  %v10502_v10 = vld [vmem:[#allocation10 + $0x48] ss:$16 sps:$4 sm:$0xff]  }
 0x672   :  { %8971 = vrcp.f32 %v4086_v29  ;;  %v8970_v28 = vpop.eup %8969  ;;  %v4099_v3 = vadd.f32 1.0, %v8968_v23  ;;  %v10506_v29 = vld [vmem:[#allocation10 + $0x64] ss:$16 sps:$4 sm:$0xff]   ;;  %v10512_v23 = vld [vmem:[#allocation10 + $0x60] ss:$16 sps:$4 sm:$0xff]  }
 0x673   :  { %8973 = vrcp.f32 %v4092_v27  ;;  %v10508_v27 = vld [vmem:[#allocation10 + $0x6c] ss:$16 sps:$4 sm:$0xff]  }
 0x674   :  { %8975 = vrcp.f32 %v4099_v3  ;;  %v10526_v3 = vld [vmem:[#allocation10 + $0x88] ss:$16 sps:$4 sm:$0xff]  }
 0x67c   :  { %v8972_v8 = vpop.eup %8971 }
 0x67d   :  { %v8974_v12 = vpop.eup %8973  ;;  %v4103_v59 = vmul.f32 %v8972_v8, %v8970_v28  ;;  %v10514_v28 = vld [vmem:[#allocation10 + $0x68] ss:$16 sps:$4 sm:$0xff]   ;;  %v10518_v8 = vld [vmem:[#allocation10 + $0x84] ss:$16 sps:$4 sm:$0xff]  }
 0x67e   :  { %v4102_v14 = vmul.f32 %v8974_v12, %v10339_v44  ;;  %v8976_v20 = vpop.eup %8975  ;;  %v10520_v12 = vld [vmem:[#allocation10 + $0x8c] ss:$16 sps:$4 sm:$0xff]  }
 0x680   :  { %v10461_v33 = vadd.f32 %v4103_v59, %v4102_v14  ;;  %v10524_v59 = vld [vmem:[#allocation10 + $0x80] ss:$16 sps:$4 sm:$0xff]   ;;  %v10530_v14 = vld [vmem:[#allocation10 + $0xa4] ss:$16 sps:$4 sm:$0xff]  }
 0x682   :  { %8977 = vtanh.f32 %v10461_v33 }
 0x68c   :  { %v8978_v34 = vpop.eup %8977 }
 0x68d   :  { %v4106_v21 = vmul.f32 %v8978_v34, %v8976_v20  ;;  %v10532_v20 = vld [vmem:[#allocation10 + $0xac] ss:$16 sps:$4 sm:$0xff]   ;;  %v10536_v34 = vld [vmem:[#allocation10 + $0xa0] ss:$16 sps:$4 sm:$0xff]  }
 0x68f   :  { %v4107_v22 = vpack.c.bf16 %v4106_v21, %v4106_v21  ;;  %v10538_v21 = vld [vmem:[#allocation10 + $0xa8] ss:$16 sps:$4 sm:$0xff]  }
 0x691   :  { %4108 = vst [vmem:[#allocation3] sm:$0xf] %v4107_v22  ;;  %v10542_v22 = vld [vmem:[#allocation10 + $0xc4] ss:$16 sps:$4 sm:$0xff]  }
 0x6a0   :  { %v4035_v13 = vpop.f32.mrb[48].mxu0  ;;  %v4076_v37 = vpop.f32.mrb[48].mxu1 }
 0x6a1   :  { %v4036_v0 = vadd.f32 %v4035_v13, %v9901_v32  ;;  %v4037_v36 = vpop.f32.mrb[49].mxu0  ;;  %v4078_v9 = vpop.f32.mrb[49].mxu1  ;;  %v4077_v42 = vadd.f32 %v4076_v37, %v9916_v26  ;;  %v10544_v13 = vld [vmem:[#allocation10 + $0xcc] ss:$16 sps:$4 sm:$0xff]   ;;  %v10548_v37 = vld [vmem:[#allocation10 + $0xc0] ss:$16 sps:$4 sm:$0xff]  }
 0x6a2   :  { %v4038_v45 = vadd.f32 %v4037_v36, %v9905_v6  ;;  %v4039_v18 = vpop.f32.mrb[50].mxu0  ;;  %v4080_v44 = vpop.f32.mrb[50].mxu1  ;;  %v4079_v40 = vadd.f32 %v4078_v9, %v9911_v5  ;;  %v10554_v36 = vld [vmem:[#allocation10 + $0xe4] ss:$16 sps:$4 sm:$0xff]   ;;  %v10556_v9 = vld [vmem:[#allocation10 + $0xec] ss:$16 sps:$4 sm:$0xff]  }
 0x6a3   :  { %v7760_v38 = vmul.f32 -1.442695, %v4036_v0  ;;  %v4040_v48 = vpop.f32.mrb[51].mxu0  ;;  %v4081_v31 = vpop.f32.mrb[51].mxu1  ;;  %v10550_v0 = vld [vmem:[#allocation10 + $0xc8] ss:$16 sps:$4 sm:$0xff]  }
 0x6a4   :  { %v7761_v39 = vmul.f32 -1.442695, %v4038_v45  ;;  %v7762_v63 = vmul.f32 -1.442695, %v4079_v40  ;;  %v10560_v45 = vld [vmem:[#allocation10 + $0xe0] ss:$16 sps:$4 sm:$0xff]  }
 0x6a5   :  { %8979 = vpow2.f32 %v7760_v38  ;;  %v10562_v18 = vld [vmem:[#allocation10 + $0xe8] ss:$16 sps:$4 sm:$0xff]   ;;  %v10566_v44 = vld [vmem:[#allocation10 + $0x104] ss:$16 sps:$4 sm:$0xff]   ;;  %v10568_v38 = vld [vmem:[#allocation10 + $0x10c] ss:$16 sps:$4 sm:$0xff]  }
 0x6a6   :  { %8981 = vpow2.f32 %v7761_v39  ;;  %v10572_v48 = vld [vmem:[#allocation10 + $0x100] ss:$16 sps:$4 sm:$0xff]   ;;  %v10574_v31 = vld [vmem:[#allocation10 + $0x108] ss:$16 sps:$4 sm:$0xff]   ;;  %v10578_v39 = vld [vmem:[#allocation10 + $0x124] ss:$16 sps:$4 sm:$0xff]  }
 0x6a7   :  { %8983 = vpow2.f32 %v7762_v63  ;;  %11664 = vst [vmem:[#allocation22_spill] sm:$0xff] %v10578_v39  ;;  %v10580_v40 = vld [vmem:[#allocation10 + $0x12c] ss:$16 sps:$4 sm:$0xff]   ;;  %v10584_v63 = vld [vmem:[#allocation10 + $0x120] ss:$16 sps:$4 sm:$0xff]  }
 0x6a8   :  { %8985 = vtanh.f32 %v4077_v42  ;;  %11665 = vst [vmem:[#allocation23_spill] sm:$0xff] %v10580_v40  ;;  %11666 = vst [vmem:[#allocation24_spill] sm:$0xff] %v10584_v63  ;;  %v10586_v42 = vld [vmem:[#allocation10 + $0x128] ss:$16 sps:$4 sm:$0xff]  }
 0x6a9   :  { %11667 = vst [vmem:[#allocation25_spill] sm:$0xff] %v10586_v42 }
 0x6af   :  { %v8980_v41 = vpop.eup %8979 }
 0x6b0   :  { %v8982_v46 = vpop.eup %8981  ;;  %v4112_v47 = vadd.f32 1.0, %v8980_v41  ;;  %v10590_v41 = vld [vmem:[#allocation10 + $0x144] ss:$16 sps:$4 sm:$0xff]  }
 0x6b1   :  { %v4118_v49 = vadd.f32 1.0, %v8982_v46  ;;  %v8984_v15 = vpop.eup %8983  ;;  %11668 = vst [vmem:[#allocation26_spill] sm:$0xff] %v10590_v41  ;;  %v10592_v46 = vld [vmem:[#allocation10 + $0x14c] ss:$16 sps:$4 sm:$0xff]  }
 0x6b2   :  { %8987 = vrcp.f32 %v4112_v47  ;;  %v8986_v51 = vpop.eup %8985  ;;  %v4125_v19 = vadd.f32 1.0, %v8984_v15  ;;  %11669 = vst [vmem:[#allocation27_spill] sm:$0xff] %v10592_v46  ;;  %v10596_v47 = vld [vmem:[#allocation10 + $0x140] ss:$16 sps:$4 sm:$0xff]   ;;  %v10602_v15 = vld [vmem:[#allocation10 + $0x164] ss:$16 sps:$4 sm:$0xff]  }
 0x6b3   :  { %8989 = vrcp.f32 %v4118_v49  ;;  %11670 = vst [vmem:[#allocation28_spill] sm:$0xff] %v10596_v47  ;;  %v10598_v49 = vld [vmem:[#allocation10 + $0x148] ss:$16 sps:$4 sm:$0xff]   ;;  %11672 = vst [vmem:[#allocation30_spill] sm:$0xff] %v10602_v15 }
 0x6b4   :  { %8991 = vrcp.f32 %v4125_v19  ;;  %11671 = vst [vmem:[#allocation29_spill] sm:$0xff] %v10598_v49  ;;  %v10616_v19 = vld [vmem:[#allocation10 + $0x18c] ss:$16 sps:$4 sm:$0xff]  }
 0x6b5   :  { %11677 = vst [vmem:[#allocation35_spill] sm:$0xff] %v10616_v19 }
 0x6bc   :  { %v8988_v52 = vpop.eup %8987 }
 0x6bd   :  { %v8990_v53 = vpop.eup %8989  ;;  %v4129_v54 = vmul.f32 %v8988_v52, %v8986_v51  ;;  %v10604_v51 = vld [vmem:[#allocation10 + $0x16c] ss:$16 sps:$4 sm:$0xff]   ;;  %v10608_v52 = vld [vmem:[#allocation10 + $0x160] ss:$16 sps:$4 sm:$0xff]  }
 0x6be   :  { %v4128_v55 = vmul.f32 %v8990_v53, %v10347_v30  ;;  %v8992_v56 = vpop.eup %8991  ;;  %11673 = vst [vmem:[#allocation31_spill] sm:$0xff] %v10604_v51  ;;  %11674 = vst [vmem:[#allocation32_spill] sm:$0xff] %v10608_v52  ;;  %v10610_v53 = vld [vmem:[#allocation10 + $0x168] ss:$16 sps:$4 sm:$0xff]  }
 0x6bf   :  { %11675 = vst [vmem:[#allocation33_spill] sm:$0xff] %v10610_v53 }
 0x6c0   :  { %v10469_v16 = vadd.f32 %v4129_v54, %v4128_v55  ;;  %v10614_v54 = vld [vmem:[#allocation10 + $0x184] ss:$16 sps:$4 sm:$0xff]   ;;  %v10620_v55 = vld [vmem:[#allocation10 + $0x180] ss:$16 sps:$4 sm:$0xff]  }
 0x6c1   :  { %11676 = vst [vmem:[#allocation34_spill] sm:$0xff] %v10614_v54  ;;  %11678 = vst [vmem:[#allocation36_spill] sm:$0xff] %v10620_v55 }
 0x6c2   :  { %8993 = vtanh.f32 %v10469_v16 }
 0x6cc   :  { %v8994_v57 = vpop.eup %8993 }
 0x6cd   :  { %v4132_v58 = vmul.f32 %v8994_v57, %v8992_v56  ;;  %v10622_v56 = vld [vmem:[#allocation10 + $0x188] ss:$16 sps:$4 sm:$0xff]   ;;  %v10626_v57 = vld [vmem:[#allocation10 + $0x1a4] ss:$16 sps:$4 sm:$0xff]  }
 0x6ce   :  { %11679 = vst [vmem:[#allocation37_spill] sm:$0xff] %v10622_v56  ;;  %11680 = vst [vmem:[#allocation38_spill] sm:$0xff] %v10626_v57 }
 0x6cf   :  { %v4133_v60 = vpack.c.bf16 %v4132_v58, %v4132_v58  ;;  %v10628_v58 = vld [vmem:[#allocation10 + $0x1ac] ss:$16 sps:$4 sm:$0xff]  }
 0x6d0   :  { %11681 = vst [vmem:[#allocation39_spill] sm:$0xff] %v10628_v58 }
 0x6d1   :  { %4134 = vst [vmem:[#allocation3 + $0x4] sm:$0xf] %v4133_v60  ;;  %v10632_v60 = vld [vmem:[#allocation10 + $0x1a0] ss:$16 sps:$4 sm:$0xff]  }
 0x6d2   :  { %11682 = vst [vmem:[#allocation40_spill] sm:$0xff] %v10632_v60 }
 0x6d8   :  { %v10476_v1 = vld [vmem:[#allocation3] sm:$0xff] }
 0x6d9   :  { %4381 = vmatmul.mubr.bf16.vlgmr.msra.gmra.mrb[52].mxu0 %v10476_v1  ;;  %4422 = vmatmul.mubr.bf16.vlgmr.msra.gmra.mrb[52].mxu1 %v10476_v1  ;;  %v7796_v30 = vcombine.high %v10476_v1, %v10476_v1 }
 0x6da   :  { %4826 = vmatpush1.bf16.msra.mxu0 %v10472_v61  ;;  %4867 = vmatpush1.bf16.msra.mxu1 %v10474_v62 }
 0x6db   :  { %4857 = vmatprep.mubr.bf16.mxu0 %v7796_v30  ;;  %4898 = vmatprep.mubr.bf16.mxu1 %v7796_v30  ;;  %v10634_v30 = vld [vmem:[#allocation10 + $0x1a8] ss:$16 sps:$4 sm:$0xff]  }
 0x6dc   :  { %4827 = vmatprep.subr.bf16.mxu0 %v10478_v2  ;;  %4868 = vmatprep.subr.bf16.mxu1 %v10480_v24  ;;  %11683 = vst [vmem:[#allocation41_spill] sm:$0xff] %v10634_v30 }
 0x6de   :  { %4828 = vmatpush1.bf16.msra.mxu0 %v10488_v4  ;;  %4869 = vmatpush1.bf16.msra.mxu1 %v10490_v35 }
 0x6df   :  { %4829 = vmatprep.subr.bf16.mxu0 %v10492_v11  ;;  %4870 = vmatprep.subr.bf16.mxu1 %v10494_v25 }
 0x6e2   :  { %4830 = vmatpush1.bf16.msra.mxu0 %v10500_v7  ;;  %4871 = vmatpush1.bf16.msra.mxu1 %v10502_v10 }
 0x6e3   :  { %4831 = vmatprep.subr.bf16.mxu0 %v10506_v29  ;;  %4872 = vmatprep.subr.bf16.mxu1 %v10508_v27 }
 0x6e6   :  { %4832 = vmatpush1.bf16.msra.mxu0 %v10512_v23  ;;  %4873 = vmatpush1.bf16.msra.mxu1 %v10514_v28 }
 0x6e7   :  { %4833 = vmatprep.subr.bf16.mxu0 %v10518_v8  ;;  %4874 = vmatprep.subr.bf16.mxu1 %v10520_v12 }
 0x6ea   :  { %4834 = vmatpush1.bf16.msra.mxu0 %v10524_v59  ;;  %4875 = vmatpush1.bf16.msra.mxu1 %v10526_v3 }
 0x6eb   :  { %4835 = vmatprep.subr.bf16.mxu0 %v10530_v14  ;;  %4876 = vmatprep.subr.bf16.mxu1 %v10532_v20 }
 0x6ee   :  { %4836 = vmatpush1.bf16.msra.mxu0 %v10536_v34  ;;  %4877 = vmatpush1.bf16.msra.mxu1 %v10538_v21 }
 0x6ef   :  { %4837 = vmatprep.subr.bf16.mxu0 %v10542_v22  ;;  %4878 = vmatprep.subr.bf16.mxu1 %v10544_v13 }
 0x6f2   :  { %4838 = vmatpush1.bf16.msra.mxu0 %v10548_v37  ;;  %4879 = vmatpush1.bf16.msra.mxu1 %v10550_v0 }
 0x6f3   :  { %4839 = vmatprep.subr.bf16.mxu0 %v10554_v36  ;;  %4880 = vmatprep.subr.bf16.mxu1 %v10556_v9 }
 0x6f6   :  { %4840 = vmatpush1.bf16.msra.mxu0 %v10560_v45  ;;  %4881 = vmatpush1.bf16.msra.mxu1 %v10562_v18 }
 0x6f7   :  { %4841 = vmatprep.subr.bf16.mxu0 %v10566_v44  ;;  %4882 = vmatprep.subr.bf16.mxu1 %v10568_v38 }
 0x6fa   :  { %4842 = vmatpush1.bf16.msra.mxu0 %v10572_v48  ;;  %4883 = vmatpush1.bf16.msra.mxu1 %v10574_v31 }
 0x6fb   :  { %4843 = vmatprep.subr.bf16.mxu0 %v10578_v39  ;;  %4884 = vmatprep.subr.bf16.mxu1 %v10580_v40 }
 0x6fe   :  { %4844 = vmatpush1.bf16.msra.mxu0 %v10584_v63  ;;  %4885 = vmatpush1.bf16.msra.mxu1 %v10586_v42 }
 0x6ff   :  { %4845 = vmatprep.subr.bf16.mxu0 %v10590_v41  ;;  %4886 = vmatprep.subr.bf16.mxu1 %v10592_v46 }
 0x702   :  { %4846 = vmatpush1.bf16.msra.mxu0 %v10596_v47  ;;  %4887 = vmatpush1.bf16.msra.mxu1 %v10598_v49 }
 0x703   :  { %4847 = vmatprep.subr.bf16.mxu0 %v10602_v15  ;;  %4888 = vmatprep.subr.bf16.mxu1 %v10604_v51 }
 0x706   :  { %4848 = vmatpush1.bf16.msra.mxu0 %v10608_v52  ;;  %4889 = vmatpush1.bf16.msra.mxu1 %v10610_v53  ;;  %v10638_v53 = vld [vmem:[#allocation10 + $0x1c4] ss:$16 sps:$4 sm:$0xff]  }
 0x707   :  { %4849 = vmatprep.subr.bf16.mxu0 %v10614_v54  ;;  %4890 = vmatprep.subr.bf16.mxu1 %v10616_v19  ;;  %11684 = vst [vmem:[#allocation42_spill] sm:$0xff] %v10638_v53  ;;  %v10640_v54 = vld [vmem:[#allocation10 + $0x1cc] ss:$16 sps:$4 sm:$0xff]   ;;  %v10644_v19 = vld [vmem:[#allocation10 + $0x1c0] ss:$16 sps:$4 sm:$0xff]  }
 0x708   :  { %11685 = vst [vmem:[#allocation43_spill] sm:$0xff] %v10640_v54  ;;  %11686 = vst [vmem:[#allocation44_spill] sm:$0xff] %v10644_v19 }
 0x70a   :  { %4850 = vmatpush1.bf16.msra.mxu0 %v10620_v55  ;;  %4891 = vmatpush1.bf16.msra.mxu1 %v10622_v56  ;;  %v10646_v55 = vld [vmem:[#allocation10 + $0x1c8] ss:$16 sps:$4 sm:$0xff]   ;;  %v10650_v56 = vld [vmem:[#allocation10 + $0x1e4] ss:$16 sps:$4 sm:$0xff]  }
 0x70b   :  { %4851 = vmatprep.subr.bf16.mxu0 %v10626_v57  ;;  %4892 = vmatprep.subr.bf16.mxu1 %v10628_v58  ;;  %11687 = vst [vmem:[#allocation45_spill] sm:$0xff] %v10646_v55  ;;  %11688 = vst [vmem:[#allocation46_spill] sm:$0xff] %v10650_v56  ;;  %v10652_v57 = vld [vmem:[#allocation10 + $0x1ec] ss:$16 sps:$4 sm:$0xff]   ;;  %v10656_v58 = vld [vmem:[#allocation10 + $0x1e0] ss:$16 sps:$4 sm:$0xff]  }
 0x70c   :  { %11689 = vst [vmem:[#allocation47_spill] sm:$0xff] %v10652_v57  ;;  %11690 = vst [vmem:[#allocation48_spill] sm:$0xff] %v10656_v58 }
 0x70e   :  { %4852 = vmatpush1.bf16.msra.mxu0 %v10632_v60  ;;  %4893 = vmatpush1.bf16.msra.mxu1 %v10634_v30  ;;  %v10658_v60 = vld [vmem:[#allocation10 + $0x1e8] ss:$16 sps:$4 sm:$0xff]  }
 0x70f   :  { %4853 = vmatprep.subr.bf16.mxu0 %v10638_v53  ;;  %4894 = vmatprep.subr.bf16.mxu1 %v10640_v54  ;;  %11691 = vst [vmem:[#allocation49_spill] sm:$0xff] %v10658_v60  ;;  %v7795_v54 = vcombine.low %v10476_v1, %v10476_v1  ;;  %v10680_v1 = vld [vmem:[#allocation9 + $0x24] ss:$16 sps:$4 sm:$0xff]  }
 0x710   :  { %11696 = vst [vmem:[#allocation54_spill] sm:$0xff] %v10680_v1  ;;  %v4139_v53 = vld [vmem:[#allocation2 + $0x58] sm:$0xf0] }
 0x712   :  { %4854 = vmatpush1.bf16.msra.mxu0 %v10644_v19  ;;  %4895 = vmatpush1.bf16.msra.mxu1 %v10646_v55  ;;  %v10668_v55 = vld [vmem:[#allocation9 + $0x4] ss:$16 sps:$4 sm:$0xff]   ;;  %v10670_v19 = vld [vmem:[#allocation9 + $0xc] ss:$16 sps:$4 sm:$0xff]  }
 0x713   :  { %4855 = vmatprep.subr.bf16.mxu0 %v10650_v56  ;;  %4896 = vmatprep.subr.bf16.mxu1 %v10652_v57  ;;  %11692 = vst [vmem:[#allocation50_spill] sm:$0xff] %v10668_v55  ;;  %11693 = vst [vmem:[#allocation51_spill] sm:$0xff] %v10670_v19  ;;  %v10672_v56 = vld [vmem:[#allocation9] ss:$16 sps:$4 sm:$0xff]   ;;  %v10674_v57 = vld [vmem:[#allocation9 + $0x8] ss:$16 sps:$4 sm:$0xff]  }
 0x714   :  { %11694 = vst [vmem:[#allocation52_spill] sm:$0xff] %v10672_v56  ;;  %11695 = vst [vmem:[#allocation53_spill] sm:$0xff] %v10674_v57 }
 0x716   :  { %4856 = vmatpush1.bf16.msra.mxu0 %v10656_v58  ;;  %4897 = vmatpush1.bf16.msra.mxu1 %v10658_v60  ;;  %v10686_v60 = vld [vmem:[#allocation9 + $0x28] ss:$16 sps:$4 sm:$0xff]   ;;  %v10750_v58 = vld [vmem:[#allocation9 + $0xe4] ss:$16 sps:$4 sm:$0xff]  }
 0x717   :  { %5160 = vmatprep.subr.bf16.mxu0 %v10668_v55  ;;  %5201 = vmatprep.subr.bf16.mxu1 %v10670_v19  ;;  %11699 = vst [vmem:[#allocation57_spill] sm:$0xff] %v10686_v60  ;;  %v10692_v19 = vld [vmem:[#allocation9 + $0x44] ss:$16 sps:$4 sm:$0xff]   ;;  %v10698_v55 = vld [vmem:[#allocation9 + $0x48] ss:$16 sps:$4 sm:$0xff]   ;;  %11720 = vst [vmem:[#allocation82_spill] sm:$0xff] %v10750_v58 }
 0x718   :  { %11700 = vst [vmem:[#allocation58_spill] sm:$0xff] %v10692_v19  ;;  %11703 = vst [vmem:[#allocation61_spill] sm:$0xff] %v10698_v55 }
 0x719   :  { %4858 = vmatmul.mubr.bf16.vlgmr.msra.gmra.mrb[56].mxu0 %v7795_v54  ;;  %4899 = vmatmul.mubr.bf16.vlgmr.msra.gmra.mrb[56].mxu1 %v7795_v54  ;;  %v10682_v54 = vld [vmem:[#allocation9 + $0x2c] ss:$16 sps:$4 sm:$0xff]  }
 0x71a   :  { %5192 = vmatprep.mubr.bf16.mxu0 %v11637_v43  ;;  %5233 = vmatprep.mubr.bf16.mxu1 %v11637_v43  ;;  %11697 = vst [vmem:[#allocation55_spill] sm:$0xff] %v10682_v54  ;;  %v10684_v43 = vld [vmem:[#allocation9 + $0x20] ss:$16 sps:$4 sm:$0xff]  }
 0x71b   :  { %5161 = vmatpush1.bf16.msra.mxu0 %v10672_v56  ;;  %5202 = vmatpush1.bf16.msra.mxu1 %v10674_v57  ;;  %11698 = vst [vmem:[#allocation56_spill] sm:$0xff] %v10684_v43  ;;  %v10694_v56 = vld [vmem:[#allocation9 + $0x4c] ss:$16 sps:$4 sm:$0xff]   ;;  %v10696_v57 = vld [vmem:[#allocation9 + $0x40] ss:$16 sps:$4 sm:$0xff]  }
 0x71c   :  { %5162 = vmatprep.subr.bf16.mxu0 %v10680_v1  ;;  %5203 = vmatprep.subr.bf16.mxu1 %v10682_v54  ;;  %11701 = vst [vmem:[#allocation59_spill] sm:$0xff] %v10694_v56  ;;  %11702 = vst [vmem:[#allocation60_spill] sm:$0xff] %v10696_v57  ;;  %v10704_v54 = vld [vmem:[#allocation9 + $0x64] ss:$16 sps:$4 sm:$0xff]   ;;  %v10710_v1 = vld [vmem:[#allocation9 + $0x68] ss:$16 sps:$4 sm:$0xff]  }
 0x71d   :  { %11704 = vst [vmem:[#allocation62_spill] sm:$0xff] %v10704_v54  ;;  %11707 = vst [vmem:[#allocation65_spill] sm:$0xff] %v10710_v1 }
 0x71f   :  { %5163 = vmatpush1.bf16.msra.mxu0 %v10684_v43  ;;  %5204 = vmatpush1.bf16.msra.mxu1 %v10686_v60  ;;  %v10706_v43 = vld [vmem:[#allocation9 + $0x6c] ss:$16 sps:$4 sm:$0xff]   ;;  %v10708_v60 = vld [vmem:[#allocation9 + $0x60] ss:$16 sps:$4 sm:$0xff]  }
 0x720   :  { %5164 = vmatprep.subr.bf16.mxu0 %v10692_v19  ;;  %5205 = vmatprep.subr.bf16.mxu1 %v10694_v56  ;;  %11705 = vst [vmem:[#allocation63_spill] sm:$0xff] %v10706_v43  ;;  %11706 = vst [vmem:[#allocation64_spill] sm:$0xff] %v10708_v60  ;;  %v10716_v56 = vld [vmem:[#allocation9 + $0x84] ss:$16 sps:$4 sm:$0xff]   ;;  %v10722_v19 = vld [vmem:[#allocation9 + $0x88] ss:$16 sps:$4 sm:$0xff]  }
 0x721   :  { %11708 = vst [vmem:[#allocation66_spill] sm:$0xff] %v10716_v56  ;;  %11711 = vst [vmem:[#allocation69_spill] sm:$0xff] %v10722_v19 }
 0x723   :  { %5165 = vmatpush1.bf16.msra.mxu0 %v10696_v57  ;;  %5206 = vmatpush1.bf16.msra.mxu1 %v10698_v55  ;;  %v10718_v57 = vld [vmem:[#allocation9 + $0x8c] ss:$16 sps:$4 sm:$0xff]   ;;  %v10720_v55 = vld [vmem:[#allocation9 + $0x80] ss:$16 sps:$4 sm:$0xff]  }
 0x724   :  { %5166 = vmatprep.subr.bf16.mxu0 %v10704_v54  ;;  %5207 = vmatprep.subr.bf16.mxu1 %v10706_v43  ;;  %11709 = vst [vmem:[#allocation67_spill] sm:$0xff] %v10718_v57  ;;  %11710 = vst [vmem:[#allocation68_spill] sm:$0xff] %v10720_v55  ;;  %v10728_v43 = vld [vmem:[#allocation9 + $0xa4] ss:$16 sps:$4 sm:$0xff]   ;;  %v10734_v54 = vld [vmem:[#allocation9 + $0xa8] ss:$16 sps:$4 sm:$0xff]  }
 0x725   :  { %11712 = vst [vmem:[#allocation70_spill] sm:$0xff] %v10728_v43  ;;  %11715 = vst [vmem:[#allocation73_spill] sm:$0xff] %v10734_v54 }
 0x727   :  { %5167 = vmatpush1.bf16.msra.mxu0 %v10708_v60  ;;  %5208 = vmatpush1.bf16.msra.mxu1 %v10710_v1  ;;  %v10730_v60 = vld [vmem:[#allocation9 + $0xac] ss:$16 sps:$4 sm:$0xff]   ;;  %v10732_v1 = vld [vmem:[#allocation9 + $0xa0] ss:$16 sps:$4 sm:$0xff]  }
 0x728   :  { %5168 = vmatprep.subr.bf16.mxu0 %v10716_v56  ;;  %5209 = vmatprep.subr.bf16.mxu1 %v10718_v57  ;;  %11713 = vst [vmem:[#allocation71_spill] sm:$0xff] %v10730_v60  ;;  %11714 = vst [vmem:[#allocation72_spill] sm:$0xff] %v10732_v1  ;;  %v10740_v57 = vld [vmem:[#allocation9 + $0xc4] ss:$16 sps:$4 sm:$0xff]   ;;  %v10746_v56 = vld [vmem:[#allocation9 + $0xc8] ss:$16 sps:$4 sm:$0xff]  }
 0x729   :  { %11716 = vst [vmem:[#allocation74_spill] sm:$0xff] %v10740_v57  ;;  %11719 = vst [vmem:[#allocation77_spill] sm:$0xff] %v10746_v56 }
 0x72b   :  { %5169 = vmatpush1.bf16.msra.mxu0 %v10720_v55  ;;  %5210 = vmatpush1.bf16.msra.mxu1 %v10722_v19  ;;  %v10742_v55 = vld [vmem:[#allocation9 + $0xcc] ss:$16 sps:$4 sm:$0xff]   ;;  %v10744_v19 = vld [vmem:[#allocation9 + $0xc0] ss:$16 sps:$4 sm:$0xff]  }
 0x72c   :  { %5170 = vmatprep.subr.bf16.mxu0 %v10728_v43  ;;  %5211 = vmatprep.subr.bf16.mxu1 %v10730_v60  ;;  %11717 = vst [vmem:[#allocation75_spill] sm:$0xff] %v10742_v55  ;;  %11718 = vst [vmem:[#allocation76_spill] sm:$0xff] %v10744_v19  ;;  %v10758_v60 = vld [vmem:[#allocation9 + $0xec] ss:$16 sps:$4 sm:$0xff]  }
 0x72d   :  { %11723 = vst [vmem:[#allocation84_spill] sm:$0xff] %v10758_v60 }
 0x72f   :  { %5171 = vmatpush1.bf16.msra.mxu0 %v10732_v1  ;;  %5212 = vmatpush1.bf16.msra.mxu1 %v10734_v54  ;;  %v10754_v1 = vld [vmem:[#allocation9 + $0xe0] ss:$16 sps:$4 sm:$0xff]   ;;  %v10756_v54 = vld [vmem:[#allocation9 + $0xe8] ss:$16 sps:$4 sm:$0xff]  }
 0x730   :  { %5172 = vmatprep.subr.bf16.mxu0 %v10740_v57  ;;  %5213 = vmatprep.subr.bf16.mxu1 %v10742_v55  ;;  %11721 = vst [vmem:[#allocation85_spill] sm:$0xff] %v10754_v1  ;;  %11722 = vst [vmem:[#allocation83_spill] sm:$0xff] %v10756_v54 }
 0x733   :  { %5173 = vmatpush1.bf16.msra.mxu0 %v10744_v19  ;;  %5214 = vmatpush1.bf16.msra.mxu1 %v10746_v56  ;;  %v4136_v19 = vld [vmem:[#allocation2 + $0x40] sm:$0xf0]  ;;  %v4137_v56 = vld [vmem:[#allocation2 + $0x48] sm:$0xf0] }
 0x734   :  { %5174 = vmatprep.subr.bf16.mxu0 %v10750_v58  ;;  %5215 = vmatprep.subr.bf16.mxu1 %v10758_v60  ;;  %v4144_v55 = vrot.slane %v4136_v19, 4  ;;  %v4145_v57 = vrot.slane %v4137_v56, 4 }
 0x736   :  { %v4152_v43 = vunpack.c.l.bf16 %v4144_v55  ;;  %v4153_v51 = vunpack.c.l.bf16 %v4145_v57 }
 0x737   :  { %5175 = vmatpush1.bf16.msra.mxu0 %v10754_v1  ;;  %5216 = vmatpush1.bf16.msra.mxu1 %v10756_v54  ;;  %v4147_v1 = vrot.slane %v4139_v53, 4 }
 0x738   :  { %5637 = vmatprep.subr.bf16.mxu0 %v10454_v50  ;;  %5678 = vmatprep.subr.bf16.mxu1 %v10456_v17  ;;  %v4138_v17 = vld [vmem:[#allocation2 + $0x50] sm:$0xf0] }
 0x739   :  { %v4155_v19 = vunpack.c.l.bf16 %v4147_v1  ;;  %v4146_v55 = vrot.slane %v4138_v17, 4 }
 0x73b   :  { %v4154_v63 = vunpack.c.l.bf16 %v4146_v55 }
 0x7ac   :  { %v4382_v30 = vpop.f32.mrb[52].mxu0  ;;  %v4423_v52 = vpop.f32.mrb[52].mxu1 }
 0x7ad   :  { %v4430_v58 = vadd.f32 %v4382_v30, %v4152_v43  ;;  %v4384_v15 = vpop.f32.mrb[53].mxu0  ;;  %v4425_v60 = vpop.f32.mrb[53].mxu1  ;;  %v4432_v57 = vadd.f32 %v4423_v52, %v4154_v63 }
 0x7ae   :  { %v4431_v49 = vadd.f32 %v4384_v15, %v4153_v51  ;;  %v4386_v47 = vpop.f32.mrb[54].mxu0  ;;  %v4427_v54 = vpop.f32.mrb[54].mxu1  ;;  %v4433_v56 = vadd.f32 %v4425_v60, %v4155_v19 }
 0x7af   :  { %v7861_v46 = vmul.f32 -1.442695, %v4430_v58  ;;  %v4387_v50 = vpop.f32.mrb[55].mxu0  ;;  %v4428_v41 = vpop.f32.mrb[55].mxu1 }
 0x7b0   :  { %v7862_v42 = vmul.f32 -1.442695, %v4431_v49  ;;  %v7863_v40 = vmul.f32 -1.442695, %v4433_v56 }
 0x7b1   :  { %8995 = vpow2.f32 %v7861_v46 }
 0x7b2   :  { %8997 = vpow2.f32 %v7862_v42 }
 0x7b3   :  { %8999 = vpow2.f32 %v7863_v40 }
 0x7b4   :  { %9001 = vtanh.f32 %v4432_v57 }
 0x7bb   :  { %v8996_v43 = vpop.eup %8995 }
 0x7bc   :  { %v8998_v30 = vpop.eup %8997  ;;  %v4910_v39 = vadd.f32 1.0, %v8996_v43 }
 0x7bd   :  { %v4916_v47 = vadd.f32 1.0, %v8998_v30  ;;  %v9000_v15 = vpop.eup %8999 }
 0x7be   :  { %9003 = vrcp.f32 %v4910_v39  ;;  %v9002_v41 = vpop.eup %9001  ;;  %v4923_v42 = vadd.f32 1.0, %v9000_v15 }
 0x7bf   :  { %9005 = vrcp.f32 %v4916_v47 }
 0x7c0   :  { %9007 = vrcp.f32 %v4923_v42 }
 0x7c8   :  { %v9004_v51 = vpop.eup %9003 }
 0x7c9   :  { %v9006_v49 = vpop.eup %9005  ;;  %v4927_v46 = vmul.f32 %v9004_v51, %v9002_v41 }
 0x7ca   :  { %v4926_v53 = vmul.f32 %v9006_v49, %v10461_v33  ;;  %v9008_v63 = vpop.eup %9007 }
 0x7cc   :  { %v10767_v58 = vadd.f32 %v4927_v46, %v4926_v53 }
 0x7ce   :  { %9009 = vtanh.f32 %v10767_v58 }
 0x7d8   :  { %v9010_v52 = vpop.eup %9009 }
 0x7d9   :  { %v4930_v40 = vmul.f32 %v9010_v52, %v9008_v63 }
 0x7db   :  { %v4931_v60 = vpack.c.bf16 %v4930_v40, %v4930_v40 }
 0x7dd   :  { %4932 = vst [vmem:[#allocation3] sm:$0xf] %v4931_v60 }
 0x7ec   :  { %v4859_v39 = vpop.f32.mrb[56].mxu0  ;;  %v4900_v1 = vpop.f32.mrb[56].mxu1 }
 0x7ed   :  { %v4860_v54 = vadd.f32 %v4859_v39, %v9901_v32  ;;  %v4861_v50 = vpop.f32.mrb[57].mxu0  ;;  %v4902_v17 = vpop.f32.mrb[57].mxu1  ;;  %v4901_v41 = vadd.f32 %v4900_v1, %v9916_v26 }
 0x7ee   :  { %v4862_v19 = vadd.f32 %v4861_v50, %v9905_v6  ;;  %v4863_v55 = vpop.f32.mrb[58].mxu0  ;;  %v4904_v33 = vpop.f32.mrb[58].mxu1  ;;  %v4903_v47 = vadd.f32 %v4902_v17, %v9911_v5 }
 0x7ef   :  { %v7864_v56 = vmul.f32 -1.442695, %v4860_v54  ;;  %v4864_v57 = vpop.f32.mrb[59].mxu0  ;;  %v4905_v43 = vpop.f32.mrb[59].mxu1 }
 0x7f0   :  { %v7865_v30 = vmul.f32 -1.442695, %v4862_v19  ;;  %v7866_v15 = vmul.f32 -1.442695, %v4903_v47  ;;  %v11758_v57 = vmov 0   ;;  %v11759_v43 = vld [vmem:[#allocation56_spill] sm:$0xff] }
 0x7f1   :  { %9011 = vpow2.f32 %v7864_v56  ;;  %v11761_v47 = vld [vmem:[#allocation58_spill] sm:$0xff] }
 0x7f2   :  { %9013 = vpow2.f32 %v7865_v30  ;;  %v11760_v30 = vld [vmem:[#allocation57_spill] sm:$0xff] }
 0x7f3   :  { %9015 = vpow2.f32 %v7866_v15  ;;  %v11762_v15 = vld [vmem:[#allocation59_spill] sm:$0xff] }
 0x7f4   :  { %9017 = vtanh.f32 %v4901_v41  ;;  %v11763_v41 = vld [vmem:[#allocation60_spill] sm:$0xff] }
 0x7fb   :  { %v9012_v51 = vpop.eup %9011 }
 0x7fc   :  { %v9014_v49 = vpop.eup %9013  ;;  %v4936_v46 = vadd.f32 1.0, %v9012_v51  ;;  %v11764_v51 = vld [vmem:[#allocation61_spill] sm:$0xff] }
 0x7fd   :  { %v4942_v42 = vadd.f32 1.0, %v9014_v49  ;;  %v9016_v53 = vpop.eup %9015  ;;  %v11765_v49 = vld [vmem:[#allocation62_spill] sm:$0xff] }
 0x7fe   :  { %9019 = vrcp.f32 %v4936_v46  ;;  %v9018_v63 = vpop.eup %9017  ;;  %v4949_v39 = vadd.f32 1.0, %v9016_v53  ;;  %v11766_v46 = vld [vmem:[#allocation63_spill] sm:$0xff]  ;;  %v11768_v53 = vld [vmem:[#allocation65_spill] sm:$0xff] }
 0x7ff   :  { %9021 = vrcp.f32 %v4942_v42  ;;  %v11767_v42 = vld [vmem:[#allocation64_spill] sm:$0xff] }
 0x800   :  { %9023 = vrcp.f32 %v4949_v39  ;;  %v11773_v39 = vld [vmem:[#allocation70_spill] sm:$0xff] }
 0x808   :  { %v9020_v52 = vpop.eup %9019 }
 0x809   :  { %v9022_v40 = vpop.eup %9021  ;;  %v4953_v60 = vmul.f32 %v9020_v52, %v9018_v63  ;;  %v11769_v63 = vld [vmem:[#allocation66_spill] sm:$0xff]  ;;  %v11770_v52 = vld [vmem:[#allocation67_spill] sm:$0xff] }
 0x80a   :  { %v4952_v54 = vmul.f32 %v9022_v40, %v10469_v16  ;;  %v9024_v1 = vpop.eup %9023  ;;  %v11724_v16 = vld [vmem:[#allocation22_spill] sm:$0xff]  ;;  %v11771_v40 = vld [vmem:[#allocation68_spill] sm:$0xff] }
 0x80c   :  { %v10775_v50 = vadd.f32 %v4953_v60, %v4952_v54  ;;  %v11772_v60 = vld [vmem:[#allocation69_spill] sm:$0xff]  ;;  %v11774_v54 = vld [vmem:[#allocation71_spill] sm:$0xff] }
 0x80e   :  { %9025 = vtanh.f32 %v10775_v50 }
 0x818   :  { %v9026_v17 = vpop.eup %9025 }
 0x819   :  { %v4956_v19 = vmul.f32 %v9026_v17, %v9024_v1  ;;  %v11775_v1 = vld [vmem:[#allocation72_spill] sm:$0xff]  ;;  %v11776_v17 = vld [vmem:[#allocation73_spill] sm:$0xff] }
 0x81b   :  { %v4957_v55 = vpack.c.bf16 %v4956_v19, %v4956_v19  ;;  %v11777_v19 = vld [vmem:[#allocation74_spill] sm:$0xff] }
 0x81d   :  { %4958 = vst [vmem:[#allocation3 + $0x4] sm:$0xf] %v4957_v55  ;;  %v11778_v55 = vld [vmem:[#allocation75_spill] sm:$0xff] }
 0x824   :  { %v10778_v33 = vld [vmem:[#allocation3] sm:$0xff] }
 0x825   :  { %5193 = vmatmul.mubr.bf16.vlgmr.msra.gmra.mrb[60].mxu0 %v10778_v33  ;;  %5234 = vmatmul.mubr.bf16.vlgmr.msra.gmra.mrb[60].mxu1 %v10778_v33  ;;  %v7900_v56 = vcombine.high %v10778_v33, %v10778_v33 }
 0x826   :  { %5638 = vmatpush1.bf16.msra.mxu0 %v10472_v61  ;;  %5679 = vmatpush1.bf16.msra.mxu1 %v10474_v62  ;;  %v11725_v61 = vld [vmem:[#allocation23_spill] sm:$0xff]  ;;  %v11726_v62 = vld [vmem:[#allocation24_spill] sm:$0xff] }
 0x827   :  { %5669 = vmatprep.mubr.bf16.mxu0 %v7900_v56  ;;  %5710 = vmatprep.mubr.bf16.mxu1 %v7900_v56  ;;  %v11780_v56 = vld [vmem:[#allocation77_spill] sm:$0xff] }
 0x828   :  { %5639 = vmatprep.subr.bf16.mxu0 %v10478_v2  ;;  %5680 = vmatprep.subr.bf16.mxu1 %v10480_v24  ;;  %v11727_v2 = vld [vmem:[#allocation25_spill] sm:$0xff]  ;;  %v11728_v24 = vld [vmem:[#allocation26_spill] sm:$0xff] }
 0x82a   :  { %5640 = vmatpush1.bf16.msra.mxu0 %v10488_v4  ;;  %5681 = vmatpush1.bf16.msra.mxu1 %v10490_v35  ;;  %v11729_v4 = vld [vmem:[#allocation27_spill] sm:$0xff]  ;;  %v11730_v35 = vld [vmem:[#allocation28_spill] sm:$0xff] }
 0x82b   :  { %5641 = vmatprep.subr.bf16.mxu0 %v10492_v11  ;;  %5682 = vmatprep.subr.bf16.mxu1 %v10494_v25  ;;  %v11731_v11 = vld [vmem:[#allocation29_spill] sm:$0xff]  ;;  %v11732_v25 = vld [vmem:[#allocation30_spill] sm:$0xff] }
 0x82e   :  { %5642 = vmatpush1.bf16.msra.mxu0 %v10500_v7  ;;  %5683 = vmatpush1.bf16.msra.mxu1 %v10502_v10  ;;  %v11733_v7 = vld [vmem:[#allocation31_spill] sm:$0xff]  ;;  %v11734_v10 = vld [vmem:[#allocation32_spill] sm:$0xff] }
 0x82f   :  { %5643 = vmatprep.subr.bf16.mxu0 %v10506_v29  ;;  %5684 = vmatprep.subr.bf16.mxu1 %v10508_v27  ;;  %v11735_v29 = vld [vmem:[#allocation33_spill] sm:$0xff]  ;;  %v11736_v27 = vld [vmem:[#allocation34_spill] sm:$0xff] }
 0x832   :  { %5644 = vmatpush1.bf16.msra.mxu0 %v10512_v23  ;;  %5685 = vmatpush1.bf16.msra.mxu1 %v10514_v28  ;;  %v11737_v23 = vld [vmem:[#allocation35_spill] sm:$0xff]  ;;  %v11738_v28 = vld [vmem:[#allocation36_spill] sm:$0xff] }
 0x833   :  { %5645 = vmatprep.subr.bf16.mxu0 %v10518_v8  ;;  %5686 = vmatprep.subr.bf16.mxu1 %v10520_v12  ;;  %v11739_v8 = vld [vmem:[#allocation37_spill] sm:$0xff]  ;;  %v11740_v12 = vld [vmem:[#allocation38_spill] sm:$0xff] }
 0x836   :  { %5646 = vmatpush1.bf16.msra.mxu0 %v10524_v59  ;;  %5687 = vmatpush1.bf16.msra.mxu1 %v10526_v3  ;;  %v11741_v59 = vld [vmem:[#allocation39_spill] sm:$0xff]  ;;  %v11742_v3 = vld [vmem:[#allocation40_spill] sm:$0xff] }
 0x837   :  { %5647 = vmatprep.subr.bf16.mxu0 %v10530_v14  ;;  %5688 = vmatprep.subr.bf16.mxu1 %v10532_v20  ;;  %v11743_v14 = vld [vmem:[#allocation41_spill] sm:$0xff]  ;;  %v11744_v20 = vld [vmem:[#allocation42_spill] sm:$0xff] }
 0x83a   :  { %5648 = vmatpush1.bf16.msra.mxu0 %v10536_v34  ;;  %5689 = vmatpush1.bf16.msra.mxu1 %v10538_v21  ;;  %v11745_v34 = vld [vmem:[#allocation43_spill] sm:$0xff]  ;;  %v11746_v21 = vld [vmem:[#allocation44_spill] sm:$0xff] }
 0x83b   :  { %5649 = vmatprep.subr.bf16.mxu0 %v10542_v22  ;;  %5690 = vmatprep.subr.bf16.mxu1 %v10544_v13  ;;  %v11747_v22 = vld [vmem:[#allocation45_spill] sm:$0xff]  ;;  %v11748_v13 = vld [vmem:[#allocation46_spill] sm:$0xff] }
 0x83e   :  { %5650 = vmatpush1.bf16.msra.mxu0 %v10548_v37  ;;  %5691 = vmatpush1.bf16.msra.mxu1 %v10550_v0  ;;  %v11749_v37 = vld [vmem:[#allocation47_spill] sm:$0xff]  ;;  %v11750_v0 = vld [vmem:[#allocation48_spill] sm:$0xff] }
 0x83f   :  { %5651 = vmatprep.subr.bf16.mxu0 %v10554_v36  ;;  %5692 = vmatprep.subr.bf16.mxu1 %v10556_v9  ;;  %v11751_v36 = vld [vmem:[#allocation49_spill] sm:$0xff]  ;;  %v7899_v9 = vcombine.low %v10778_v33, %v10778_v33  ;;  %v11779_v33 = vld [vmem:[#allocation76_spill] sm:$0xff] }
 0x842   :  { %5652 = vmatpush1.bf16.msra.mxu0 %v10560_v45  ;;  %5693 = vmatpush1.bf16.msra.mxu1 %v10562_v18  ;;  %v11752_v45 = vld [vmem:[#allocation50_spill] sm:$0xff]  ;;  %v11753_v18 = vld [vmem:[#allocation51_spill] sm:$0xff] }
 0x843   :  { %5653 = vmatprep.subr.bf16.mxu0 %v10566_v44  ;;  %5694 = vmatprep.subr.bf16.mxu1 %v10568_v38  ;;  %v11754_v44 = vld [vmem:[#allocation52_spill] sm:$0xff]  ;;  %v11755_v38 = vld [vmem:[#allocation53_spill] sm:$0xff] }
 0x846   :  { %5654 = vmatpush1.bf16.msra.mxu0 %v10572_v48  ;;  %5695 = vmatpush1.bf16.msra.mxu1 %v10574_v31  ;;  %v11756_v48 = vld [vmem:[#allocation54_spill] sm:$0xff]  ;;  %v11757_v31 = vld [vmem:[#allocation55_spill] sm:$0xff] }
 0x847   :  { %5655 = vmatprep.subr.bf16.mxu0 %v11724_v16  ;;  %5696 = vmatprep.subr.bf16.mxu1 %v11725_v61  ;;  %v11781_v16 = vld [vmem:[#allocation82_spill] sm:$0xff]  ;;  %v11782_v61 = vld [vmem:[#allocation84_spill] sm:$0xff] }
 0x84a   :  { %5656 = vmatpush1.bf16.msra.mxu0 %v11726_v62  ;;  %5697 = vmatpush1.bf16.msra.mxu1 %v11727_v2  ;;  %v11783_v62 = vld [vmem:[#allocation85_spill] sm:$0xff]  ;;  %v11784_v2 = vld [vmem:[#allocation83_spill] sm:$0xff] }
 0x84b   :  { %5657 = vmatprep.subr.bf16.mxu0 %v11728_v24  ;;  %5698 = vmatprep.subr.bf16.mxu1 %v11729_v4  ;;  %v10882_v24 = vld [vmem:[#allocation10 + $0x4] ss:$16 sps:$4 sm:$0xff]   ;;  %v10884_v4 = vld [vmem:[#allocation10 + $0xc] ss:$16 sps:$4 sm:$0xff]  }
 0x84e   :  { %5658 = vmatpush1.bf16.msra.mxu0 %v11730_v35  ;;  %5699 = vmatpush1.bf16.msra.mxu1 %v11731_v11  ;;  %v4960_v35 = vld [vmem:[#allocation2 + $0x60] ss:$16 sps:$4 sm:$0xff]   ;;  %v4961_v11 = vld [vmem:[#allocation2 + $0x68] ss:$16 sps:$4 sm:$0xff]  }
 0x84f   :  { %5659 = vmatprep.subr.bf16.mxu0 %v11732_v25  ;;  %5700 = vmatprep.subr.bf16.mxu1 %v11733_v7  ;;  %v4964_v25 = vunpack.c.l.bf16 %v4960_v35 }
 0x852   :  { %5660 = vmatpush1.bf16.msra.mxu0 %v11734_v10  ;;  %5701 = vmatpush1.bf16.msra.mxu1 %v11735_v29  ;;  %v4965_v29 = vunpack.c.l.bf16 %v4961_v11 }
 0x853   :  { %5661 = vmatprep.subr.bf16.mxu0 %v11736_v27  ;;  %5702 = vmatprep.subr.bf16.mxu1 %v11737_v23 }
 0x856   :  { %5662 = vmatpush1.bf16.msra.mxu0 %v11738_v28  ;;  %5703 = vmatpush1.bf16.msra.mxu1 %v11739_v8 }
 0x857   :  { %5663 = vmatprep.subr.bf16.mxu0 %v11740_v12  ;;  %5704 = vmatprep.subr.bf16.mxu1 %v11741_v59 }
 0x85a   :  { %5664 = vmatpush1.bf16.msra.mxu0 %v11742_v3  ;;  %5705 = vmatpush1.bf16.msra.mxu1 %v11743_v14 }
 0x85b   :  { %5665 = vmatprep.subr.bf16.mxu0 %v11744_v20  ;;  %5706 = vmatprep.subr.bf16.mxu1 %v11745_v34 }
 0x85e   :  { %5666 = vmatpush1.bf16.msra.mxu0 %v11746_v21  ;;  %5707 = vmatpush1.bf16.msra.mxu1 %v11747_v22  ;;  %v4967_v21 = vunpack.c.h.bf16 %v4961_v11 }
 0x85f   :  { %5667 = vmatprep.subr.bf16.mxu0 %v11748_v13  ;;  %5708 = vmatprep.subr.bf16.mxu1 %v11749_v37  ;;  %v4966_v13 = vunpack.c.h.bf16 %v4960_v35 }
 0x862   :  { %5668 = vmatpush1.bf16.msra.mxu0 %v11750_v0  ;;  %5709 = vmatpush1.bf16.msra.mxu1 %v11751_v36 }
 0x863   :  { %5984 = vmatprep.subr.bf16.mxu0 %v11752_v45  ;;  %6025 = vmatprep.subr.bf16.mxu1 %v11753_v18 }
 0x865   :  { %5670 = vmatmul.mubr.bf16.vlgmr.msra.gmra.mrb[64].mxu0 %v7899_v9  ;;  %5711 = vmatmul.mubr.bf16.vlgmr.msra.gmra.mrb[64].mxu1 %v7899_v9 }
 0x866   :  { %5985 = vmatpush1.bf16.msra.mxu0 %v11754_v44  ;;  %6026 = vmatpush1.bf16.msra.mxu1 %v11755_v38 }
 0x867   :  { %5986 = vmatprep.subr.bf16.mxu0 %v11756_v48  ;;  %6027 = vmatprep.subr.bf16.mxu1 %v11757_v31 }
 0x868   :  { %6016 = vmatprep.mubr.bf16.mxu0 %v11758_v57  ;;  %6057 = vmatprep.mubr.bf16.mxu1 %v11758_v57 }
 0x86a   :  { %5987 = vmatpush1.bf16.msra.mxu0 %v11759_v43  ;;  %6028 = vmatpush1.bf16.msra.mxu1 %v11760_v30 }
 0x86b   :  { %5988 = vmatprep.subr.bf16.mxu0 %v11761_v47  ;;  %6029 = vmatprep.subr.bf16.mxu1 %v11762_v15 }
 0x86e   :  { %5989 = vmatpush1.bf16.msra.mxu0 %v11763_v41  ;;  %6030 = vmatpush1.bf16.msra.mxu1 %v11764_v51 }
 0x86f   :  { %5990 = vmatprep.subr.bf16.mxu0 %v11765_v49  ;;  %6031 = vmatprep.subr.bf16.mxu1 %v11766_v46 }
 0x872   :  { %5991 = vmatpush1.bf16.msra.mxu0 %v11767_v42  ;;  %6032 = vmatpush1.bf16.msra.mxu1 %v11768_v53 }
 0x873   :  { %5992 = vmatprep.subr.bf16.mxu0 %v11769_v63  ;;  %6033 = vmatprep.subr.bf16.mxu1 %v11770_v52 }
 0x876   :  { %5993 = vmatpush1.bf16.msra.mxu0 %v11771_v40  ;;  %6034 = vmatpush1.bf16.msra.mxu1 %v11772_v60 }
 0x877   :  { %5994 = vmatprep.subr.bf16.mxu0 %v11773_v39  ;;  %6035 = vmatprep.subr.bf16.mxu1 %v11774_v54 }
 0x87a   :  { %5995 = vmatpush1.bf16.msra.mxu0 %v11775_v1  ;;  %6036 = vmatpush1.bf16.msra.mxu1 %v11776_v17 }
 0x87b   :  { %5996 = vmatprep.subr.bf16.mxu0 %v11777_v19  ;;  %6037 = vmatprep.subr.bf16.mxu1 %v11778_v55 }
 0x87e   :  { %5997 = vmatpush1.bf16.msra.mxu0 %v11779_v33  ;;  %6038 = vmatpush1.bf16.msra.mxu1 %v11780_v56 }
 0x87f   :  { %5998 = vmatprep.subr.bf16.mxu0 %v11781_v16  ;;  %6039 = vmatprep.subr.bf16.mxu1 %v11782_v61 }
 0x882   :  { %5999 = vmatpush1.bf16.msra.mxu0 %v11783_v62  ;;  %6040 = vmatpush1.bf16.msra.mxu1 %v11784_v2 }
 0x883   :  { %6461 = vmatprep.subr.bf16.mxu0 %v10882_v24  ;;  %6502 = vmatprep.subr.bf16.mxu1 %v10884_v4 }
 0x8f8   :  { %v5194_v7 = vpop.f32.mrb[60].mxu0  ;;  %v5235_v10 = vpop.f32.mrb[60].mxu1 }
 0x8f9   :  { %v5242_v27 = vadd.f32 %v5194_v7, %v4964_v25  ;;  %v5196_v23 = vpop.f32.mrb[61].mxu0  ;;  %v5237_v28 = vpop.f32.mrb[61].mxu1  ;;  %v5244_v0 = vadd.f32 %v5235_v10, %v4966_v13  ;;  %v10920_v13 = vld [vmem:[#allocation10 + $0x44] ss:$16 sps:$4 sm:$0xff]  }
 0x8fa   :  { %v5243_v8 = vadd.f32 %v5196_v23, %v4965_v29  ;;  %v5198_v12 = vpop.f32.mrb[62].mxu0  ;;  %v5239_v59 = vpop.f32.mrb[62].mxu1  ;;  %v5245_v22 = vadd.f32 %v5237_v28, %v4967_v21  ;;  %v10916_v21 = vld [vmem:[#allocation10 + $0x20] ss:$16 sps:$4 sm:$0xff]  }
 0x8fb   :  { %v7965_v3 = vmul.f32 -1.442695, %v5242_v27  ;;  %v5199_v14 = vpop.f32.mrb[63].mxu0  ;;  %v5240_v20 = vpop.f32.mrb[63].mxu1  ;;  %v10900_v59 = vld [vmem:[#allocation10] ss:$16 sps:$4 sm:$0xff]  }
 0x8fc   :  { %v7966_v34 = vmul.f32 -1.442695, %v5243_v8  ;;  %v7967_v37 = vmul.f32 -1.442695, %v5245_v22  ;;  %v10906_v20 = vld [vmem:[#allocation10 + $0x24] ss:$16 sps:$4 sm:$0xff]  }
 0x8fd   :  { %9027 = vpow2.f32 %v7965_v3  ;;  %v10902_v3 = vld [vmem:[#allocation10 + $0x8] ss:$16 sps:$4 sm:$0xff]  }
 0x8fe   :  { %9029 = vpow2.f32 %v7966_v34  ;;  %v10908_v34 = vld [vmem:[#allocation10 + $0x2c] ss:$16 sps:$4 sm:$0xff]   ;;  %v10918_v22 = vld [vmem:[#allocation10 + $0x28] ss:$16 sps:$4 sm:$0xff]  }
 0x8ff   :  { %9031 = vpow2.f32 %v7967_v37  ;;  %v10922_v37 = vld [vmem:[#allocation10 + $0x4c] ss:$16 sps:$4 sm:$0xff]  }
 0x900   :  { %9033 = vtanh.f32 %v5244_v0  ;;  %v10928_v0 = vld [vmem:[#allocation10 + $0x40] ss:$16 sps:$4 sm:$0xff]  }
 0x907   :  { %v9028_v36 = vpop.eup %9027 }
 0x908   :  { %v9030_v9 = vpop.eup %9029  ;;  %v5722_v45 = vadd.f32 1.0, %v9028_v36  ;;  %v10930_v36 = vld [vmem:[#allocation10 + $0x48] ss:$16 sps:$4 sm:$0xff]  }
 0x909   :  { %v5728_v18 = vadd.f32 1.0, %v9030_v9  ;;  %v9032_v44 = vpop.eup %9031  ;;  %v10934_v9 = vld [vmem:[#allocation10 + $0x64] ss:$16 sps:$4 sm:$0xff]  }
 0x90a   :  { %9035 = vrcp.f32 %v5722_v45  ;;  %v9034_v38 = vpop.eup %9033  ;;  %v5735_v43 = vadd.f32 1.0, %v9032_v44  ;;  %v10936_v45 = vld [vmem:[#allocation10 + $0x6c] ss:$16 sps:$4 sm:$0xff]   ;;  %v10942_v44 = vld [vmem:[#allocation10 + $0x68] ss:$16 sps:$4 sm:$0xff]  }
 0x90b   :  { %9037 = vrcp.f32 %v5728_v18  ;;  %v10940_v18 = vld [vmem:[#allocation10 + $0x60] ss:$16 sps:$4 sm:$0xff]  }
 0x90c   :  { %9039 = vrcp.f32 %v5735_v43  ;;  %v10958_v43 = vld [vmem:[#allocation10 + $0xa4] ss:$16 sps:$4 sm:$0xff]  }
 0x914   :  { %v9036_v48 = vpop.eup %9035 }
 0x915   :  { %v9038_v31 = vpop.eup %9037  ;;  %v5739_v57 = vmul.f32 %v9036_v48, %v9034_v38  ;;  %v10946_v38 = vld [vmem:[#allocation10 + $0x84] ss:$16 sps:$4 sm:$0xff]   ;;  %v10948_v48 = vld [vmem:[#allocation10 + $0x8c] ss:$16 sps:$4 sm:$0xff]  }
 0x916   :  { %v5738_v30 = vmul.f32 %v9038_v31, %v10767_v58  ;;  %v9040_v15 = vpop.eup %9039  ;;  %v10952_v31 = vld [vmem:[#allocation10 + $0x80] ss:$16 sps:$4 sm:$0xff]  }
 0x918   :  { %v10889_v47 = vadd.f32 %v5739_v57, %v5738_v30  ;;  %v10954_v57 = vld [vmem:[#allocation10 + $0x88] ss:$16 sps:$4 sm:$0xff]   ;;  %v10960_v30 = vld [vmem:[#allocation10 + $0xac] ss:$16 sps:$4 sm:$0xff]  }
 0x91a   :  { %11785 = vst [vmem:[#allocation22_spill] sm:$0xff] %v10889_v47  ;;  %9041 = vtanh.f32 %v10889_v47  ;;  %v11084_v47 = vld [vmem:[#allocation10 + $0x1e0] ss:$16 sps:$4 sm:$0xff]  }
 0x924   :  { %v9042_v41 = vpop.eup %9041 }
 0x925   :  { %v5742_v51 = vmul.f32 %v9042_v41, %v9040_v15  ;;  %v10964_v15 = vld [vmem:[#allocation10 + $0xa0] ss:$16 sps:$4 sm:$0xff]   ;;  %v10966_v41 = vld [vmem:[#allocation10 + $0xa8] ss:$16 sps:$4 sm:$0xff]  }
 0x927   :  { %v5743_v49 = vpack.c.bf16 %v5742_v51, %v5742_v51  ;;  %v10970_v51 = vld [vmem:[#allocation10 + $0xc4] ss:$16 sps:$4 sm:$0xff]  }
 0x929   :  { %5744 = vst [vmem:[#allocation3] sm:$0xf] %v5743_v49  ;;  %v10972_v49 = vld [vmem:[#allocation10 + $0xcc] ss:$16 sps:$4 sm:$0xff]  }
 0x938   :  { %v5671_v46 = vpop.f32.mrb[64].mxu0  ;;  %v5712_v42 = vpop.f32.mrb[64].mxu1 }
 0x939   :  { %v5672_v53 = vadd.f32 %v5671_v46, %v9901_v32  ;;  %v5673_v63 = vpop.f32.mrb[65].mxu0  ;;  %v5714_v52 = vpop.f32.mrb[65].mxu1  ;;  %v5713_v33 = vadd.f32 %v5712_v42, %v9916_v26  ;;  %v10976_v46 = vld [vmem:[#allocation10 + $0xc0] ss:$16 sps:$4 sm:$0xff]   ;;  %v10978_v42 = vld [vmem:[#allocation10 + $0xc8] ss:$16 sps:$4 sm:$0xff]  }
 0x93a   :  { %v5674_v40 = vadd.f32 %v5673_v63, %v9905_v6  ;;  %v5675_v60 = vpop.f32.mrb[66].mxu0  ;;  %v5716_v58 = vpop.f32.mrb[66].mxu1  ;;  %v5715_v19 = vadd.f32 %v5714_v52, %v9911_v5  ;;  %v10984_v63 = vld [vmem:[#allocation10 + $0xec] ss:$16 sps:$4 sm:$0xff]   ;;  %v10988_v52 = vld [vmem:[#allocation10 + $0xe0] ss:$16 sps:$4 sm:$0xff]  }
 0x93b   :  { %v7968_v39 = vmul.f32 -1.442695, %v5672_v53  ;;  %v5676_v54 = vpop.f32.mrb[67].mxu0  ;;  %v5717_v1 = vpop.f32.mrb[67].mxu1  ;;  %v10982_v53 = vld [vmem:[#allocation10 + $0xe4] ss:$16 sps:$4 sm:$0xff]  }
 0x93c   :  { %v7969_v17 = vmul.f32 -1.442695, %v5674_v40  ;;  %v7970_v55 = vmul.f32 -1.442695, %v5715_v19  ;;  %v10990_v40 = vld [vmem:[#allocation10 + $0xe8] ss:$16 sps:$4 sm:$0xff]  }
 0x93d   :  { %9043 = vpow2.f32 %v7968_v39  ;;  %v10994_v60 = vld [vmem:[#allocation10 + $0x104] ss:$16 sps:$4 sm:$0xff]   ;;  %v10996_v58 = vld [vmem:[#allocation10 + $0x10c] ss:$16 sps:$4 sm:$0xff]   ;;  %v11000_v39 = vld [vmem:[#allocation10 + $0x100] ss:$16 sps:$4 sm:$0xff]  }
 0x93e   :  { %9045 = vpow2.f32 %v7969_v17  ;;  %v11002_v54 = vld [vmem:[#allocation10 + $0x108] ss:$16 sps:$4 sm:$0xff]   ;;  %v11006_v1 = vld [vmem:[#allocation10 + $0x124] ss:$16 sps:$4 sm:$0xff]   ;;  %v11008_v17 = vld [vmem:[#allocation10 + $0x12c] ss:$16 sps:$4 sm:$0xff]  }
 0x93f   :  { %9047 = vpow2.f32 %v7970_v55  ;;  %v11012_v19 = vld [vmem:[#allocation10 + $0x120] ss:$16 sps:$4 sm:$0xff]   ;;  %v11014_v55 = vld [vmem:[#allocation10 + $0x128] ss:$16 sps:$4 sm:$0xff]   ;;  %v11078_v6 = vld [vmem:[#allocation10 + $0x1e4] ss:$16 sps:$4 sm:$0xff]  }
 0x940   :  { %9049 = vtanh.f32 %v5713_v33  ;;  %v11018_v33 = vld [vmem:[#allocation10 + $0x144] ss:$16 sps:$4 sm:$0xff]   ;;  %v11072_v26 = vld [vmem:[#allocation10 + $0x1c0] ss:$16 sps:$4 sm:$0xff]   ;;  %v11074_v5 = vld [vmem:[#allocation10 + $0x1c8] ss:$16 sps:$4 sm:$0xff]  }
 0x941   :  { %v11080_v32 = vld [vmem:[#allocation10 + $0x1ec] ss:$16 sps:$4 sm:$0xff]  }
 0x947   :  { %v9044_v56 = vpop.eup %9043 }
 0x948   :  { %v9046_v16 = vpop.eup %9045  ;;  %v5748_v61 = vadd.f32 1.0, %v9044_v56  ;;  %v11020_v56 = vld [vmem:[#allocation10 + $0x14c] ss:$16 sps:$4 sm:$0xff]  }
 0x949   :  { %v5754_v62 = vadd.f32 1.0, %v9046_v16  ;;  %v9048_v2 = vpop.eup %9047  ;;  %v11024_v16 = vld [vmem:[#allocation10 + $0x140] ss:$16 sps:$4 sm:$0xff]  }
 0x94a   :  { %9051 = vrcp.f32 %v5748_v61  ;;  %v9050_v35 = vpop.eup %9049  ;;  %v5761_v10 = vadd.f32 1.0, %v9048_v2  ;;  %v11026_v61 = vld [vmem:[#allocation10 + $0x148] ss:$16 sps:$4 sm:$0xff]   ;;  %v11032_v2 = vld [vmem:[#allocation10 + $0x16c] ss:$16 sps:$4 sm:$0xff]  }
 0x94b   :  { %9053 = vrcp.f32 %v5754_v62  ;;  %v11030_v62 = vld [vmem:[#allocation10 + $0x164] ss:$16 sps:$4 sm:$0xff]  }
 0x94c   :  { %9055 = vrcp.f32 %v5761_v10  ;;  %v11048_v10 = vld [vmem:[#allocation10 + $0x180] ss:$16 sps:$4 sm:$0xff]  }
 0x954   :  { %v9052_v11 = vpop.eup %9051 }
 0x955   :  { %v9054_v25 = vpop.eup %9053  ;;  %v5765_v7 = vmul.f32 %v9052_v11, %v9050_v35  ;;  %v11036_v35 = vld [vmem:[#allocation10 + $0x160] ss:$16 sps:$4 sm:$0xff]   ;;  %v11038_v11 = vld [vmem:[#allocation10 + $0x168] ss:$16 sps:$4 sm:$0xff]  }
 0x956   :  { %v5764_v29 = vmul.f32 %v9054_v25, %v10775_v50  ;;  %v9056_v23 = vpop.eup %9055  ;;  %v11042_v25 = vld [vmem:[#allocation10 + $0x184] ss:$16 sps:$4 sm:$0xff]  }
 0x958   :  { %v10897_v27 = vadd.f32 %v5765_v7, %v5764_v29  ;;  %v11044_v7 = vld [vmem:[#allocation10 + $0x18c] ss:$16 sps:$4 sm:$0xff]   ;;  %v11050_v29 = vld [vmem:[#allocation10 + $0x188] ss:$16 sps:$4 sm:$0xff]  }
 0x95a   :  { %11786 = vst [vmem:[#allocation23_spill] sm:$0xff] %v10897_v27  ;;  %9057 = vtanh.f32 %v10897_v27  ;;  %v11068_v27 = vld [vmem:[#allocation10 + $0x1cc] ss:$16 sps:$4 sm:$0xff]  }
 0x95b   :  { %11788 = vst [vmem:[#allocation25_spill] sm:$0xff] %v11068_v27 }
 0x964   :  { %v9058_v28 = vpop.eup %9057 }
 0x965   :  { %v5768_v8 = vmul.f32 %v9058_v28, %v9056_v23  ;;  %v11054_v23 = vld [vmem:[#allocation10 + $0x1a4] ss:$16 sps:$4 sm:$0xff]   ;;  %v11056_v28 = vld [vmem:[#allocation10 + $0x1ac] ss:$16 sps:$4 sm:$0xff]  }
 0x967   :  { %v5769_v12 = vpack.c.bf16 %v5768_v8, %v5768_v8  ;;  %v11060_v8 = vld [vmem:[#allocation10 + $0x1a0] ss:$16 sps:$4 sm:$0xff]  }
 0x968   :  { %11787 = vst [vmem:[#allocation24_spill] sm:$0xff] %v11060_v8 }
 0x969   :  { %5770 = vst [vmem:[#allocation3 + $0x4] sm:$0xf] %v5769_v12  ;;  %v11062_v12 = vld [vmem:[#allocation10 + $0x1a8] ss:$16 sps:$4 sm:$0xff]  }
 0x970   :  { %v10904_v14 = vld [vmem:[#allocation3] sm:$0xff] }
 0x971   :  { %6017 = vmatmul.mubr.bf16.vlgmr.msra.gmra.mrb[68].mxu0 %v10904_v14  ;;  %6058 = vmatmul.mubr.bf16.vlgmr.msra.gmra.mrb[68].mxu1 %v10904_v14  ;;  %v8004_v50 = vcombine.high %v10904_v14, %v10904_v14 }
 0x972   :  { %6462 = vmatpush1.bf16.msra.mxu0 %v10900_v59  ;;  %6503 = vmatpush1.bf16.msra.mxu1 %v10902_v3 }
 0x973   :  { %6493 = vmatprep.mubr.bf16.mxu0 %v8004_v50  ;;  %6534 = vmatprep.mubr.bf16.mxu1 %v8004_v50  ;;  %v11066_v50 = vld [vmem:[#allocation10 + $0x1c4] ss:$16 sps:$4 sm:$0xff]  }
 0x974   :  { %6463 = vmatprep.subr.bf16.mxu0 %v10906_v20  ;;  %6504 = vmatprep.subr.bf16.mxu1 %v10908_v34 }
 0x976   :  { %6464 = vmatpush1.bf16.msra.mxu0 %v10916_v21  ;;  %6505 = vmatpush1.bf16.msra.mxu1 %v10918_v22 }
 0x977   :  { %6465 = vmatprep.subr.bf16.mxu0 %v10920_v13  ;;  %6506 = vmatprep.subr.bf16.mxu1 %v10922_v37 }
 0x97a   :  { %6466 = vmatpush1.bf16.msra.mxu0 %v10928_v0  ;;  %6507 = vmatpush1.bf16.msra.mxu1 %v10930_v36 }
 0x97b   :  { %6467 = vmatprep.subr.bf16.mxu0 %v10934_v9  ;;  %6508 = vmatprep.subr.bf16.mxu1 %v10936_v45 }
 0x97e   :  { %6468 = vmatpush1.bf16.msra.mxu0 %v10940_v18  ;;  %6509 = vmatpush1.bf16.msra.mxu1 %v10942_v44 }
 0x97f   :  { %6469 = vmatprep.subr.bf16.mxu0 %v10946_v38  ;;  %6510 = vmatprep.subr.bf16.mxu1 %v10948_v48 }
 0x982   :  { %6470 = vmatpush1.bf16.msra.mxu0 %v10952_v31  ;;  %6511 = vmatpush1.bf16.msra.mxu1 %v10954_v57 }
 0x983   :  { %6471 = vmatprep.subr.bf16.mxu0 %v10958_v43  ;;  %6512 = vmatprep.subr.bf16.mxu1 %v10960_v30 }
 0x986   :  { %6472 = vmatpush1.bf16.msra.mxu0 %v10964_v15  ;;  %6513 = vmatpush1.bf16.msra.mxu1 %v10966_v41 }
 0x987   :  { %6473 = vmatprep.subr.bf16.mxu0 %v10970_v51  ;;  %6514 = vmatprep.subr.bf16.mxu1 %v10972_v49 }
 0x98a   :  { %6474 = vmatpush1.bf16.msra.mxu0 %v10976_v46  ;;  %6515 = vmatpush1.bf16.msra.mxu1 %v10978_v42 }
 0x98b   :  { %6475 = vmatprep.subr.bf16.mxu0 %v10982_v53  ;;  %6516 = vmatprep.subr.bf16.mxu1 %v10984_v63 }
 0x98e   :  { %6476 = vmatpush1.bf16.msra.mxu0 %v10988_v52  ;;  %6517 = vmatpush1.bf16.msra.mxu1 %v10990_v40 }
 0x98f   :  { %6477 = vmatprep.subr.bf16.mxu0 %v10994_v60  ;;  %6518 = vmatprep.subr.bf16.mxu1 %v10996_v58 }
 0x992   :  { %6478 = vmatpush1.bf16.msra.mxu0 %v11000_v39  ;;  %6519 = vmatpush1.bf16.msra.mxu1 %v11002_v54 }
 0x993   :  { %6479 = vmatprep.subr.bf16.mxu0 %v11006_v1  ;;  %6520 = vmatprep.subr.bf16.mxu1 %v11008_v17 }
 0x996   :  { %6480 = vmatpush1.bf16.msra.mxu0 %v11012_v19  ;;  %6521 = vmatpush1.bf16.msra.mxu1 %v11014_v55 }
 0x997   :  { %6481 = vmatprep.subr.bf16.mxu0 %v11018_v33  ;;  %6522 = vmatprep.subr.bf16.mxu1 %v11020_v56 }
 0x99a   :  { %6482 = vmatpush1.bf16.msra.mxu0 %v11024_v16  ;;  %6523 = vmatpush1.bf16.msra.mxu1 %v11026_v61 }
 0x99b   :  { %6483 = vmatprep.subr.bf16.mxu0 %v11030_v62  ;;  %6524 = vmatprep.subr.bf16.mxu1 %v11032_v2 }
 0x99e   :  { %6484 = vmatpush1.bf16.msra.mxu0 %v11036_v35  ;;  %6525 = vmatpush1.bf16.msra.mxu1 %v11038_v11 }
 0x99f   :  { %6485 = vmatprep.subr.bf16.mxu0 %v11042_v25  ;;  %6526 = vmatprep.subr.bf16.mxu1 %v11044_v7 }
 0x9a2   :  { %6486 = vmatpush1.bf16.msra.mxu0 %v11048_v10  ;;  %6527 = vmatpush1.bf16.msra.mxu1 %v11050_v29 }
 0x9a3   :  { %6487 = vmatprep.subr.bf16.mxu0 %v11054_v23  ;;  %6528 = vmatprep.subr.bf16.mxu1 %v11056_v28 }
 0x9a6   :  { %6488 = vmatpush1.bf16.msra.mxu0 %v11060_v8  ;;  %6529 = vmatpush1.bf16.msra.mxu1 %v11062_v12  ;;  %v11086_v8 = vld [vmem:[#allocation10 + $0x1e8] ss:$16 sps:$4 sm:$0xff]  }
 0x9a7   :  { %6489 = vmatprep.subr.bf16.mxu0 %v11066_v50  ;;  %6530 = vmatprep.subr.bf16.mxu1 %v11068_v27  ;;  %v8003_v27 = vcombine.low %v10904_v14, %v10904_v14 }
 0x9aa   :  { %6490 = vmatpush1.bf16.msra.mxu0 %v11072_v26  ;;  %6531 = vmatpush1.bf16.msra.mxu1 %v11074_v5 }
 0x9ab   :  { %6491 = vmatprep.subr.bf16.mxu0 %v11078_v6  ;;  %6532 = vmatprep.subr.bf16.mxu1 %v11080_v32 }
 0x9ae   :  { %6492 = vmatpush1.bf16.msra.mxu0 %v11084_v47  ;;  %6533 = vmatpush1.bf16.msra.mxu1 %v11086_v8 }
 0x9af   :  { %6987 = vmatprep.subr.bf16.mxu0 %v10882_v24  ;;  %7028 = vmatprep.subr.bf16.mxu1 %v10884_v4  ;;  %v11789_v24 = vld [vmem:[#allocation24_spill] sm:$0xff]  ;;  %v11790_v4 = vld [vmem:[#allocation25_spill] sm:$0xff] }
 0x9b1   :  { %6494 = vmatmul.mubr.bf16.vlgmr.msra.gmra.mrb[72].mxu0 %v8003_v27  ;;  %6535 = vmatmul.mubr.bf16.vlgmr.msra.gmra.mrb[72].mxu1 %v8003_v27  ;;  %v5772_v27 = vld [vmem:[#allocation2 + $0x60] sm:$0xf0] }
 0x9b2   :  { %6988 = vmatpush1.bf16.msra.mxu0 %v10900_v59  ;;  %7029 = vmatpush1.bf16.msra.mxu1 %v10902_v3  ;;  %v5773_v59 = vld [vmem:[#allocation2 + $0x68] sm:$0xf0]  ;;  %v5780_v3 = vrot.slane %v5772_v27, 4 }
 0x9b3   :  { %6989 = vmatprep.subr.bf16.mxu0 %v10906_v20  ;;  %7030 = vmatprep.subr.bf16.mxu1 %v10908_v34  ;;  %v5781_v14 = vrot.slane %v5773_v59, 4  ;;  %v5775_v34 = vld [vmem:[#allocation2 + $0x78] sm:$0xf0] }
 0x9b4   :  { %v5788_v20 = vunpack.c.l.bf16 %v5780_v3 }
 0x9b6   :  { %6990 = vmatpush1.bf16.msra.mxu0 %v10916_v21  ;;  %7031 = vmatpush1.bf16.msra.mxu1 %v10918_v22 }
 0x9b7   :  { %6991 = vmatprep.subr.bf16.mxu0 %v10920_v13  ;;  %7032 = vmatprep.subr.bf16.mxu1 %v10922_v37  ;;  %v5789_v13 = vunpack.c.l.bf16 %v5781_v14 }
 0x9ba   :  { %6992 = vmatpush1.bf16.msra.mxu0 %v10928_v0  ;;  %7033 = vmatpush1.bf16.msra.mxu1 %v10930_v36 }
 0x9bb   :  { %6993 = vmatprep.subr.bf16.mxu0 %v10934_v9  ;;  %7034 = vmatprep.subr.bf16.mxu1 %v10936_v45 }
 0x9be   :  { %6994 = vmatpush1.bf16.msra.mxu0 %v10940_v18  ;;  %7035 = vmatpush1.bf16.msra.mxu1 %v10942_v44  ;;  %v5774_v18 = vld [vmem:[#allocation2 + $0x70] sm:$0xf0] }
 0x9bf   :  { %6995 = vmatprep.subr.bf16.mxu0 %v10946_v38  ;;  %7036 = vmatprep.subr.bf16.mxu1 %v10948_v48  ;;  %v5782_v48 = vrot.slane %v5774_v18, 4  ;;  %v8843_v18 = vld [vmem:[#allocation12] sm:$0xff]  }
 0x9c2   :  { %6996 = vmatpush1.bf16.msra.mxu0 %v10952_v31  ;;  %7037 = vmatpush1.bf16.msra.mxu1 %v10954_v57  ;;  %v5790_v57 = vunpack.c.l.bf16 %v5782_v48  ;;  %v8845_v48 = vld [vmem:[#allocation12 + $0x10] sm:$0xff]  }
 0x9c3   :  { %6997 = vmatprep.subr.bf16.mxu0 %v10958_v43  ;;  %7038 = vmatprep.subr.bf16.mxu1 %v10960_v30 }
 0x9c6   :  { %6998 = vmatpush1.bf16.msra.mxu0 %v10964_v15  ;;  %7039 = vmatpush1.bf16.msra.mxu1 %v10966_v41 }
 0x9c7   :  { %6999 = vmatprep.subr.bf16.mxu0 %v10970_v51  ;;  %7040 = vmatprep.subr.bf16.mxu1 %v10972_v49 }
 0x9ca   :  { %7000 = vmatpush1.bf16.msra.mxu0 %v10976_v46  ;;  %7041 = vmatpush1.bf16.msra.mxu1 %v10978_v42 }
 0x9cb   :  { %7001 = vmatprep.subr.bf16.mxu0 %v10982_v53  ;;  %7042 = vmatprep.subr.bf16.mxu1 %v10984_v63 }
 0x9ce   :  { %7002 = vmatpush1.bf16.msra.mxu0 %v10988_v52  ;;  %7043 = vmatpush1.bf16.msra.mxu1 %v10990_v40 }
 0x9cf   :  { %7003 = vmatprep.subr.bf16.mxu0 %v10994_v60  ;;  %7044 = vmatprep.subr.bf16.mxu1 %v10996_v58  ;;  %v11791_v60 = vld [vmem:[#allocation22_spill] sm:$0xff] }
 0x9d2   :  { %7004 = vmatpush1.bf16.msra.mxu0 %v11000_v39  ;;  %7045 = vmatpush1.bf16.msra.mxu1 %v11002_v54 }
 0x9d3   :  { %7005 = vmatprep.subr.bf16.mxu0 %v11006_v1  ;;  %7046 = vmatprep.subr.bf16.mxu1 %v11008_v17 }
 0x9d6   :  { %7006 = vmatpush1.bf16.msra.mxu0 %v11012_v19  ;;  %7047 = vmatpush1.bf16.msra.mxu1 %v11014_v55 }
 0x9d7   :  { %7007 = vmatprep.subr.bf16.mxu0 %v11018_v33  ;;  %7048 = vmatprep.subr.bf16.mxu1 %v11020_v56  ;;  %v11792_v56 = vld [vmem:[#allocation78_spill] sm:$0xff] }
 0x9da   :  { %7008 = vmatpush1.bf16.msra.mxu0 %v11024_v16  ;;  %7049 = vmatpush1.bf16.msra.mxu1 %v11026_v61 }
 0x9db   :  { %7009 = vmatprep.subr.bf16.mxu0 %v11030_v62  ;;  %7050 = vmatprep.subr.bf16.mxu1 %v11032_v2  ;;  %v11793_v2 = vld [vmem:[#allocation79_spill] sm:$0xff] }
 0x9de   :  { %7010 = vmatpush1.bf16.msra.mxu0 %v11036_v35  ;;  %7051 = vmatpush1.bf16.msra.mxu1 %v11038_v11 }
 0x9df   :  { %7011 = vmatprep.subr.bf16.mxu0 %v11042_v25  ;;  %7052 = vmatprep.subr.bf16.mxu1 %v11044_v7 }
 0x9e2   :  { %7012 = vmatpush1.bf16.msra.mxu0 %v11048_v10  ;;  %7053 = vmatpush1.bf16.msra.mxu1 %v11050_v29 }
 0x9e3   :  { %7013 = vmatprep.subr.bf16.mxu0 %v11054_v23  ;;  %7054 = vmatprep.subr.bf16.mxu1 %v11056_v28  ;;  %v11794_v28 = vld [vmem:[#allocation80_spill] sm:$0xff] }
 0x9e6   :  { %7014 = vmatpush1.bf16.msra.mxu0 %v11789_v24  ;;  %7055 = vmatpush1.bf16.msra.mxu1 %v11062_v12 }
 0x9e7   :  { %7015 = vmatprep.subr.bf16.mxu0 %v11066_v50  ;;  %7056 = vmatprep.subr.bf16.mxu1 %v11790_v4  ;;  %v11795_v50 = vld [vmem:[#allocation81_spill] sm:$0xff] }
 0x9ea   :  { %7016 = vmatpush1.bf16.msra.mxu0 %v11072_v26  ;;  %7057 = vmatpush1.bf16.msra.mxu1 %v11074_v5 }
 0x9eb   :  { %7017 = vmatprep.subr.bf16.mxu0 %v11078_v6  ;;  %7058 = vmatprep.subr.bf16.mxu1 %v11080_v32  ;;  %v5783_v6 = vrot.slane %v5775_v34, 4 }
 0x9ed   :  { %v5791_v38 = vunpack.c.l.bf16 %v5783_v6 }
 0x9ee   :  { %7018 = vmatpush1.bf16.msra.mxu0 %v11084_v47  ;;  %7059 = vmatpush1.bf16.msra.mxu1 %v11086_v8 }
 0xa44   :  { %v6018_v21 = vpop.f32.mrb[68].mxu0  ;;  %v6059_v22 = vpop.f32.mrb[68].mxu1 }
 0xa45   :  { %v6066_v26 = vadd.f32 %v6018_v21, %v5788_v20  ;;  %v6020_v37 = vpop.f32.mrb[69].mxu0  ;;  %v6061_v5 = vpop.f32.mrb[69].mxu1  ;;  %v6068_v30 = vadd.f32 %v6059_v22, %v5790_v57  ;;  %v8847_v57 = vld [vmem:[#allocation12 + $0x20] sm:$0xff]  }
 0xa46   :  { %v6067_v0 = vadd.f32 %v6020_v37, %v5789_v13  ;;  %v6022_v36 = vpop.f32.mrb[70].mxu0  ;;  %v6063_v32 = vpop.f32.mrb[70].mxu1  ;;  %v6069_v31 = vadd.f32 %v6061_v5, %v5791_v38  ;;  %v8844_v38 = vld [vmem:[#allocation12 + $0x8] sm:$0xff]  }
 0xa47   :  { %v8069_v9 = vmul.f32 -1.442695, %v6066_v26  ;;  %v6023_v47 = vpop.f32.mrb[71].mxu0  ;;  %v6064_v45 = vpop.f32.mrb[71].mxu1  ;;  %v11796_v26 = vld [vmem:[#allocation23_spill] sm:$0xff] }
 0xa48   :  { %v8070_v44 = vmul.f32 -1.442695, %v6067_v0  ;;  %v8071_v43 = vmul.f32 -1.442695, %v6069_v31  ;;  %v8846_v31 = vld [vmem:[#allocation12 + $0x18] sm:$0xff]  }
 0xa49   :  { %9059 = vpow2.f32 %v8069_v9 }
 0xa4a   :  { %9061 = vpow2.f32 %v8070_v44  ;;  %v9307_v44 = vmov 0.0  }
 0xa4b   :  { %9063 = vpow2.f32 %v8071_v43  ;;  %8162 = vmatprep.subr.bf16.mxu0 %v9307_v44  ;;  %v8848_v43 = vld [vmem:[#allocation12 + $0x28] sm:$0xff]  }
 0xa4c   :  { %9065 = vtanh.f32 %v6068_v30  ;;  %v8849_v30 = vld [vmem:[#allocation12 + $0x30] sm:$0xff]  }
 0xa53   :  { %v9060_v15 = vpop.eup %9059 }
 0xa54   :  { %v9062_v41 = vpop.eup %9061  ;;  %v6546_v51 = vadd.f32 1.0, %v9060_v15  ;;  %v8850_v15 = vld [vmem:[#allocation12 + $0x38] sm:$0xff]  }
 0xa55   :  { %v6552_v49 = vadd.f32 1.0, %v9062_v41  ;;  %v9064_v46 = vpop.eup %9063 }
 0xa56   :  { %9067 = vrcp.f32 %v6546_v51  ;;  %v9066_v42 = vpop.eup %9065  ;;  %v6559_v40 = vadd.f32 1.0, %v9064_v46 }
 0xa57   :  { %9069 = vrcp.f32 %v6552_v49 }
 0xa58   :  { %9071 = vrcp.f32 %v6559_v40 }
 0xa60   :  { %v9068_v53 = vpop.eup %9067 }
 0xa61   :  { %v9070_v63 = vpop.eup %9069  ;;  %v6563_v52 = vmul.f32 %v9068_v53, %v9066_v42 }
 0xa62   :  { %v6562_v58 = vmul.f32 %v9070_v63, %v11791_v60  ;;  %v9072_v54 = vpop.eup %9071 }
 0xa64   :  { %v6564_v39 = vadd.f32 %v6563_v52, %v6562_v58 }
 0xa66   :  { %9073 = vtanh.f32 %v6564_v39  ;;  %7098 = vst [vmem:[#allocation16] sm:$0xff] %v6564_v39 }
 0xa70   :  { %v9074_v1 = vpop.eup %9073 }
 0xa71   :  { %v6566_v17 = vmul.f32 %v9074_v1, %v9072_v54 }
 0xa73   :  { %v6567_v19 = vpack.c.bf16 %v6566_v17, %v6566_v17  ;;  %7095 = vst [vmem:[#allocation14] sm:$0xff] %v6566_v17 }
 0xa75   :  { %6568 = vst [vmem:[#allocation3] sm:$0xf] %v6567_v19 }
 0xa84   :  { %v6495_v55 = vpop.f32.mrb[72].mxu0  ;;  %v6536_v33 = vpop.f32.mrb[72].mxu1 }
 0xa85   :  { %v6496_v16 = vadd.f32 %v6495_v55, %v11792_v56  ;;  %v6497_v61 = vpop.f32.mrb[73].mxu0  ;;  %v6538_v62 = vpop.f32.mrb[73].mxu1  ;;  %v6537_v24 = vadd.f32 %v6536_v33, %v11795_v50 }
 0xa86   :  { %v6498_v35 = vadd.f32 %v6497_v61, %v11793_v2  ;;  %v6499_v11 = vpop.f32.mrb[74].mxu0  ;;  %v6540_v25 = vpop.f32.mrb[74].mxu1  ;;  %v6539_v8 = vadd.f32 %v6538_v62, %v11794_v28 }
 0xa87   :  { %v8072_v7 = vmul.f32 -1.442695, %v6496_v16  ;;  %v6500_v10 = vpop.f32.mrb[75].mxu0  ;;  %v6541_v29 = vpop.f32.mrb[75].mxu1 }
 0xa88   :  { %v8073_v23 = vmul.f32 -1.442695, %v6498_v35  ;;  %v8074_v12 = vmul.f32 -1.442695, %v6539_v8 }
 0xa89   :  { %9075 = vpow2.f32 %v8072_v7 }
 0xa8a   :  { %9077 = vpow2.f32 %v8073_v23 }
 0xa8b   :  { %9079 = vpow2.f32 %v8074_v12  ;;  %v11797_v12 = vlaneseq }
 0xa8c   :  { %9081 = vtanh.f32 %v6537_v24  ;;  %v8144_v24 = vld [vmem:[%s11219_s7] ss:$0 sm:$0xff] }
 0xa93   :  { %v9076_v4 = vpop.eup %9075 }
 0xa94   :  { %v9078_v27 = vpop.eup %9077  ;;  %v6572_v59 = vadd.f32 1.0, %v9076_v4 }
 0xa95   :  { %v6578_v3 = vadd.f32 1.0, %v9078_v27  ;;  %v9080_v14 = vpop.eup %9079 }
 0xa96   :  { %9083 = vrcp.f32 %v6572_v59  ;;  %v9082_v20 = vpop.eup %9081  ;;  %v6585_v13 = vadd.f32 1.0, %v9080_v14 }
 0xa97   :  { %9085 = vrcp.f32 %v6578_v3 }
 0xa98   :  { %9087 = vrcp.f32 %v6585_v13 }
 0xaa0   :  { %v9084_v34 = vpop.eup %9083 }
 0xaa1   :  { %v9086_v21 = vpop.eup %9085  ;;  %v6589_v22 = vmul.f32 %v9084_v34, %v9082_v20 }
 0xaa2   :  { %v6588_v37 = vmul.f32 %v9086_v21, %v11796_v26  ;;  %v9088_v0 = vpop.eup %9087 }
 0xaa4   :  { %v11164_v5 = vadd.f32 %v6589_v22, %v6588_v37 }
 0xaa6   :  { %9089 = vtanh.f32 %v11164_v5 }
 0xab0   :  { %v9090_v6 = vpop.eup %9089 }
 0xab1   :  { %v6592_v36 = vmul.f32 %v9090_v6, %v9088_v0 }
 0xab3   :  { %v6593_v32 = vpack.c.bf16 %v6592_v36, %v6592_v36 }
 0xab5   :  { %6594 = vst [vmem:[#allocation3 + $0x4] sm:$0xf] %v6593_v32 }
 0xabc   :  { %v6595_v9 = vld [vmem:[#allocation3] sm:$0xff] }
 0xabd   :  { %v8076_v47 = vcombine.high %v6595_v9, %v6595_v9  ;;  %v8075_v45 = vcombine.low %v6595_v9, %v6595_v9 }
 0xabf   :  { %7019 = vmatprep.mubr.bf16.mxu0 %v8076_v47  ;;  %7060 = vmatprep.mubr.bf16.mxu1 %v8076_v47 }
 0xac0   :  { %7020 = vmatmul.mubr.bf16.vlgmr.msra.gmra.mrb[76].mxu0 %v8075_v45  ;;  %7061 = vmatmul.mubr.bf16.vlgmr.msra.gmra.mrb[76].mxu1 %v8075_v45 }
 0xac1   :  { %8163 = vmatpush3.bf16.msra.mxu0 %v8843_v18  ;;  %8178 = vmatprep.mubr.msk.bf16.mxu0 %vm9308_vm0, %v9307_v44 }
 0xac2   :  { %8164 = vmatprep.subr.bf16.mxu0 %v9307_v44 }
 0xac5   :  { %8165 = vmatpush3.bf16.msra.mxu0 %v8844_v38 }
 0xac6   :  { %8166 = vmatprep.subr.bf16.mxu0 %v9307_v44 }
 0xac9   :  { %8167 = vmatpush3.bf16.msra.mxu0 %v8845_v48 }
 0xaca   :  { %8168 = vmatprep.subr.bf16.mxu0 %v9307_v44 }
 0xacd   :  { %8169 = vmatpush3.bf16.msra.mxu0 %v8846_v31 }
 0xace   :  { %8170 = vmatprep.subr.bf16.mxu0 %v9307_v44 }
 0xad1   :  { %8171 = vmatpush3.bf16.msra.mxu0 %v8847_v57 }
 0xad2   :  { %8172 = vmatprep.subr.bf16.mxu0 %v9307_v44 }
 0xad5   :  { %8173 = vmatpush3.bf16.msra.mxu0 %v8848_v43 }
 0xad6   :  { %8174 = vmatprep.subr.bf16.mxu0 %v9307_v44 }
 0xad9   :  { %8175 = vmatpush3.bf16.msra.mxu0 %v8849_v30 }
 0xada   :  { %8176 = vmatprep.subr.bf16.mxu0 %v9307_v44 }
 0xadd   :  { %8177 = vmatpush3.bf16.msra.mxu0 %v8850_v15 }
 0xb93   :  { %v7021_v41 = vpop.f32.mrb[76].mxu0  ;;  %v7062_v51 = vpop.f32.mrb[76].mxu1 }
 0xb94   :  { %v7022_v49 = vadd.f32 %v7021_v41, %v11792_v56  ;;  %v7023_v46 = vpop.f32.mrb[77].mxu0  ;;  %v7064_v42 = vpop.f32.mrb[77].mxu1  ;;  %v7063_v17 = vadd.f32 %v7062_v51, %v11795_v50  ;;  %v7214_v50 = vand.u32 127, %v11797_v12 }
 0xb95   :  { %v7024_v53 = vadd.f32 %v7023_v46, %v11793_v2  ;;  %v7025_v63 = vpop.f32.mrb[78].mxu0  ;;  %v7066_v52 = vpop.f32.mrb[78].mxu1  ;;  %v7065_v54 = vadd.f32 %v7064_v42, %v11794_v28 }
 0xb96   :  { %v8141_v40 = vmul.f32 -1.442695, %v7022_v49  ;;  %v7026_v60 = vpop.f32.mrb[79].mxu0  ;;  %v7067_v58 = vpop.f32.mrb[79].mxu1  ;;  %vm7215_vm1 = vcmp.lt.s32.totalorder %v7214_v50, 2 }
 0xb97   :  { %v8142_v39 = vmul.f32 -1.442695, %v7024_v53  ;;  %v8143_v1 = vmul.f32 -1.442695, %v7065_v54 }
 0xb98   :  { %9091 = vpow2.f32 %v8141_v40 }
 0xb99   :  { %9093 = vpow2.f32 %v8142_v39 }
 0xb9a   :  { %9095 = vpow2.f32 %v8143_v1 }
 0xb9b   :  { %9097 = vtanh.f32 %v7063_v17 }
 0xba2   :  { %v9092_v19 = vpop.eup %9091 }
 0xba3   :  { %v9094_v55 = vpop.eup %9093  ;;  %v7072_v33 = vadd.f32 1.0, %v9092_v19 }
 0xba4   :  { %v7078_v56 = vadd.f32 1.0, %v9094_v55  ;;  %v9096_v16 = vpop.eup %9095 }
 0xba5   :  { %9099 = vrcp.f32 %v7072_v33  ;;  %v9098_v61 = vpop.eup %9097  ;;  %v7085_v11 = vadd.f32 1.0, %v9096_v16 }
 0xba6   :  { %9101 = vrcp.f32 %v7078_v56 }
 0xba7   :  { %9103 = vrcp.f32 %v7085_v11 }
 0xbaf   :  { %v9100_v62 = vpop.eup %9099 }
 0xbb0   :  { %v9102_v2 = vpop.eup %9101  ;;  %v7089_v35 = vmul.f32 %v9100_v62, %v9098_v61 }
 0xbb1   :  { %v7088_v25 = vmul.f32 %v9102_v2, %v11164_v5  ;;  %v9104_v10 = vpop.eup %9103 }
 0xbb3   :  { %v7090_v7 = vadd.f32 %v7089_v35, %v7088_v25 }
 0xbb5   :  { %9105 = vtanh.f32 %v7090_v7  ;;  %7100 = vst [vmem:[#allocation16 + $0x8] sm:$0xff] %v7090_v7 }
 0xbbf   :  { %v9106_v29 = vpop.eup %9105 }
 0xbc0   :  { %v7092_v23 = vmul.f32 %v9106_v29, %v9104_v10 }
 0xbc2   :  { %v7093_v28 = vpack.c.bf16 %v7092_v23, %v7092_v23  ;;  %7097 = vst [vmem:[#allocation14 + $0x8] sm:$0xff] %v7092_v23 }
 0xbc4   :  { %7094 = vst [vmem:[#allocation3 + $0x4] sm:$0xf] %v7093_v28 }
 0xbcb   :  { %v7101_v8 = vld [vmem:[#allocation3 + $0x4] sm:$0xf] }
 0xbcc   :  { %8179 = vmatmul.mubr.bf16.vlgmr.msra.gmra.mrb[80].mxu0 %v7101_v8 }
 0xc9f   :  { %v7207_v4 = vpop.f32.mrb[80].mxu0 }
 0xca0   :  { %v7208_v27 = vadd.f32 %v8144_v24, %v7207_v4  ;;  %v8180_v59 = vpop.f32.mrb[81].mxu0 }
 0xca1   :  { %v7210_v3 = vpop.f32.mrb[82].mxu0 }
 0xca2   :  { %v8181_v14 = vpop.f32.mrb[83].mxu0  ;;  %v7216_v20 = vsel %vm7215_vm1, %v7208_v27, -1e+30 }
 0xca3   :  { %7217 = vmax.xlane.f32.xlu0 %v7216_v20 }
 0xd30   :  { %v7218_v34 = vpop.xlane.xlu0 %7217 }
 0xd31   :  { %v7219_v21 = vsub.f32 %v7216_v20, %v7218_v34 }
 0xd33   :  { %v7220_v22 = vmul.f32 1.442695, %v7219_v21 }
 0xd35   :  { %9107 = vpow2.f32 %v7220_v22 }
 0xd3f   :  { %v9108_v13 = vpop.eup %9107 }
 0xd40   :  { %7222 = vadd.xlane.f32.xlu0 %v9108_v13 }
 0xd41   :  { %9232 = shalt.err (!%p9229_p2)
}
 0xd42   :  { %s9233_s20 = scalar_lea.hbm %s11221_s9, 256 }
 0xd43   :  { %p9234_p3 = scmp.ne.s32.totalorder %s11221_s9, %s9233_s20  ;;  %p9237_p4 = scmp.lt.u32.totalorder %s9233_s20, %s11221_s9 }
 0xd45   :  { %p9239_p5 = pnand %p9237_p4, %p9234_p3 }
 0xd47   :  { %9242 = shalt.err (!%p9239_p5)
}
 0xd48   :  { %s9310_s30 = smov 128   ;;  %s9311_s26 = smov 8  }
 0xd49   :  { %7249 = dma.vmem_to_hbm [thread:$0]  %s7244_s18, 256, %s11221_s9, [#allocation15], %s9310_s30, %s9310_s30, %s9311_s26  }
 0xd4a   :  { %s9312_s11 = smov [#allocation16]  }
 0xd4b   :  { %s7255_s12 = sshll.u32 %s9312_s11, 4  ;;  %s7256_s12 = int_to_ptr.vmem [resolvable:$true] %s7255_s12 }
 0xd4c   :  { %s9243_s13 = scalar_lea.vmem %s7256_s12, 256  ;;  %p9248_p7 = scmp.lt.s32.totalorder %s7256_s12, %s7256_s12 }
 0xd4d   :  { %p9244_p6 = scmp.ne.s32.totalorder %s7256_s12, %s9243_s13  ;;  %p9249_p8 = scmp.lt.s32.totalorder %s9243_s13, %s9243_s13 }
 0xd4f   :  { %p9250_p9 = por %p9249_p8, %p9248_p7 }
 0xd51   :  { %p9251_p10 = pnand %p9250_p9, %p9244_p6 }
 0xd53   :  { %9254 = shalt.err (!%p9251_p10)
}
 0xd54   :  { %s9255_s1 = scalar_lea.hbm %s11222_s10, 256 }
 0xd55   :  { %p9256_p11 = scmp.ne.s32.totalorder %s11222_s10, %s9255_s1  ;;  %p9259_p12 = scmp.lt.u32.totalorder %s9255_s1, %s11222_s10 }
 0xd57   :  { %p9261_p13 = pnand %p9259_p12, %p9256_p11 }
 0xd59   :  { %9264 = shalt.err (!%p9261_p13)
}
 0xd5a   :  { %7261 = dma.vmem_to_hbm [thread:$0]  %s7256_s12, 256, %s11222_s10, [#allocation15], %s9310_s30, %s9310_s30, %s9311_s26  }
 0xd5b   :  { %s9313_s4 = smov [#allocation13]  }
 0xd5c   :  { %s7234_s5 = sshll.u32 %s9313_s4, 4  ;;  %s7235_s5 = int_to_ptr.vmem [resolvable:$true] %s7234_s5 }
 0xd5d   :  { %s9265_s28 = scalar_lea.vmem %s7235_s5, 128  ;;  %p9270_p1 = scmp.lt.s32.totalorder %s7235_s5, %s7235_s5 }
 0xd5e   :  { %p9266_p0 = scmp.ne.s32.totalorder %s7235_s5, %s9265_s28  ;;  %p9271_p2 = scmp.lt.s32.totalorder %s9265_s28, %s9265_s28 }
 0xd60   :  { %p9272_p3 = por %p9271_p2, %p9270_p1 }
 0xd62   :  { %p9273_p4 = pnand %p9272_p3, %p9266_p0 }
 0xdcd   :  { %v7223_v26 = vpop.xlane.xlu0 %7222 }
 0xdce   :  { %9109 = vlog2.f32 %v7223_v26 }
 0xdd8   :  { %v9110_v37 = vpop.eup %9109 }
 0xdd9   :  { %v7225_v5 = vmul.f32 0.6931472, %v9110_v37 }
 0xddb   :  { %v7226_v0 = vsub.f32 %v7219_v21, %v7225_v5 }
 0xddd   :  { %7227 = vst [vmem:[#allocation13] sm:$0xff] %v7226_v0 }
 0xdde   :  { %9276 = shalt.err (!%p9273_p4)
}
 0xddf   :  { %s9277_s10 = scalar_lea.hbm %s11220_s8, 128 }
 0xde0   :  { %p9278_p5 = scmp.ne.s32.totalorder %s11220_s8, %s9277_s10  ;;  %p9281_p6 = scmp.lt.u32.totalorder %s9277_s10, %s11220_s8 }
 0xde2   :  { %p9283_p7 = pnand %p9281_p6, %p9278_p5 }
 0xde4   :  { %9286 = shalt.err (!%p9283_p7)
}
 0xde5   :  { %7237 = dma.vmem_to_hbm [thread:$0]  %s7235_s5, 128, %s11220_s8, [#allocation6]  }
 0xde6   :  { %9293 = dma.done.wait [#allocation6], 128  }
 0xde7   :  { %9294 = vsyncadd [#allocation6], 4294967168 }
 0xde8   :  { %9295 = dma.done.wait [#allocation15], 512  }
 0xde9   :  { %9296 = vsyncadd [#allocation15], 4294966784 }
 0xdea   :  { %7271 = vsyncpa [#allocation5], 1 }
 0xdeb   :  { %7272 = vsyncpa [#allocation8], 1 }
 0xdec   :  { %7273 = vsyncpa [#allocation11], 1 }
 0xded   :  { %7274 = vsyncpa [#allocation6], 1 }
 0xdee   :  { %7275 = vsyncpa [#allocation15], 1 }

</bundles_post_ra>
